<compile_context>
chip_gen: v5e
topology: v5e:2x2
jax: 0.10.0
libtpu: 0.0.40
codegen_flags: <defaults>
</compile_context>

<pallas_src>
import functools

import jax
import jax.numpy as jnp
from jax.experimental import pallas as pl
from jax.experimental.pallas import tpu as pltpu

BATCH_TILE = 8  # sublane width: batch is padded/packed to a multiple of this


# ---------------------------------------------------------------------------
# Fused Pallas kernel: num_layers LSTM layers, wavefronted over the sequence
# ---------------------------------------------------------------------------
def encoder_kernel(x_ref, *rest, num_layers, hidden_dim):
    """Fused multi-layer LSTM over one batch tile.

    x_ref : (B, S, D_in)                      batch-first input tile (B == BATCH_TILE)
    rest  : [wih_0, whh_0, b_0, ..., wih_{L-1}, whh_{L-1}, b_{L-1},   (inputs)
             y_ref, hN_ref, cN_ref,                                   (outputs)
             gx_ref]                                                  (VMEM scratch)
      wih_l : (D_l, 4H) bf16  == W_ih^T, gate columns reordered to [i, f, o, g]
      whh_l : (H, 4H)   bf16  == W_hh^T (same column order)
      b_l   : (1, 4H)   f32   == b_ih + b_hh (same column order)
      y_ref : (B, S, H) f32   per-step hidden outputs of the last layer (batch_first)
      hN/cN : (L, B, H) f32   final hidden / cell state per layer
      gx_ref: (B, S, 4H) f32  staged layer-0 input projection
    """
    H = hidden_dim
    L = num_layers
    w_refs = rest[:3 * L]
    y_ref, hN_ref, cN_ref = rest[3 * L], rest[3 * L + 1], rest[3 * L + 2]
    gx_ref = rest[3 * L + 3]

    B, S, D = x_ref.shape

    # ---- Layer-0 input projection, hoisted out of the recurrence ----------
    # One (B*S, D) x (D, 4H) bf16 MXU matmul, bias folded in, staged in VMEM.
    wih0 = w_refs[0][...]                       # (D, 4H) bf16
    b0 = w_refs[2][...]                         # (1, 4H) f32
    x_bf = x_ref[...].astype(jnp.bfloat16).reshape(B * S, D)
    gx0 = jnp.dot(x_bf, wih0, preferred_element_type=jnp.float32) + b0
    gx_ref[...] = gx0.reshape(B, S, 4 * H)

    # ---- Recurrent / inter-layer weights: read once, stay in vregs --------
    whh = [w_refs[3 * l + 1][...] for l in range(L)]        # (H, 4H) bf16
    wih = [w_refs[3 * l][...] for l in range(1, L)]         # (H, 4H) bf16, layers >= 1
    bias = [w_refs[3 * l + 2][...] for l in range(1, L)]    # (1, 4H) f32,  layers >= 1

    zeros = jnp.zeros((B, H), jnp.float32)
    h = [zeros] * L
    c = [zeros] * L
    outs = []

    def cell_update(gates, c_prev):
        # Gate order [i, f, o | g]: one sigmoid over 3H, one tanh over H (2 EUP calls).
        ifo = jax.nn.sigmoid(gates[:, :3 * H])
        g_g = jnp.tanh(gates[:, 3 * H:])
        i_g = ifo[:, :H]
        f_g = ifo[:, H:2 * H]
        o_g = ifo[:, 2 * H:]
        c_new = f_g * c_prev + i_g * g_g
        h_new = o_g * jnp.tanh(c_new)
        return h_new, c_new

    # ---- Wavefronted, fully unrolled time loop ----------------------------
    # Layer l's step t depends only on layer l-1's step t and layer l's step t-1;
    # everything is SSA so the scheduler overlaps the L serial chains.
    for t in range(S):
        gates0 = gx_ref[:, t, :] + jnp.dot(h[0].astype(jnp.bfloat16), whh[0],
                                           preferred_element_type=jnp.float32)
        h[0], c[0] = cell_update(gates0, c[0])
        for l in range(1, L):
            gates = (jnp.dot(h[l - 1].astype(jnp.bfloat16), wih[l - 1],
                             preferred_element_type=jnp.float32)
                     + bias[l - 1]
                     + jnp.dot(h[l].astype(jnp.bfloat16), whh[l],
                               preferred_element_type=jnp.float32))
            h[l], c[l] = cell_update(gates, c[l])
        outs.append(h[L - 1])

    # ---- Lane-dense stores: one write per output buffer -------------------
    y_ref[...] = jnp.stack(outs, axis=1)        # (B, S, H), batch_first
    hN_ref[...] = jnp.stack(h, axis=0)          # (L, B, H)
    cN_ref[...] = jnp.stack(c, axis=0)          # (L, B, H)


# ---------------------------------------------------------------------------
# Wrapper
# ---------------------------------------------------------------------------
def _vmem_limit_bytes(BT, S, D, H, L):
    """Footprint estimate with (sublane=8, lane=128) padding; capped for v7x headroom."""
    def pad2(r, c):
        return ((r + 7) // 8 * 8) * ((c + 127) // 128 * 128)

    f32, bf16 = 4, 2
    n = 0
    n += 2 * BT * pad2(S, D) * f32               # x block (double-buffered)
    n += 2 * BT * pad2(S, H) * f32               # y block
    n += 2 * 2 * L * pad2(BT, H) * f32           # hN, cN blocks
    n += BT * pad2(S, 4 * H) * f32               # gx scratch
    for l in range(L):
        d_in = D if l == 0 else H
        n += 2 * (pad2(d_in, 4 * H) + pad2(H, 4 * H)) * bf16   # weights (double-buffered)
        n += 2 * pad2(1, 4 * H) * f32                           # bias
    return int(min(max(2 * n, 8 * 1024 * 1024), 32 * 1024 * 1024))


@jax.jit
def encoder_forward(kparams, x):
    """x: (B, S, input_dim) f32 -> (outputs (B,S,H), hidden (L,B,H), cell (L,B,H))."""
    B, S, D = x.shape
    layers = kparams["layers"]
    L = len(layers)
    H = layers[0]["whh_t"].shape[0]

    # Pad batch to a multiple of the sublane width so every vreg / MXU pass is full.
    BT = BATCH_TILE
    B_pad = -(-B // BT) * BT
    if B_pad != B:
        x = jnp.pad(x, ((0, B_pad - B), (0, 0), (0, 0)))

    flat_w = []
    w_specs = []
    for p in layers:
        for name in ("wih_t", "whh_t", "b"):
            w = p[name]
            flat_w.append(w)
            w_specs.append(pl.BlockSpec(w.shape, lambda i: (0, 0)))

    kernel = functools.partial(encoder_kernel, num_layers=L, hidden_dim=H)

    outputs, hidden, cell = pl.pallas_call(
        kernel,
        out_shape=(jax.ShapeDtypeStruct((B_pad, S, H), jnp.float32),
                   jax.ShapeDtypeStruct((L, B_pad, H), jnp.float32),
                   jax.ShapeDtypeStruct((L, B_pad, H), jnp.float32)),
        grid=(B_pad // BT,),
        in_specs=[pl.BlockSpec((BT, S, D), lambda i: (i, 0, 0))] + w_specs,
        out_specs=(pl.BlockSpec((BT, S, H), lambda i: (i, 0, 0)),
                   pl.BlockSpec((L, BT, H), lambda i: (0, i, 0)),
                   pl.BlockSpec((L, BT, H), lambda i: (0, i, 0))),
        scratch_shapes=[pltpu.VMEM((BT, S, 4 * H), jnp.float32)],
        compiler_params=pltpu.CompilerParams(
            dimension_semantics=("parallel",),   # shards batch tiles across TCs on v7x
            vmem_limit_bytes=_vmem_limit_bytes(BT, S, D, H, L)),
    )(x, *flat_w)

    return outputs[:B], hidden[:, :B], cell[:, :B]


# ---------------------------------------------------------------------------
# Parameter init (PyTorch layout/order) and kernel-layout preparation
# ---------------------------------------------------------------------------
def init_raw_params(key, input_dim, hidden_dim, num_layers):
    """PyTorch-style U(-1/sqrt(H), 1/sqrt(H)), gate order [i, f, g, o]."""
    scale = 1.0 / float(hidden_dim) ** 0.5
    layers = []
    for l in range(num_layers):
        d_in = input_dim if l == 0 else hidden_dim
        key, k1, k2, k3, k4 = jax.random.split(key, 5)
        layers.append({
            "w_ih": jax.random.uniform(k1, (4 * hidden_dim, d_in), jnp.float32, -scale, scale),
            "w_hh": jax.random.uniform(k2, (4 * hidden_dim, hidden_dim), jnp.float32, -scale, scale),
            "b_ih": jax.random.uniform(k3, (4 * hidden_dim,), jnp.float32, -scale, scale),
            "b_hh": jax.random.uniform(k4, (4 * hidden_dim,), jnp.float32, -scale, scale),
        })
    return layers


def prepare_kernel_params(raw_layers, hidden_dim):
    """Transpose weights, fuse biases, reorder gates [i,f,g,o] -> [i,f,o,g], cast bf16."""
    H = hidden_dim

    def reorder_rows(w):  # w: (4H, ...) stacked [i, f, g, o]
        return jnp.concatenate([w[0:H], w[H:2 * H], w[3 * H:4 * H], w[2 * H:3 * H]], axis=0)

    layers = []
    for p in raw_layers:
        b = p["b_ih"] + p["b_hh"]
        b = jnp.concatenate([b[0:H], b[H:2 * H], b[3 * H:4 * H], b[2 * H:3 * H]])
        layers.append({
            "wih_t": reorder_rows(p["w_ih"]).T.astype(jnp.bfloat16),   # (D_in, 4H)
            "whh_t": reorder_rows(p["w_hh"]).T.astype(jnp.bfloat16),   # (H, 4H)
            "b": b.reshape(1, 4 * H).astype(jnp.float32),              # (1, 4H)
        })
    return {"layers": layers}


# ---------------------------------------------------------------------------
# Pure-JAX reference (standard PyTorch LSTM semantics, zero initial state, f32)
# ---------------------------------------------------------------------------
def reference_forward(raw_layers, x):
    B, S, _ = x.shape
    H = raw_layers[0]["w_hh"].shape[1]
    layer_in = x
    hs, cs = [], []
    for p in raw_layers:
        h = jnp.zeros((B, H), jnp.float32)
        c = jnp.zeros((B, H), jnp.float32)
        outs = []
        for t in range(S):
            x_t = layer_in[:, t, :]
            gates = x_t @ p["w_ih"].T + h @ p["w_hh"].T + p["b_ih"] + p["b_hh"]
            i = jax.nn.sigmoid(gates[:, 0:H])
            f = jax.nn.sigmoid(gates[:, H:2 * H])
            g = jnp.tanh(gates[:, 2 * H:3 * H])
            o = jax.nn.sigmoid(gates[:, 3 * H:4 * H])
            c = f * c + i * g
            h = o * jnp.tanh(c)
            outs.append(h)
        layer_in = jnp.stack(outs, axis=1)
        hs.append(h)
        cs.append(c)
    return layer_in, jnp.stack(hs), jnp.stack(cs)


# ---------------------------------------------------------------------------
if __name__ == "__main__":
    input_dim, hidden_dim, num_layers, dropout = 4, 32, 2, 0.1
    batch, seq = 2, 8

    key = jax.random.PRNGKey(0)
    key, kp, kx = jax.random.split(key, 3)

    raw_params = init_raw_params(kp, input_dim, hidden_dim, num_layers)
    kparams = prepare_kernel_params(raw_params, hidden_dim)
    x = jax.random.normal(kx, (batch, seq, input_dim), jnp.float32)

    outputs, hidden, cell = encoder_forward(kparams, x)
    jax.block_until_ready((outputs, hidden, cell))

    # Correctness check against a pure-f32 JAX reference. Tolerance is relaxed because
    # the kernel feeds the MXU bf16 operands (error compounds across the S-step recurrence).
    ref_out, ref_h, ref_c = reference_forward(raw_params, x)
    assert outputs.shape == (batch, seq, hidden_dim)
    assert hidden.shape == (num_layers, batch, hidden_dim)
    assert cell.shape == (num_layers, batch, hidden_dim)
    assert jnp.allclose(outputs, ref_out, atol=2e-2, rtol=2e-2)
    assert jnp.allclose(hidden, ref_h, atol=2e-2, rtol=2e-2)
    assert jnp.allclose(cell, ref_c, atol=2e-2, rtol=2e-2)

    print("KERNEL_OK")
</pallas_src>

<mosaic_0001>
module attributes {stable_mosaic.version = 11 : i64} {
  func.func @encoder_kernel(%arg0: i32, %arg1: memref<8x8x4xf32, #tpu.memory_space<vmem>>, %arg2: memref<4x128xbf16, #tpu.memory_space<vmem>>, %arg3: memref<32x128xbf16, #tpu.memory_space<vmem>>, %arg4: memref<1x128xf32, #tpu.memory_space<vmem>>, %arg5: memref<32x128xbf16, #tpu.memory_space<vmem>>, %arg6: memref<32x128xbf16, #tpu.memory_space<vmem>>, %arg7: memref<1x128xf32, #tpu.memory_space<vmem>>, %arg8: memref<8x8x32xf32, #tpu.memory_space<vmem>>, %arg9: memref<2x8x32xf32, #tpu.memory_space<vmem>>, %arg10: memref<2x8x32xf32, #tpu.memory_space<vmem>>, %arg11: memref<8x8x128xf32, #tpu.memory_space<vmem>>) attributes {dimension_semantics = [#tpu.dimension_semantics<parallel>], iteration_bounds = array<i64: 1>, scalar_prefetch = 0 : i64, scratch_operands = 1 : i64, tpu.core_type = #tpu.core_type<tc>, window_params = [{transform_indices = @transform_0, window_bounds = array<i64: 8, 8, 4>}, {pipeline_mode = #tpu.pipeline_mode<synchronous>, transform_indices = @transform_1, window_bounds = array<i64: 4, 128>}, {pipeline_mode = #tpu.pipeline_mode<synchronous>, transform_indices = @transform_2, window_bounds = array<i64: 32, 128>}, {pipeline_mode = #tpu.pipeline_mode<synchronous>, transform_indices = @transform_3, window_bounds = array<i64: 1, 128>}, {pipeline_mode = #tpu.pipeline_mode<synchronous>, transform_indices = @transform_4, window_bounds = array<i64: 32, 128>}, {pipeline_mode = #tpu.pipeline_mode<synchronous>, transform_indices = @transform_5, window_bounds = array<i64: 32, 128>}, {pipeline_mode = #tpu.pipeline_mode<synchronous>, transform_indices = @transform_6, window_bounds = array<i64: 1, 128>}, {transform_indices = @transform_7, window_bounds = array<i64: 8, 8, 32>}, {transform_indices = @transform_8, window_bounds = array<i64: 2, 8, 32>}, {transform_indices = @transform_9, window_bounds = array<i64: 2, 8, 32>}]} {
    %c0 = arith.constant 0 : index
    %c0_0 = arith.constant 0 : index
    %0 = vector.load %arg2[%c0, %c0_0] : memref<4x128xbf16, #tpu.memory_space<vmem>>, vector<4x128xbf16>
    %c0_1 = arith.constant 0 : index
    %c0_2 = arith.constant 0 : index
    %1 = vector.load %arg4[%c0_1, %c0_2] : memref<1x128xf32, #tpu.memory_space<vmem>>, vector<1x128xf32>
    %c0_3 = arith.constant 0 : index
    %c0_4 = arith.constant 0 : index
    %c0_5 = arith.constant 0 : index
    %2 = vector.load %arg1[%c0_3, %c0_4, %c0_5] : memref<8x8x4xf32, #tpu.memory_space<vmem>>, vector<8x8x4xf32>
    %3 = arith.truncf %2 : vector<8x8x4xf32> to vector<8x8x4xbf16>
    %4 = vector.shape_cast %3 : vector<8x8x4xbf16> to vector<64x4xbf16>
    %cst = arith.constant dense<0.000000e+00> : vector<64x128xf32>
    %5 = tpu.matmul %4, %0, %cst {dimension_numbers = #tpu.dot_dimension_numbers<[1], [0], [0], [1], [0, 0, 1, 1], [], []>} : vector<64x4xbf16>, vector<4x128xbf16>, vector<64x128xf32> -> vector<64x128xf32>
    %6 = vector.broadcast %1 : vector<1x128xf32> to vector<64x128xf32>
    %7 = arith.addf %5, %6 : vector<64x128xf32>
    %8 = vector.shape_cast %7 : vector<64x128xf32> to vector<8x8x128xf32>
    %c0_6 = arith.constant 0 : index
    %c0_7 = arith.constant 0 : index
    %c0_8 = arith.constant 0 : index
    %9 = vector.load %arg11[%c0_6, %c0_7, %c0_8] : memref<8x8x128xf32, #tpu.memory_space<vmem>>, vector<8x8x128xf32>
    tpu.vector_store %arg11[%c0_6, %c0_7, %c0_8], %8 {strides = array<i32>} : memref<8x8x128xf32, #tpu.memory_space<vmem>>, vector<8x8x128xf32>,
    %c0_9 = arith.constant 0 : index
    %c0_10 = arith.constant 0 : index
    %10 = vector.load %arg3[%c0_9, %c0_10] : memref<32x128xbf16, #tpu.memory_space<vmem>>, vector<32x128xbf16>
    %c0_11 = arith.constant 0 : index
    %c0_12 = arith.constant 0 : index
    %11 = vector.load %arg6[%c0_11, %c0_12] : memref<32x128xbf16, #tpu.memory_space<vmem>>, vector<32x128xbf16>
    %c0_13 = arith.constant 0 : index
    %c0_14 = arith.constant 0 : index
    %12 = vector.load %arg5[%c0_13, %c0_14] : memref<32x128xbf16, #tpu.memory_space<vmem>>, vector<32x128xbf16>
    %c0_15 = arith.constant 0 : index
    %c0_16 = arith.constant 0 : index
    %13 = vector.load %arg7[%c0_15, %c0_16] : memref<1x128xf32, #tpu.memory_space<vmem>>, vector<1x128xf32>
    %cst_17 = arith.constant 0.000000e+00 : f32
    %14 = vector.broadcast %cst_17 : f32 to vector<8x32xf32>
    %c0_18 = arith.constant 0 : index
    %c0_19 = arith.constant 0 : index
    %c0_20 = arith.constant 0 : index
    %15 = vector.load %arg11[%c0_18, %c0_19, %c0_20] : memref<8x8x128xf32, #tpu.memory_space<vmem>>, vector<8x1x128xf32>
    %16 = vector.shape_cast %15 : vector<8x1x128xf32> to vector<8x128xf32>
    %17 = arith.truncf %14 : vector<8x32xf32> to vector<8x32xbf16>
    %cst_21 = arith.constant dense<0.000000e+00> : vector<8x128xf32>
    %18 = tpu.matmul %17, %10, %cst_21 {dimension_numbers = #tpu.dot_dimension_numbers<[1], [0], [0], [1], [0, 0, 1, 1], [], []>} : vector<8x32xbf16>, vector<32x128xbf16>, vector<8x128xf32> -> vector<8x128xf32>
    %19 = arith.addf %16, %18 : vector<8x128xf32>
    %20 = vector.extract_strided_slice %19 {offsets = [0, 0], sizes = [8, 96], strides = [1, 1]} : vector<8x128xf32> to vector<8x96xf32>
    %21 = arith.negf %20 : vector<8x96xf32>
    %22 = math.exp %21 : vector<8x96xf32>
    %cst_22 = arith.constant 1.000000e+00 : f32
    %23 = vector.broadcast %cst_22 : f32 to vector<8x96xf32>
    %24 = arith.addf %23, %22 : vector<8x96xf32>
    %25 = arith.divf %23, %24 : vector<8x96xf32>
    %26 = vector.extract_strided_slice %19 {offsets = [0, 96], sizes = [8, 32], strides = [1, 1]} : vector<8x128xf32> to vector<8x32xf32>
    %27 = math.tanh %26 : vector<8x32xf32>
    %28 = vector.extract_strided_slice %25 {offsets = [0, 0], sizes = [8, 32], strides = [1, 1]} : vector<8x96xf32> to vector<8x32xf32>
    %29 = vector.extract_strided_slice %25 {offsets = [0, 32], sizes = [8, 32], strides = [1, 1]} : vector<8x96xf32> to vector<8x32xf32>
    %30 = vector.extract_strided_slice %25 {offsets = [0, 64], sizes = [8, 32], strides = [1, 1]} : vector<8x96xf32> to vector<8x32xf32>
    %31 = arith.mulf %29, %14 : vector<8x32xf32>
    %32 = arith.mulf %28, %27 : vector<8x32xf32>
    %33 = arith.addf %31, %32 : vector<8x32xf32>
    %34 = math.tanh %33 : vector<8x32xf32>
    %35 = arith.mulf %30, %34 : vector<8x32xf32>
    %36 = arith.truncf %35 : vector<8x32xf32> to vector<8x32xbf16>
    %cst_23 = arith.constant dense<0.000000e+00> : vector<8x128xf32>
    %37 = tpu.matmul %36, %12, %cst_23 {dimension_numbers = #tpu.dot_dimension_numbers<[1], [0], [0], [1], [0, 0, 1, 1], [], []>} : vector<8x32xbf16>, vector<32x128xbf16>, vector<8x128xf32> -> vector<8x128xf32>
    %38 = vector.broadcast %13 : vector<1x128xf32> to vector<8x128xf32>
    %39 = arith.addf %37, %38 : vector<8x128xf32>
    %40 = arith.truncf %14 : vector<8x32xf32> to vector<8x32xbf16>
    %cst_24 = arith.constant dense<0.000000e+00> : vector<8x128xf32>
    %41 = tpu.matmul %40, %11, %cst_24 {dimension_numbers = #tpu.dot_dimension_numbers<[1], [0], [0], [1], [0, 0, 1, 1], [], []>} : vector<8x32xbf16>, vector<32x128xbf16>, vector<8x128xf32> -> vector<8x128xf32>
    %42 = arith.addf %39, %41 : vector<8x128xf32>
    %43 = vector.extract_strided_slice %42 {offsets = [0, 0], sizes = [8, 96], strides = [1, 1]} : vector<8x128xf32> to vector<8x96xf32>
    %44 = arith.negf %43 : vector<8x96xf32>
    %45 = math.exp %44 : vector<8x96xf32>
    %cst_25 = arith.constant 1.000000e+00 : f32
    %46 = vector.broadcast %cst_25 : f32 to vector<8x96xf32>
    %47 = arith.addf %46, %45 : vector<8x96xf32>
    %48 = arith.divf %46, %47 : vector<8x96xf32>
    %49 = vector.extract_strided_slice %42 {offsets = [0, 96], sizes = [8, 32], strides = [1, 1]} : vector<8x128xf32> to vector<8x32xf32>
    %50 = math.tanh %49 : vector<8x32xf32>
    %51 = vector.extract_strided_slice %48 {offsets = [0, 0], sizes = [8, 32], strides = [1, 1]} : vector<8x96xf32> to vector<8x32xf32>
    %52 = vector.extract_strided_slice %48 {offsets = [0, 32], sizes = [8, 32], strides = [1, 1]} : vector<8x96xf32> to vector<8x32xf32>
    %53 = vector.extract_strided_slice %48 {offsets = [0, 64], sizes = [8, 32], strides = [1, 1]} : vector<8x96xf32> to vector<8x32xf32>
    %54 = arith.mulf %52, %14 : vector<8x32xf32>
    %55 = arith.mulf %51, %50 : vector<8x32xf32>
    %56 = arith.addf %54, %55 : vector<8x32xf32>
    %57 = math.tanh %56 : vector<8x32xf32>
    %58 = arith.mulf %53, %57 : vector<8x32xf32>
    %c0_26 = arith.constant 0 : index
    %c1 = arith.constant 1 : index
    %c0_27 = arith.constant 0 : index
    %59 = vector.load %arg11[%c0_26, %c1, %c0_27] : memref<8x8x128xf32, #tpu.memory_space<vmem>>, vector<8x1x128xf32>
    %60 = vector.shape_cast %59 : vector<8x1x128xf32> to vector<8x128xf32>
    %61 = arith.truncf %35 : vector<8x32xf32> to vector<8x32xbf16>
    %cst_28 = arith.constant dense<0.000000e+00> : vector<8x128xf32>
    %62 = tpu.matmul %61, %10, %cst_28 {dimension_numbers = #tpu.dot_dimension_numbers<[1], [0], [0], [1], [0, 0, 1, 1], [], []>} : vector<8x32xbf16>, vector<32x128xbf16>, vector<8x128xf32> -> vector<8x128xf32>
    %63 = arith.addf %60, %62 : vector<8x128xf32>
    %64 = vector.extract_strided_slice %63 {offsets = [0, 0], sizes = [8, 96], strides = [1, 1]} : vector<8x128xf32> to vector<8x96xf32>
    %65 = arith.negf %64 : vector<8x96xf32>
    %66 = math.exp %65 : vector<8x96xf32>
    %cst_29 = arith.constant 1.000000e+00 : f32
    %67 = vector.broadcast %cst_29 : f32 to vector<8x96xf32>
    %68 = arith.addf %67, %66 : vector<8x96xf32>
    %69 = arith.divf %67, %68 : vector<8x96xf32>
    %70 = vector.extract_strided_slice %63 {offsets = [0, 96], sizes = [8, 32], strides = [1, 1]} : vector<8x128xf32> to vector<8x32xf32>
    %71 = math.tanh %70 : vector<8x32xf32>
    %72 = vector.extract_strided_slice %69 {offsets = [0, 0], sizes = [8, 32], strides = [1, 1]} : vector<8x96xf32> to vector<8x32xf32>
    %73 = vector.extract_strided_slice %69 {offsets = [0, 32], sizes = [8, 32], strides = [1, 1]} : vector<8x96xf32> to vector<8x32xf32>
    %74 = vector.extract_strided_slice %69 {offsets = [0, 64], sizes = [8, 32], strides = [1, 1]} : vector<8x96xf32> to vector<8x32xf32>
    %75 = arith.mulf %73, %33 : vector<8x32xf32>
    %76 = arith.mulf %72, %71 : vector<8x32xf32>
    %77 = arith.addf %75, %76 : vector<8x32xf32>
    %78 = math.tanh %77 : vector<8x32xf32>
    %79 = arith.mulf %74, %78 : vector<8x32xf32>
    %80 = arith.truncf %79 : vector<8x32xf32> to vector<8x32xbf16>
    %cst_30 = arith.constant dense<0.000000e+00> : vector<8x128xf32>
    %81 = tpu.matmul %80, %12, %cst_30 {dimension_numbers = #tpu.dot_dimension_numbers<[1], [0], [0], [1], [0, 0, 1, 1], [], []>} : vector<8x32xbf16>, vector<32x128xbf16>, vector<8x128xf32> -> vector<8x128xf32>
    %82 = vector.broadcast %13 : vector<1x128xf32> to vector<8x128xf32>
    %83 = arith.addf %81, %82 : vector<8x128xf32>
    %84 = arith.truncf %58 : vector<8x32xf32> to vector<8x32xbf16>
    %cst_31 = arith.constant dense<0.000000e+00> : vector<8x128xf32>
    %85 = tpu.matmul %84, %11, %cst_31 {dimension_numbers = #tpu.dot_dimension_numbers<[1], [0], [0], [1], [0, 0, 1, 1], [], []>} : vector<8x32xbf16>, vector<32x128xbf16>, vector<8x128xf32> -> vector<8x128xf32>
    %86 = arith.addf %83, %85 : vector<8x128xf32>
    %87 = vector.extract_strided_slice %86 {offsets = [0, 0], sizes = [8, 96], strides = [1, 1]} : vector<8x128xf32> to vector<8x96xf32>
    %88 = arith.negf %87 : vector<8x96xf32>
    %89 = math.exp %88 : vector<8x96xf32>
    %cst_32 = arith.constant 1.000000e+00 : f32
    %90 = vector.broadcast %cst_32 : f32 to vector<8x96xf32>
    %91 = arith.addf %90, %89 : vector<8x96xf32>
    %92 = arith.divf %90, %91 : vector<8x96xf32>
    %93 = vector.extract_strided_slice %86 {offsets = [0, 96], sizes = [8, 32], strides = [1, 1]} : vector<8x128xf32> to vector<8x32xf32>
    %94 = math.tanh %93 : vector<8x32xf32>
    %95 = vector.extract_strided_slice %92 {offsets = [0, 0], sizes = [8, 32], strides = [1, 1]} : vector<8x96xf32> to vector<8x32xf32>
    %96 = vector.extract_strided_slice %92 {offsets = [0, 32], sizes = [8, 32], strides = [1, 1]} : vector<8x96xf32> to vector<8x32xf32>
    %97 = vector.extract_strided_slice %92 {offsets = [0, 64], sizes = [8, 32], strides = [1, 1]} : vector<8x96xf32> to vector<8x32xf32>
    %98 = arith.mulf %96, %56 : vector<8x32xf32>
    %99 = arith.mulf %95, %94 : vector<8x32xf32>
    %100 = arith.addf %98, %99 : vector<8x32xf32>
    %101 = math.tanh %100 : vector<8x32xf32>
    %102 = arith.mulf %97, %101 : vector<8x32xf32>
    %c0_33 = arith.constant 0 : index
    %c2 = arith.constant 2 : index
    %c0_34 = arith.constant 0 : index
    %103 = vector.load %arg11[%c0_33, %c2, %c0_34] : memref<8x8x128xf32, #tpu.memory_space<vmem>>, vector<8x1x128xf32>
    %104 = vector.shape_cast %103 : vector<8x1x128xf32> to vector<8x128xf32>
    %105 = arith.truncf %79 : vector<8x32xf32> to vector<8x32xbf16>
    %cst_35 = arith.constant dense<0.000000e+00> : vector<8x128xf32>
    %106 = tpu.matmul %105, %10, %cst_35 {dimension_numbers = #tpu.dot_dimension_numbers<[1], [0], [0], [1], [0, 0, 1, 1], [], []>} : vector<8x32xbf16>, vector<32x128xbf16>, vector<8x128xf32> -> vector<8x128xf32>
    %107 = arith.addf %104, %106 : vector<8x128xf32>
    %108 = vector.extract_strided_slice %107 {offsets = [0, 0], sizes = [8, 96], strides = [1, 1]} : vector<8x128xf32> to vector<8x96xf32>
    %109 = arith.negf %108 : vector<8x96xf32>
    %110 = math.exp %109 : vector<8x96xf32>
    %cst_36 = arith.constant 1.000000e+00 : f32
    %111 = vector.broadcast %cst_36 : f32 to vector<8x96xf32>
    %112 = arith.addf %111, %110 : vector<8x96xf32>
    %113 = arith.divf %111, %112 : vector<8x96xf32>
    %114 = vector.extract_strided_slice %107 {offsets = [0, 96], sizes = [8, 32], strides = [1, 1]} : vector<8x128xf32> to vector<8x32xf32>
    %115 = math.tanh %114 : vector<8x32xf32>
    %116 = vector.extract_strided_slice %113 {offsets = [0, 0], sizes = [8, 32], strides = [1, 1]} : vector<8x96xf32> to vector<8x32xf32>
    %117 = vector.extract_strided_slice %113 {offsets = [0, 32], sizes = [8, 32], strides = [1, 1]} : vector<8x96xf32> to vector<8x32xf32>
    %118 = vector.extract_strided_slice %113 {offsets = [0, 64], sizes = [8, 32], strides = [1, 1]} : vector<8x96xf32> to vector<8x32xf32>
    %119 = arith.mulf %117, %77 : vector<8x32xf32>
    %120 = arith.mulf %116, %115 : vector<8x32xf32>
    %121 = arith.addf %119, %120 : vector<8x32xf32>
    %122 = math.tanh %121 : vector<8x32xf32>
    %123 = arith.mulf %118, %122 : vector<8x32xf32>
    %124 = arith.truncf %123 : vector<8x32xf32> to vector<8x32xbf16>
    %cst_37 = arith.constant dense<0.000000e+00> : vector<8x128xf32>
    %125 = tpu.matmul %124, %12, %cst_37 {dimension_numbers = #tpu.dot_dimension_numbers<[1], [0], [0], [1], [0, 0, 1, 1], [], []>} : vector<8x32xbf16>, vector<32x128xbf16>, vector<8x128xf32> -> vector<8x128xf32>
    %126 = vector.broadcast %13 : vector<1x128xf32> to vector<8x128xf32>
    %127 = arith.addf %125, %126 : vector<8x128xf32>
    %128 = arith.truncf %102 : vector<8x32xf32> to vector<8x32xbf16>
    %cst_38 = arith.constant dense<0.000000e+00> : vector<8x128xf32>
    %129 = tpu.matmul %128, %11, %cst_38 {dimension_numbers = #tpu.dot_dimension_numbers<[1], [0], [0], [1], [0, 0, 1, 1], [], []>} : vector<8x32xbf16>, vector<32x128xbf16>, vector<8x128xf32> -> vector<8x128xf32>
    %130 = arith.addf %127, %129 : vector<8x128xf32>
    %131 = vector.extract_strided_slice %130 {offsets = [0, 0], sizes = [8, 96], strides = [1, 1]} : vector<8x128xf32> to vector<8x96xf32>
    %132 = arith.negf %131 : vector<8x96xf32>
    %133 = math.exp %132 : vector<8x96xf32>
    %cst_39 = arith.constant 1.000000e+00 : f32
    %134 = vector.broadcast %cst_39 : f32 to vector<8x96xf32>
    %135 = arith.addf %134, %133 : vector<8x96xf32>
    %136 = arith.divf %134, %135 : vector<8x96xf32>
    %137 = vector.extract_strided_slice %130 {offsets = [0, 96], sizes = [8, 32], strides = [1, 1]} : vector<8x128xf32> to vector<8x32xf32>
    %138 = math.tanh %137 : vector<8x32xf32>
    %139 = vector.extract_strided_slice %136 {offsets = [0, 0], sizes = [8, 32], strides = [1, 1]} : vector<8x96xf32> to vector<8x32xf32>
    %140 = vector.extract_strided_slice %136 {offsets = [0, 32], sizes = [8, 32], strides = [1, 1]} : vector<8x96xf32> to vector<8x32xf32>
    %141 = vector.extract_strided_slice %136 {offsets = [0, 64], sizes = [8, 32], strides = [1, 1]} : vector<8x96xf32> to vector<8x32xf32>
    %142 = arith.mulf %140, %100 : vector<8x32xf32>
    %143 = arith.mulf %139, %138 : vector<8x32xf32>
    %144 = arith.addf %142, %143 : vector<8x32xf32>
    %145 = math.tanh %144 : vector<8x32xf32>
    %146 = arith.mulf %141, %145 : vector<8x32xf32>
    %c0_40 = arith.constant 0 : index
    %c3 = arith.constant 3 : index
    %c0_41 = arith.constant 0 : index
    %147 = vector.load %arg11[%c0_40, %c3, %c0_41] : memref<8x8x128xf32, #tpu.memory_space<vmem>>, vector<8x1x128xf32>
    %148 = vector.shape_cast %147 : vector<8x1x128xf32> to vector<8x128xf32>
    %149 = arith.truncf %123 : vector<8x32xf32> to vector<8x32xbf16>
    %cst_42 = arith.constant dense<0.000000e+00> : vector<8x128xf32>
    %150 = tpu.matmul %149, %10, %cst_42 {dimension_numbers = #tpu.dot_dimension_numbers<[1], [0], [0], [1], [0, 0, 1, 1], [], []>} : vector<8x32xbf16>, vector<32x128xbf16>, vector<8x128xf32> -> vector<8x128xf32>
    %151 = arith.addf %148, %150 : vector<8x128xf32>
    %152 = vector.extract_strided_slice %151 {offsets = [0, 0], sizes = [8, 96], strides = [1, 1]} : vector<8x128xf32> to vector<8x96xf32>
    %153 = arith.negf %152 : vector<8x96xf32>
    %154 = math.exp %153 : vector<8x96xf32>
    %cst_43 = arith.constant 1.000000e+00 : f32
    %155 = vector.broadcast %cst_43 : f32 to vector<8x96xf32>
    %156 = arith.addf %155, %154 : vector<8x96xf32>
    %157 = arith.divf %155, %156 : vector<8x96xf32>
    %158 = vector.extract_strided_slice %151 {offsets = [0, 96], sizes = [8, 32], strides = [1, 1]} : vector<8x128xf32> to vector<8x32xf32>
    %159 = math.tanh %158 : vector<8x32xf32>
    %160 = vector.extract_strided_slice %157 {offsets = [0, 0], sizes = [8, 32], strides = [1, 1]} : vector<8x96xf32> to vector<8x32xf32>
    %161 = vector.extract_strided_slice %157 {offsets = [0, 32], sizes = [8, 32], strides = [1, 1]} : vector<8x96xf32> to vector<8x32xf32>
    %162 = vector.extract_strided_slice %157 {offsets = [0, 64], sizes = [8, 32], strides = [1, 1]} : vector<8x96xf32> to vector<8x32xf32>
    %163 = arith.mulf %161, %121 : vector<8x32xf32>
    %164 = arith.mulf %160, %159 : vector<8x32xf32>
    %165 = arith.addf %163, %164 : vector<8x32xf32>
    %166 = math.tanh %165 : vector<8x32xf32>
    %167 = arith.mulf %162, %166 : vector<8x32xf32>
    %168 = arith.truncf %167 : vector<8x32xf32> to vector<8x32xbf16>
    %cst_44 = arith.constant dense<0.000000e+00> : vector<8x128xf32>
    %169 = tpu.matmul %168, %12, %cst_44 {dimension_numbers = #tpu.dot_dimension_numbers<[1], [0], [0], [1], [0, 0, 1, 1], [], []>} : vector<8x32xbf16>, vector<32x128xbf16>, vector<8x128xf32> -> vector<8x128xf32>
    %170 = vector.broadcast %13 : vector<1x128xf32> to vector<8x128xf32>
    %171 = arith.addf %169, %170 : vector<8x128xf32>
    %172 = arith.truncf %146 : vector<8x32xf32> to vector<8x32xbf16>
    %cst_45 = arith.constant dense<0.000000e+00> : vector<8x128xf32>
    %173 = tpu.matmul %172, %11, %cst_45 {dimension_numbers = #tpu.dot_dimension_numbers<[1], [0], [0], [1], [0, 0, 1, 1], [], []>} : vector<8x32xbf16>, vector<32x128xbf16>, vector<8x128xf32> -> vector<8x128xf32>
    %174 = arith.addf %171, %173 : vector<8x128xf32>
    %175 = vector.extract_strided_slice %174 {offsets = [0, 0], sizes = [8, 96], strides = [1, 1]} : vector<8x128xf32> to vector<8x96xf32>
    %176 = arith.negf %175 : vector<8x96xf32>
    %177 = math.exp %176 : vector<8x96xf32>
    %cst_46 = arith.constant 1.000000e+00 : f32
    %178 = vector.broadcast %cst_46 : f32 to vector<8x96xf32>
    %179 = arith.addf %178, %177 : vector<8x96xf32>
    %180 = arith.divf %178, %179 : vector<8x96xf32>
    %181 = vector.extract_strided_slice %174 {offsets = [0, 96], sizes = [8, 32], strides = [1, 1]} : vector<8x128xf32> to vector<8x32xf32>
    %182 = math.tanh %181 : vector<8x32xf32>
    %183 = vector.extract_strided_slice %180 {offsets = [0, 0], sizes = [8, 32], strides = [1, 1]} : vector<8x96xf32> to vector<8x32xf32>
    %184 = vector.extract_strided_slice %180 {offsets = [0, 32], sizes = [8, 32], strides = [1, 1]} : vector<8x96xf32> to vector<8x32xf32>
    %185 = vector.extract_strided_slice %180 {offsets = [0, 64], sizes = [8, 32], strides = [1, 1]} : vector<8x96xf32> to vector<8x32xf32>
    %186 = arith.mulf %184, %144 : vector<8x32xf32>
    %187 = arith.mulf %183, %182 : vector<8x32xf32>
    %188 = arith.addf %186, %187 : vector<8x32xf32>
    %189 = math.tanh %188 : vector<8x32xf32>
    %190 = arith.mulf %185, %189 : vector<8x32xf32>
    %c0_47 = arith.constant 0 : index
    %c4 = arith.constant 4 : index
    %c0_48 = arith.constant 0 : index
    %191 = vector.load %arg11[%c0_47, %c4, %c0_48] : memref<8x8x128xf32, #tpu.memory_space<vmem>>, vector<8x1x128xf32>
    %192 = vector.shape_cast %191 : vector<8x1x128xf32> to vector<8x128xf32>
    %193 = arith.truncf %167 : vector<8x32xf32> to vector<8x32xbf16>
    %cst_49 = arith.constant dense<0.000000e+00> : vector<8x128xf32>
    %194 = tpu.matmul %193, %10, %cst_49 {dimension_numbers = #tpu.dot_dimension_numbers<[1], [0], [0], [1], [0, 0, 1, 1], [], []>} : vector<8x32xbf16>, vector<32x128xbf16>, vector<8x128xf32> -> vector<8x128xf32>
    %195 = arith.addf %192, %194 : vector<8x128xf32>
    %196 = vector.extract_strided_slice %195 {offsets = [0, 0], sizes = [8, 96], strides = [1, 1]} : vector<8x128xf32> to vector<8x96xf32>
    %197 = arith.negf %196 : vector<8x96xf32>
    %198 = math.exp %197 : vector<8x96xf32>
    %cst_50 = arith.constant 1.000000e+00 : f32
    %199 = vector.broadcast %cst_50 : f32 to vector<8x96xf32>
    %200 = arith.addf %199, %198 : vector<8x96xf32>
    %201 = arith.divf %199, %200 : vector<8x96xf32>
    %202 = vector.extract_strided_slice %195 {offsets = [0, 96], sizes = [8, 32], strides = [1, 1]} : vector<8x128xf32> to vector<8x32xf32>
    %203 = math.tanh %202 : vector<8x32xf32>
    %204 = vector.extract_strided_slice %201 {offsets = [0, 0], sizes = [8, 32], strides = [1, 1]} : vector<8x96xf32> to vector<8x32xf32>
    %205 = vector.extract_strided_slice %201 {offsets = [0, 32], sizes = [8, 32], strides = [1, 1]} : vector<8x96xf32> to vector<8x32xf32>
    %206 = vector.extract_strided_slice %201 {offsets = [0, 64], sizes = [8, 32], strides = [1, 1]} : vector<8x96xf32> to vector<8x32xf32>
    %207 = arith.mulf %205, %165 : vector<8x32xf32>
    %208 = arith.mulf %204, %203 : vector<8x32xf32>
    %209 = arith.addf %207, %208 : vector<8x32xf32>
    %210 = math.tanh %209 : vector<8x32xf32>
    %211 = arith.mulf %206, %210 : vector<8x32xf32>
    %212 = arith.truncf %211 : vector<8x32xf32> to vector<8x32xbf16>
    %cst_51 = arith.constant dense<0.000000e+00> : vector<8x128xf32>
    %213 = tpu.matmul %212, %12, %cst_51 {dimension_numbers = #tpu.dot_dimension_numbers<[1], [0], [0], [1], [0, 0, 1, 1], [], []>} : vector<8x32xbf16>, vector<32x128xbf16>, vector<8x128xf32> -> vector<8x128xf32>
    %214 = vector.broadcast %13 : vector<1x128xf32> to vector<8x128xf32>
    %215 = arith.addf %213, %214 : vector<8x128xf32>
    %216 = arith.truncf %190 : vector<8x32xf32> to vector<8x32xbf16>
    %cst_52 = arith.constant dense<0.000000e+00> : vector<8x128xf32>
    %217 = tpu.matmul %216, %11, %cst_52 {dimension_numbers = #tpu.dot_dimension_numbers<[1], [0], [0], [1], [0, 0, 1, 1], [], []>} : vector<8x32xbf16>, vector<32x128xbf16>, vector<8x128xf32> -> vector<8x128xf32>
    %218 = arith.addf %215, %217 : vector<8x128xf32>
    %219 = vector.extract_strided_slice %218 {offsets = [0, 0], sizes = [8, 96], strides = [1, 1]} : vector<8x128xf32> to vector<8x96xf32>
    %220 = arith.negf %219 : vector<8x96xf32>
    %221 = math.exp %220 : vector<8x96xf32>
    %cst_53 = arith.constant 1.000000e+00 : f32
    %222 = vector.broadcast %cst_53 : f32 to vector<8x96xf32>
    %223 = arith.addf %222, %221 : vector<8x96xf32>
    %224 = arith.divf %222, %223 : vector<8x96xf32>
    %225 = vector.extract_strided_slice %218 {offsets = [0, 96], sizes = [8, 32], strides = [1, 1]} : vector<8x128xf32> to vector<8x32xf32>
    %226 = math.tanh %225 : vector<8x32xf32>
    %227 = vector.extract_strided_slice %224 {offsets = [0, 0], sizes = [8, 32], strides = [1, 1]} : vector<8x96xf32> to vector<8x32xf32>
    %228 = vector.extract_strided_slice %224 {offsets = [0, 32], sizes = [8, 32], strides = [1, 1]} : vector<8x96xf32> to vector<8x32xf32>
    %229 = vector.extract_strided_slice %224 {offsets = [0, 64], sizes = [8, 32], strides = [1, 1]} : vector<8x96xf32> to vector<8x32xf32>
    %230 = arith.mulf %228, %188 : vector<8x32xf32>
    %231 = arith.mulf %227, %226 : vector<8x32xf32>
    %232 = arith.addf %230, %231 : vector<8x32xf32>
    %233 = math.tanh %232 : vector<8x32xf32>
    %234 = arith.mulf %229, %233 : vector<8x32xf32>
    %c0_54 = arith.constant 0 : index
    %c5 = arith.constant 5 : index
    %c0_55 = arith.constant 0 : index
    %235 = vector.load %arg11[%c0_54, %c5, %c0_55] : memref<8x8x128xf32, #tpu.memory_space<vmem>>, vector<8x1x128xf32>
    %236 = vector.shape_cast %235 : vector<8x1x128xf32> to vector<8x128xf32>
    %237 = arith.truncf %211 : vector<8x32xf32> to vector<8x32xbf16>
    %cst_56 = arith.constant dense<0.000000e+00> : vector<8x128xf32>
    %238 = tpu.matmul %237, %10, %cst_56 {dimension_numbers = #tpu.dot_dimension_numbers<[1], [0], [0], [1], [0, 0, 1, 1], [], []>} : vector<8x32xbf16>, vector<32x128xbf16>, vector<8x128xf32> -> vector<8x128xf32>
    %239 = arith.addf %236, %238 : vector<8x128xf32>
    %240 = vector.extract_strided_slice %239 {offsets = [0, 0], sizes = [8, 96], strides = [1, 1]} : vector<8x128xf32> to vector<8x96xf32>
    %241 = arith.negf %240 : vector<8x96xf32>
    %242 = math.exp %241 : vector<8x96xf32>
    %cst_57 = arith.constant 1.000000e+00 : f32
    %243 = vector.broadcast %cst_57 : f32 to vector<8x96xf32>
    %244 = arith.addf %243, %242 : vector<8x96xf32>
    %245 = arith.divf %243, %244 : vector<8x96xf32>
    %246 = vector.extract_strided_slice %239 {offsets = [0, 96], sizes = [8, 32], strides = [1, 1]} : vector<8x128xf32> to vector<8x32xf32>
    %247 = math.tanh %246 : vector<8x32xf32>
    %248 = vector.extract_strided_slice %245 {offsets = [0, 0], sizes = [8, 32], strides = [1, 1]} : vector<8x96xf32> to vector<8x32xf32>
    %249 = vector.extract_strided_slice %245 {offsets = [0, 32], sizes = [8, 32], strides = [1, 1]} : vector<8x96xf32> to vector<8x32xf32>
    %250 = vector.extract_strided_slice %245 {offsets = [0, 64], sizes = [8, 32], strides = [1, 1]} : vector<8x96xf32> to vector<8x32xf32>
    %251 = arith.mulf %249, %209 : vector<8x32xf32>
    %252 = arith.mulf %248, %247 : vector<8x32xf32>
    %253 = arith.addf %251, %252 : vector<8x32xf32>
    %254 = math.tanh %253 : vector<8x32xf32>
    %255 = arith.mulf %250, %254 : vector<8x32xf32>
    %256 = arith.truncf %255 : vector<8x32xf32> to vector<8x32xbf16>
    %cst_58 = arith.constant dense<0.000000e+00> : vector<8x128xf32>
    %257 = tpu.matmul %256, %12, %cst_58 {dimension_numbers = #tpu.dot_dimension_numbers<[1], [0], [0], [1], [0, 0, 1, 1], [], []>} : vector<8x32xbf16>, vector<32x128xbf16>, vector<8x128xf32> -> vector<8x128xf32>
    %258 = vector.broadcast %13 : vector<1x128xf32> to vector<8x128xf32>
    %259 = arith.addf %257, %258 : vector<8x128xf32>
    %260 = arith.truncf %234 : vector<8x32xf32> to vector<8x32xbf16>
    %cst_59 = arith.constant dense<0.000000e+00> : vector<8x128xf32>
    %261 = tpu.matmul %260, %11, %cst_59 {dimension_numbers = #tpu.dot_dimension_numbers<[1], [0], [0], [1], [0, 0, 1, 1], [], []>} : vector<8x32xbf16>, vector<32x128xbf16>, vector<8x128xf32> -> vector<8x128xf32>
    %262 = arith.addf %259, %261 : vector<8x128xf32>
    %263 = vector.extract_strided_slice %262 {offsets = [0, 0], sizes = [8, 96], strides = [1, 1]} : vector<8x128xf32> to vector<8x96xf32>
    %264 = arith.negf %263 : vector<8x96xf32>
    %265 = math.exp %264 : vector<8x96xf32>
    %cst_60 = arith.constant 1.000000e+00 : f32
    %266 = vector.broadcast %cst_60 : f32 to vector<8x96xf32>
    %267 = arith.addf %266, %265 : vector<8x96xf32>
    %268 = arith.divf %266, %267 : vector<8x96xf32>
    %269 = vector.extract_strided_slice %262 {offsets = [0, 96], sizes = [8, 32], strides = [1, 1]} : vector<8x128xf32> to vector<8x32xf32>
    %270 = math.tanh %269 : vector<8x32xf32>
    %271 = vector.extract_strided_slice %268 {offsets = [0, 0], sizes = [8, 32], strides = [1, 1]} : vector<8x96xf32> to vector<8x32xf32>
    %272 = vector.extract_strided_slice %268 {offsets = [0, 32], sizes = [8, 32], strides = [1, 1]} : vector<8x96xf32> to vector<8x32xf32>
    %273 = vector.extract_strided_slice %268 {offsets = [0, 64], sizes = [8, 32], strides = [1, 1]} : vector<8x96xf32> to vector<8x32xf32>
    %274 = arith.mulf %272, %232 : vector<8x32xf32>
    %275 = arith.mulf %271, %270 : vector<8x32xf32>
    %276 = arith.addf %274, %275 : vector<8x32xf32>
    %277 = math.tanh %276 : vector<8x32xf32>
    %278 = arith.mulf %273, %277 : vector<8x32xf32>
    %c0_61 = arith.constant 0 : index
    %c6 = arith.constant 6 : index
    %c0_62 = arith.constant 0 : index
    %279 = vector.load %arg11[%c0_61, %c6, %c0_62] : memref<8x8x128xf32, #tpu.memory_space<vmem>>, vector<8x1x128xf32>
    %280 = vector.shape_cast %279 : vector<8x1x128xf32> to vector<8x128xf32>
    %281 = arith.truncf %255 : vector<8x32xf32> to vector<8x32xbf16>
    %cst_63 = arith.constant dense<0.000000e+00> : vector<8x128xf32>
    %282 = tpu.matmul %281, %10, %cst_63 {dimension_numbers = #tpu.dot_dimension_numbers<[1], [0], [0], [1], [0, 0, 1, 1], [], []>} : vector<8x32xbf16>, vector<32x128xbf16>, vector<8x128xf32> -> vector<8x128xf32>
    %283 = arith.addf %280, %282 : vector<8x128xf32>
    %284 = vector.extract_strided_slice %283 {offsets = [0, 0], sizes = [8, 96], strides = [1, 1]} : vector<8x128xf32> to vector<8x96xf32>
    %285 = arith.negf %284 : vector<8x96xf32>
    %286 = math.exp %285 : vector<8x96xf32>
    %cst_64 = arith.constant 1.000000e+00 : f32
    %287 = vector.broadcast %cst_64 : f32 to vector<8x96xf32>
    %288 = arith.addf %287, %286 : vector<8x96xf32>
    %289 = arith.divf %287, %288 : vector<8x96xf32>
    %290 = vector.extract_strided_slice %283 {offsets = [0, 96], sizes = [8, 32], strides = [1, 1]} : vector<8x128xf32> to vector<8x32xf32>
    %291 = math.tanh %290 : vector<8x32xf32>
    %292 = vector.extract_strided_slice %289 {offsets = [0, 0], sizes = [8, 32], strides = [1, 1]} : vector<8x96xf32> to vector<8x32xf32>
    %293 = vector.extract_strided_slice %289 {offsets = [0, 32], sizes = [8, 32], strides = [1, 1]} : vector<8x96xf32> to vector<8x32xf32>
    %294 = vector.extract_strided_slice %289 {offsets = [0, 64], sizes = [8, 32], strides = [1, 1]} : vector<8x96xf32> to vector<8x32xf32>
    %295 = arith.mulf %293, %253 : vector<8x32xf32>
    %296 = arith.mulf %292, %291 : vector<8x32xf32>
    %297 = arith.addf %295, %296 : vector<8x32xf32>
    %298 = math.tanh %297 : vector<8x32xf32>
    %299 = arith.mulf %294, %298 : vector<8x32xf32>
    %300 = arith.truncf %299 : vector<8x32xf32> to vector<8x32xbf16>
    %cst_65 = arith.constant dense<0.000000e+00> : vector<8x128xf32>
    %301 = tpu.matmul %300, %12, %cst_65 {dimension_numbers = #tpu.dot_dimension_numbers<[1], [0], [0], [1], [0, 0, 1, 1], [], []>} : vector<8x32xbf16>, vector<32x128xbf16>, vector<8x128xf32> -> vector<8x128xf32>
    %302 = vector.broadcast %13 : vector<1x128xf32> to vector<8x128xf32>
    %303 = arith.addf %301, %302 : vector<8x128xf32>
    %304 = arith.truncf %278 : vector<8x32xf32> to vector<8x32xbf16>
    %cst_66 = arith.constant dense<0.000000e+00> : vector<8x128xf32>
    %305 = tpu.matmul %304, %11, %cst_66 {dimension_numbers = #tpu.dot_dimension_numbers<[1], [0], [0], [1], [0, 0, 1, 1], [], []>} : vector<8x32xbf16>, vector<32x128xbf16>, vector<8x128xf32> -> vector<8x128xf32>
    %306 = arith.addf %303, %305 : vector<8x128xf32>
    %307 = vector.extract_strided_slice %306 {offsets = [0, 0], sizes = [8, 96], strides = [1, 1]} : vector<8x128xf32> to vector<8x96xf32>
    %308 = arith.negf %307 : vector<8x96xf32>
    %309 = math.exp %308 : vector<8x96xf32>
    %cst_67 = arith.constant 1.000000e+00 : f32
    %310 = vector.broadcast %cst_67 : f32 to vector<8x96xf32>
    %311 = arith.addf %310, %309 : vector<8x96xf32>
    %312 = arith.divf %310, %311 : vector<8x96xf32>
    %313 = vector.extract_strided_slice %306 {offsets = [0, 96], sizes = [8, 32], strides = [1, 1]} : vector<8x128xf32> to vector<8x32xf32>
    %314 = math.tanh %313 : vector<8x32xf32>
    %315 = vector.extract_strided_slice %312 {offsets = [0, 0], sizes = [8, 32], strides = [1, 1]} : vector<8x96xf32> to vector<8x32xf32>
    %316 = vector.extract_strided_slice %312 {offsets = [0, 32], sizes = [8, 32], strides = [1, 1]} : vector<8x96xf32> to vector<8x32xf32>
    %317 = vector.extract_strided_slice %312 {offsets = [0, 64], sizes = [8, 32], strides = [1, 1]} : vector<8x96xf32> to vector<8x32xf32>
    %318 = arith.mulf %316, %276 : vector<8x32xf32>
    %319 = arith.mulf %315, %314 : vector<8x32xf32>
    %320 = arith.addf %318, %319 : vector<8x32xf32>
    %321 = math.tanh %320 : vector<8x32xf32>
    %322 = arith.mulf %317, %321 : vector<8x32xf32>
    %c0_68 = arith.constant 0 : index
    %c7 = arith.constant 7 : index
    %c0_69 = arith.constant 0 : index
    %323 = vector.load %arg11[%c0_68, %c7, %c0_69] : memref<8x8x128xf32, #tpu.memory_space<vmem>>, vector<8x1x128xf32>
    %324 = vector.shape_cast %323 : vector<8x1x128xf32> to vector<8x128xf32>
    %325 = arith.truncf %299 : vector<8x32xf32> to vector<8x32xbf16>
    %cst_70 = arith.constant dense<0.000000e+00> : vector<8x128xf32>
    %326 = tpu.matmul %325, %10, %cst_70 {dimension_numbers = #tpu.dot_dimension_numbers<[1], [0], [0], [1], [0, 0, 1, 1], [], []>} : vector<8x32xbf16>, vector<32x128xbf16>, vector<8x128xf32> -> vector<8x128xf32>
    %327 = arith.addf %324, %326 : vector<8x128xf32>
    %328 = vector.extract_strided_slice %327 {offsets = [0, 0], sizes = [8, 96], strides = [1, 1]} : vector<8x128xf32> to vector<8x96xf32>
    %329 = arith.negf %328 : vector<8x96xf32>
    %330 = math.exp %329 : vector<8x96xf32>
    %cst_71 = arith.constant 1.000000e+00 : f32
    %331 = vector.broadcast %cst_71 : f32 to vector<8x96xf32>
    %332 = arith.addf %331, %330 : vector<8x96xf32>
    %333 = arith.divf %331, %332 : vector<8x96xf32>
    %334 = vector.extract_strided_slice %327 {offsets = [0, 96], sizes = [8, 32], strides = [1, 1]} : vector<8x128xf32> to vector<8x32xf32>
    %335 = math.tanh %334 : vector<8x32xf32>
    %336 = vector.extract_strided_slice %333 {offsets = [0, 0], sizes = [8, 32], strides = [1, 1]} : vector<8x96xf32> to vector<8x32xf32>
    %337 = vector.extract_strided_slice %333 {offsets = [0, 32], sizes = [8, 32], strides = [1, 1]} : vector<8x96xf32> to vector<8x32xf32>
    %338 = vector.extract_strided_slice %333 {offsets = [0, 64], sizes = [8, 32], strides = [1, 1]} : vector<8x96xf32> to vector<8x32xf32>
    %339 = arith.mulf %337, %297 : vector<8x32xf32>
    %340 = arith.mulf %336, %335 : vector<8x32xf32>
    %341 = arith.addf %339, %340 : vector<8x32xf32>
    %342 = math.tanh %341 : vector<8x32xf32>
    %343 = arith.mulf %338, %342 : vector<8x32xf32>
    %344 = arith.truncf %343 : vector<8x32xf32> to vector<8x32xbf16>
    %cst_72 = arith.constant dense<0.000000e+00> : vector<8x128xf32>
    %345 = tpu.matmul %344, %12, %cst_72 {dimension_numbers = #tpu.dot_dimension_numbers<[1], [0], [0], [1], [0, 0, 1, 1], [], []>} : vector<8x32xbf16>, vector<32x128xbf16>, vector<8x128xf32> -> vector<8x128xf32>
    %346 = vector.broadcast %13 : vector<1x128xf32> to vector<8x128xf32>
    %347 = arith.addf %345, %346 : vector<8x128xf32>
    %348 = arith.truncf %322 : vector<8x32xf32> to vector<8x32xbf16>
    %cst_73 = arith.constant dense<0.000000e+00> : vector<8x128xf32>
    %349 = tpu.matmul %348, %11, %cst_73 {dimension_numbers = #tpu.dot_dimension_numbers<[1], [0], [0], [1], [0, 0, 1, 1], [], []>} : vector<8x32xbf16>, vector<32x128xbf16>, vector<8x128xf32> -> vector<8x128xf32>
    %350 = arith.addf %347, %349 : vector<8x128xf32>
    %351 = vector.extract_strided_slice %350 {offsets = [0, 0], sizes = [8, 96], strides = [1, 1]} : vector<8x128xf32> to vector<8x96xf32>
    %352 = arith.negf %351 : vector<8x96xf32>
    %353 = math.exp %352 : vector<8x96xf32>
    %cst_74 = arith.constant 1.000000e+00 : f32
    %354 = vector.broadcast %cst_74 : f32 to vector<8x96xf32>
    %355 = arith.addf %354, %353 : vector<8x96xf32>
    %356 = arith.divf %354, %355 : vector<8x96xf32>
    %357 = vector.extract_strided_slice %350 {offsets = [0, 96], sizes = [8, 32], strides = [1, 1]} : vector<8x128xf32> to vector<8x32xf32>
    %358 = math.tanh %357 : vector<8x32xf32>
    %359 = vector.extract_strided_slice %356 {offsets = [0, 0], sizes = [8, 32], strides = [1, 1]} : vector<8x96xf32> to vector<8x32xf32>
    %360 = vector.extract_strided_slice %356 {offsets = [0, 32], sizes = [8, 32], strides = [1, 1]} : vector<8x96xf32> to vector<8x32xf32>
    %361 = vector.extract_strided_slice %356 {offsets = [0, 64], sizes = [8, 32], strides = [1, 1]} : vector<8x96xf32> to vector<8x32xf32>
    %362 = arith.mulf %360, %320 : vector<8x32xf32>
    %363 = arith.mulf %359, %358 : vector<8x32xf32>
    %364 = arith.addf %362, %363 : vector<8x32xf32>
    %365 = math.tanh %364 : vector<8x32xf32>
    %366 = arith.mulf %361, %365 : vector<8x32xf32>
    %367 = vector.shape_cast %58 : vector<8x32xf32> to vector<8x1x32xf32>
    %368 = vector.shape_cast %102 : vector<8x32xf32> to vector<8x1x32xf32>
    %369 = vector.shape_cast %146 : vector<8x32xf32> to vector<8x1x32xf32>
    %370 = vector.shape_cast %190 : vector<8x32xf32> to vector<8x1x32xf32>
    %371 = vector.shape_cast %234 : vector<8x32xf32> to vector<8x1x32xf32>
    %372 = vector.shape_cast %278 : vector<8x32xf32> to vector<8x1x32xf32>
    %373 = vector.shape_cast %322 : vector<8x32xf32> to vector<8x1x32xf32>
    %374 = vector.shape_cast %366 : vector<8x32xf32> to vector<8x1x32xf32>
    %375 = tpu.concatenate %367, %368, %369, %370, %371, %372, %373, %374 in 1 : vector<8x1x32xf32>, vector<8x1x32xf32>, vector<8x1x32xf32>, vector<8x1x32xf32>, vector<8x1x32xf32>, vector<8x1x32xf32>, vector<8x1x32xf32>, vector<8x1x32xf32> -> vector<8x8x32xf32>
    %c0_75 = arith.constant 0 : index
    %c0_76 = arith.constant 0 : index
    %c0_77 = arith.constant 0 : index
    %376 = vector.load %arg8[%c0_75, %c0_76, %c0_77] : memref<8x8x32xf32, #tpu.memory_space<vmem>>, vector<8x8x32xf32>
    tpu.vector_store %arg8[%c0_75, %c0_76, %c0_77], %375 {strides = array<i32>} : memref<8x8x32xf32, #tpu.memory_space<vmem>>, vector<8x8x32xf32>,
    %377 = vector.shape_cast %343 : vector<8x32xf32> to vector<1x8x32xf32>
    %378 = vector.shape_cast %366 : vector<8x32xf32> to vector<1x8x32xf32>
    %379 = tpu.concatenate %377, %378 in 0 : vector<1x8x32xf32>, vector<1x8x32xf32> -> vector<2x8x32xf32>
    %c0_78 = arith.constant 0 : index
    %c0_79 = arith.constant 0 : index
    %c0_80 = arith.constant 0 : index
    %380 = vector.load %arg9[%c0_78, %c0_79, %c0_80] : memref<2x8x32xf32, #tpu.memory_space<vmem>>, vector<2x8x32xf32>
    tpu.vector_store %arg9[%c0_78, %c0_79, %c0_80], %379 {strides = array<i32>} : memref<2x8x32xf32, #tpu.memory_space<vmem>>, vector<2x8x32xf32>,
    %381 = vector.shape_cast %341 : vector<8x32xf32> to vector<1x8x32xf32>
    %382 = vector.shape_cast %364 : vector<8x32xf32> to vector<1x8x32xf32>
    %383 = tpu.concatenate %381, %382 in 0 : vector<1x8x32xf32>, vector<1x8x32xf32> -> vector<2x8x32xf32>
    %c0_81 = arith.constant 0 : index
    %c0_82 = arith.constant 0 : index
    %c0_83 = arith.constant 0 : index
    %384 = vector.load %arg10[%c0_81, %c0_82, %c0_83] : memref<2x8x32xf32, #tpu.memory_space<vmem>>, vector<2x8x32xf32>
    tpu.vector_store %arg10[%c0_81, %c0_82, %c0_83], %383 {strides = array<i32>} : memref<2x8x32xf32, #tpu.memory_space<vmem>>, vector<2x8x32xf32>,
    return
  }
  func.func @transform_0(%arg0: i32) -> (i32, i32, i32) {
    %c0_i32 = arith.constant 0 : i32
    %c0_i32_0 = arith.constant 0 : i32
    %c0_i32_1 = arith.constant 0 : i32
    return %arg0, %c0_i32, %c0_i32_0 : i32, i32, i32
  }
  func.func @transform_1(%arg0: i32) -> (i32, i32) {
    %c0_i32 = arith.constant 0 : i32
    %c0_i32_0 = arith.constant 0 : i32
    %c0_i32_1 = arith.constant 0 : i32
    return %c0_i32, %c0_i32_0 : i32, i32
  }
  func.func @transform_2(%arg0: i32) -> (i32, i32) {
    %c0_i32 = arith.constant 0 : i32
    %c0_i32_0 = arith.constant 0 : i32
    %c0_i32_1 = arith.constant 0 : i32
    return %c0_i32, %c0_i32_0 : i32, i32
  }
  func.func @transform_3(%arg0: i32) -> (i32, i32) {
    %c0_i32 = arith.constant 0 : i32
    %c0_i32_0 = arith.constant 0 : i32
    %c0_i32_1 = arith.constant 0 : i32
    return %c0_i32, %c0_i32_0 : i32, i32
  }
  func.func @transform_4(%arg0: i32) -> (i32, i32) {
    %c0_i32 = arith.constant 0 : i32
    %c0_i32_0 = arith.constant 0 : i32
    %c0_i32_1 = arith.constant 0 : i32
    return %c0_i32, %c0_i32_0 : i32, i32
  }
  func.func @transform_5(%arg0: i32) -> (i32, i32) {
    %c0_i32 = arith.constant 0 : i32
    %c0_i32_0 = arith.constant 0 : i32
    %c0_i32_1 = arith.constant 0 : i32
    return %c0_i32, %c0_i32_0 : i32, i32
  }
  func.func @transform_6(%arg0: i32) -> (i32, i32) {
    %c0_i32 = arith.constant 0 : i32
    %c0_i32_0 = arith.constant 0 : i32
    %c0_i32_1 = arith.constant 0 : i32
    return %c0_i32, %c0_i32_0 : i32, i32
  }
  func.func @transform_7(%arg0: i32) -> (i32, i32, i32) {
    %c0_i32 = arith.constant 0 : i32
    %c0_i32_0 = arith.constant 0 : i32
    %c0_i32_1 = arith.constant 0 : i32
    return %arg0, %c0_i32, %c0_i32_0 : i32, i32, i32
  }
  func.func @transform_8(%arg0: i32) -> (i32, i32, i32) {
    %c0_i32 = arith.constant 0 : i32
    %c0_i32_0 = arith.constant 0 : i32
    %c0_i32_1 = arith.constant 0 : i32
    return %c0_i32, %arg0, %c0_i32_0 : i32, i32, i32
  }
  func.func @transform_9(%arg0: i32) -> (i32, i32, i32) {
    %c0_i32 = arith.constant 0 : i32
    %c0_i32_0 = arith.constant 0 : i32
    %c0_i32_1 = arith.constant 0 : i32
    return %c0_i32, %arg0, %c0_i32_0 : i32, i32, i32
  }
}

</mosaic_0001>

<bundles_post_ra>
// kernel: encoder_forward.1
= control target key start
LH: loop header
LB: loop body
LE: loop exit
PB: predicated region body
PF: predicated region fallthrough
CT: control target
= control target key end

     0   :  { %vm84_vm0 = vcmask 1041408   ;;  %vm71_vm1 = vcmask 31744   ;;  %v4952_v13 = vmov 0   ;;  %s4954_s17 = smov 64   ;;  %s4955_s21 = smov 96   ;;  %s7114_s1 = inlined_call_operand.vmem [shape: bf16[4,128], index: 1, kind: input, shape index: {}]   ;;  %s7115_s0 = inlined_call_operand.vmem [shape: f32[8,8,4], index: 0, kind: input, shape index: {}]   ;;  %s7116_s2 = inlined_call_operand.vmem [shape: bf16[32,128], index: 2, kind: input, shape index: {}]   ;;  %s7117_s3 = inlined_call_operand.vmem [shape: f32[1,128], index: 3, kind: input, shape index: {}]   ;;  %s7118_s4 = inlined_call_operand.vmem [shape: bf16[32,128], index: 4, kind: input, shape index: {}]   ;;  %s7119_s5 = inlined_call_operand.vmem [shape: bf16[32,128], index: 5, kind: input, shape index: {}]   ;;  %s7120_s6 = inlined_call_operand.vmem [shape: f32[1,128], index: 6, kind: input, shape index: {}]   ;;  %s7121_s8 = inlined_call_operand.vmem [shape: f32[2,8,32], index: 8, kind: output, shape index: {1}]   ;;  %s7122_s7 = inlined_call_operand.vmem [shape: f32[8,8,32], index: 7, kind: output, shape index: {0}]   ;;  %s7123_s9 = inlined_call_operand.vmem [shape: f32[2,8,32], index: 9, kind: output, shape index: {2}]  }
   0x1   :  { %v30_v0 = vld [vmem:[%s7114_s1] sm:$0x3]  ;;  %v33_v2 = vld [vmem:[%s7115_s0 + $0x8] sm:$0xff]  ;;  %v34_v11 = vld [vmem:[%s7115_s0 + $0x10] sm:$0xff] }
   0x2   :  { %v32_v1 = vld [vmem:[%s7115_s0] sm:$0xff]  ;;  %v86_v3 = vsel %vm84_vm0, %v30_v0, 0  ;;  %v41_v5 = vpack.c.bf16 %v33_v2, %v33_v2  ;;  %v5019_v6 = vld [vmem:[%s7116_s2 + $0x8] sm:$0xff]  ;;  %v35_v12 = vld [vmem:[%s7115_s0 + $0x18] sm:$0xff]  ;;  %v42_v14 = vpack.c.bf16 %v34_v11, %v34_v11 }
   0x3   :  { %v40_v4 = vpack.c.bf16 %v32_v1, %v32_v1  ;;  %95 = vmatpush.bf16.msra.mxu0 %v86_v3  ;;  %168 = vmatpush.bf16.msra.mxu1 %v5019_v6  ;;  %v5025_v9 = vld [vmem:[%s7116_s2] sm:$0xff]  ;;  %v43_v15 = vpack.c.bf16 %v35_v12, %v35_v12  ;;  %v37_v20 = vld [vmem:[%s7115_s0 + $0x28] sm:$0xff]  ;;  %v38_v26 = vld [vmem:[%s7115_s0 + $0x30] sm:$0xff] }
   0x4   :  { %v60_v8 = vunpack.c.l.b16 %v41_v5  ;;  %v61_v16 = vunpack.c.l.b16 %v42_v14  ;;  %v36_v19 = vld [vmem:[%s7115_s0 + $0x20] sm:$0xff]  ;;  %v45_v22 = vpack.c.bf16 %v37_v20, %v37_v20  ;;  %v39_v27 = vld [vmem:[%s7115_s0 + $0x38] sm:$0xff]  ;;  %v46_v28 = vpack.c.bf16 %v38_v26, %v38_v26  ;;  %s4953_s0 = smov 32  }
   0x5   :  { %v59_v7 = vunpack.c.l.b16 %v40_v4  ;;  %v62_v17 = vunpack.c.l.b16 %v43_v15  ;;  %v44_v21 = vpack.c.bf16 %v36_v19, %v36_v19  ;;  %v47_v29 = vpack.c.bf16 %v39_v27, %v39_v27  ;;  %v4361_v33 = vld [vmem:[%s7117_s3] ss:$0 sm:$0xff] }
   0x6   :  { %v64_v24 = vunpack.c.l.b16 %v45_v22  ;;  %v65_v30 = vunpack.c.l.b16 %v46_v28 }
   0x7   :  { %2019 = vmatpush.bf16.msrb.mxu0 %v5019_v6  ;;  %v67_v10 = vpack.c.b16 %v60_v8, %v59_v7  ;;  %169 = vmatpush.bf16.msra.mxu1 %v5025_v9  ;;  %v68_v18 = vpack.c.b16 %v62_v17, %v61_v16  ;;  %v63_v23 = vunpack.c.l.b16 %v44_v21  ;;  %v66_v31 = vunpack.c.l.b16 %v47_v29 }
   0x9   :  { %4222 = vmatmul.msk.bf16.vlgmr.msra.gmra.mxu0 %vm71_vm1, %v67_v10  ;;  %v69_v25 = vpack.c.b16 %v64_v24, %v63_v23  ;;  %v70_v32 = vpack.c.b16 %v66_v31, %v65_v30 }
   0xa   :  { %170 = vmatmul.bf16.vlgmr.msra.gmra.mxu1 %v4952_v13 }
   0xb   :  { %651 = vmatpush.bf16.msrb.mxu1 %v5019_v6  ;;  %2020 = vmatpush.bf16.msrb.mxu0 %v5025_v9 }
   0xf   :  { %652 = vmatpush.bf16.msrb.mxu1 %v5025_v9 }
  0x13   :  { %1107 = vmatpush.bf16.msra.mxu1 %v5019_v6 }
  0x17   :  { %1108 = vmatpush.bf16.msra.mxu1 %v5025_v9 }
  0x19   :  { %4223 = vmatmul.msk.bf16.gmra.mxu0 %vm71_vm1, %v68_v18 }
  0x29   :  { %4224 = vmatmul.msk.bf16.gmra.mxu0 %vm71_vm1, %v69_v25 }
  0x39   :  { %4225 = vmatmul.msk.bf16.gmra.mxu0 %vm71_vm1, %v70_v32 }
  0x86   :  { %v97_v34 = vpop.f32.mrf.mxu0 }
  0x87   :  { %v98_v35 = vadd.f32 %v4361_v33, %v97_v34  ;;  %v5060_v36 = vpop.f32.mrf.mxu1 }
  0x88   :  { %v176_v42 = vrot.slane %v5060_v36, 1  ;;  %v177_v48 = vrot.slane %v5060_v36, 2  ;;  %v178_v54 = vrot.slane %v5060_v36, 3  ;;  %v179_v62 = vrot.slane %v5060_v36, 4 }
  0x89   :  { %117 = vst [vmem:[#allocation2] sm:$0xff] %v98_v35  ;;  %v180_v4 = vrot.slane %v5060_v36, 5  ;;  %v181_v12 = vrot.slane %v5060_v36, 6  ;;  %v182_v17 = vrot.slane %v5060_v36, 7 }
  0x8e   :  { %v99_v37 = vpop.f32.mrf.mxu0 }
  0x8f   :  { %v100_v38 = vadd.f32 %v4361_v33, %v99_v37  ;;  %v173_v41 = vpop.f32.mrf.mxu1 }
  0x90   :  { %v138_v39 = vld [vmem:[#allocation2] sm:$0x1] }
  0x91   :  { %118 = vst [vmem:[#allocation2 + $0x8] sm:$0xff] %v100_v38  ;;  %v5063_v40 = vadd.f32 %v5060_v36, %v138_v39 }
  0x93   :  { %4363 = vtanh.f32 %v5063_v40  ;;  %v4234_v22 = vmul.f32 -1.442695, %v5063_v40 }
  0x96   :  { %v102_v43 = vpop.f32.mrf.mxu0 }
  0x97   :  { %v103_v44 = vadd.f32 %v4361_v33, %v102_v43 }
  0x98   :  { %v139_v45 = vld [vmem:[#allocation2 + $0x8] sm:$0x1] }
  0x99   :  { %v4364_v46 = vpop.eup %4363  ;;  %119 = vst [vmem:[#allocation2 + $0x10] sm:$0xff] %v103_v44  ;;  %v192_v47 = vadd.f32 %v176_v42, %v139_v45 }
  0x9a   :  { %375 = vrot.lane.b32.xlu1 %v4364_v46, %s4953_s0 }
  0x9b   :  { %4365 = vtanh.f32 %v192_v47  ;;  %v4235_v23 = vmul.f32 -1.442695, %v192_v47 }
  0x9e   :  { %v104_v49 = vpop.f32.mrf.mxu0 }
  0x9f   :  { %v105_v50 = vadd.f32 %v4361_v33, %v104_v49 }
  0xa0   :  { %v140_v51 = vld [vmem:[#allocation2 + $0x10] sm:$0x1] }
  0xa1   :  { %v4366_v52 = vpop.eup %4365  ;;  %120 = vst [vmem:[#allocation2 + $0x18] sm:$0xff] %v105_v50  ;;  %v193_v53 = vadd.f32 %v177_v48, %v140_v51 }
  0xa2   :  { %377 = vrot.lane.b32.xlu0 %v4366_v52, %s4953_s0 }
  0xa3   :  { %4367 = vtanh.f32 %v193_v53  ;;  %v4236_v26 = vmul.f32 -1.442695, %v193_v53 }
  0xa6   :  { %v107_v55 = vpop.f32.mrf.mxu0 }
  0xa7   :  { %v108_v56 = vadd.f32 %v4361_v33, %v107_v55 }
  0xa8   :  { %v141_v57 = vld [vmem:[#allocation2 + $0x18] sm:$0x1] }
  0xa9   :  { %v4368_v58 = vpop.eup %4367  ;;  %121 = vst [vmem:[#allocation2 + $0x20] sm:$0xff] %v108_v56  ;;  %v194_v59 = vadd.f32 %v178_v54, %v141_v57 }
  0xaa   :  { %379 = vrot.lane.b32.xlu0 %v4368_v58, %s4953_s0 }
  0xab   :  { %4369 = vtanh.f32 %v194_v59  ;;  %v4237_v31 = vmul.f32 -1.442695, %v194_v59 }
  0xae   :  { %v109_v60 = vpop.f32.mrf.mxu0 }
  0xaf   :  { %v110_v61 = vadd.f32 %v4361_v33, %v109_v60 }
  0xb0   :  { %v142_v63 = vld [vmem:[#allocation2 + $0x20] sm:$0x1] }
  0xb1   :  { %v4370_v0 = vpop.eup %4369  ;;  %122 = vst [vmem:[#allocation2 + $0x28] sm:$0xff] %v110_v61  ;;  %v195_v1 = vadd.f32 %v179_v62, %v142_v63 }
  0xb2   :  { %381 = vrot.lane.b32.xlu1 %v4370_v0, %s4953_s0 }
  0xb3   :  { %4371 = vtanh.f32 %v195_v1  ;;  %v4238_v32 = vmul.f32 -1.442695, %v195_v1 }
  0xb6   :  { %v112_v2 = vpop.f32.mrf.mxu0 }
  0xb7   :  { %v113_v3 = vadd.f32 %v4361_v33, %v112_v2 }
  0xb8   :  { %v143_v5 = vld [vmem:[#allocation2 + $0x28] sm:$0x1] }
  0xb9   :  { %v4372_v7 = vpop.eup %4371  ;;  %123 = vst [vmem:[#allocation2 + $0x30] sm:$0xff] %v113_v3  ;;  %v196_v8 = vadd.f32 %v180_v4, %v143_v5 }
  0xba   :  { %383 = vrot.lane.b32.xlu2 %v4372_v7, %s4953_s0 }
  0xbb   :  { %4373 = vtanh.f32 %v196_v8  ;;  %v4239_v27 = vmul.f32 -1.442695, %v196_v8 }
  0xbe   :  { %v114_v10 = vpop.f32.mrf.mxu0 }
  0xbf   :  { %v115_v11 = vadd.f32 %v4361_v33, %v114_v10 }
  0xc0   :  { %v144_v14 = vld [vmem:[#allocation2 + $0x30] sm:$0x1] }
  0xc1   :  { %v4374_v15 = vpop.eup %4373  ;;  %124 = vst [vmem:[#allocation2 + $0x38] sm:$0xff] %v115_v11  ;;  %v5077_v16 = vadd.f32 %v181_v12, %v144_v14 }
  0xc2   :  { %385 = vrot.lane.b32.xlu2 %v4374_v15, %s4953_s0 }
  0xc3   :  { %4375 = vtanh.f32 %v5077_v16  ;;  %v4240_v2 = vmul.f32 -1.442695, %v5077_v16 }
  0xc8   :  { %v145_v18 = vld [vmem:[#allocation2 + $0x38] sm:$0x1] }
  0xc9   :  { %v4376_v19 = vpop.eup %4375  ;;  %v5082_v20 = vadd.f32 %v182_v17, %v145_v18 }
  0xca   :  { %387 = vrot.lane.b32.xlu0 %v4376_v19, %s4953_s0 }
  0xcb   :  { %4377 = vtanh.f32 %v5082_v20 }
  0xcc   :  { %4379 = vpow2.f32 %v4234_v22 }
  0xcd   :  { %4381 = vpow2.f32 %v4235_v23 }
  0xd1   :  { %v4378_v21 = vpop.eup %4377 }
  0xd2   :  { %389 = vrot.lane.b32.xlu1 %v4378_v21, %s4953_s0  ;;  %v4380_v24 = vpop.eup %4379 }
  0xd3   :  { %v223_v25 = vadd.f32 1.0, %v4380_v24  ;;  %v4382_v28 = vpop.eup %4381  ;;  %v4241_v24 = vmul.f32 -1.442695, %v5082_v20 }
  0xd4   :  { %v224_v29 = vadd.f32 1.0, %v4382_v28 }
  0xd5   :  { %4383 = vrcp.f32 %v223_v25  ;;  %v242_v50 = vand.u32 2147483648, %v223_v25  ;;  %vm236_vm3 = vweird.f32 %v223_v25  ;;  %v240_v51 = vand.u32 2147483647, %v223_v25 }
  0xd6   :  { %4385 = vpow2.f32 %v4236_v26  ;;  %v257_v1 = vand.u32 2147483648, %v224_v29  ;;  %vm251_vm7 = vweird.f32 %v224_v29  ;;  %v255_v3 = vand.u32 2147483647, %v224_v29 }
  0xd7   :  { %4387 = vpow2.f32 %v4239_v27  ;;  %v243_v56 = vor.u32 1.1754944e-38, %v242_v50  ;;  %vm241_vm5 = vcmp.eq.f32.partialorder %v240_v51, 8.507059e+37 }
  0xd8   :  { %4389 = vrcp.f32 %v224_v29  ;;  %v258_v11 = vor.u32 1.1754944e-38, %v257_v1  ;;  %vm256_vm9 = vcmp.eq.f32.partialorder %v255_v3, 8.507059e+37 }
  0xd9   :  { %4391 = vpow2.f32 %v4237_v31 }
  0xda   :  { %4393 = vpow2.f32 %v4238_v32 }
  0xdb   :  { %v4384_v30 = vpop.eup %4383 }
  0xdc   :  { %v4386_v33 = vpop.eup %4385  ;;  %v232_v35 = vmul.f32 %v4384_v30, %v223_v25  ;;  %vm237_vm2 = vweird.f32 %v4384_v30 }
  0xdd   :  { %v4388_v34 = vpop.eup %4387  ;;  %v5088_v36 = vadd.f32 1.0, %v4386_v33  ;;  %vm238_vm4 = vmor %vm236_vm3, %vm237_vm2 }
  0xde   :  { %v5090_v37 = vadd.f32 1.0, %v4388_v34  ;;  %v233_v38 = vsub.f32 1.0, %v232_v35  ;;  %v4390_v39 = vpop.eup %4389 }
  0xdf   :  { %4395 = vrcp.f32 %v5088_v36  ;;  %v4392_v40 = vpop.eup %4391  ;;  %v247_v43 = vmul.f32 %v4390_v39, %v224_v29  ;;  %vm252_vm6 = vweird.f32 %v4390_v39  ;;  %vm266_vm12 = vweird.f32 %v5088_v36 }
  0xe0   :  { %4397 = vrcp.f32 %v5090_v37  ;;  %v4394_v41 = vpop.eup %4393  ;;  %v234_v42 = vmul.f32 %v4384_v30, %v233_v38  ;;  %v5094_v44 = vadd.f32 1.0, %v4392_v40  ;;  %vm253_vm8 = vmor %vm251_vm7, %vm252_vm6  ;;  %v317_v22 = vand.u32 2147483648, %v5090_v37 }
  0xe1   :  { %v5096_v45 = vadd.f32 1.0, %v4394_v41  ;;  %v248_v48 = vsub.f32 1.0, %v247_v43  ;;  %v272_v23 = vand.u32 2147483648, %v5088_v36  ;;  %vm311_vm13 = vweird.f32 %v5090_v37 }
  0xe2   :  { %v235_v47 = vadd.f32 %v4384_v30, %v234_v42  ;;  %4399 = vrcp.f32 %v5094_v44  ;;  %v315_v25 = vand.u32 2147483647, %v5090_v37  ;;  %v270_v27 = vand.u32 2147483647, %v5088_v36 }
  0xe3   :  { %4401 = vrcp.f32 %v5096_v45  ;;  %v249_v54 = vmul.f32 %v4390_v39, %v248_v48  ;;  %v318_v32 = vor.u32 1.1754944e-38, %v317_v22  ;;  %v273_v33 = vor.u32 1.1754944e-38, %v272_v23 }
  0xe4   :  { %v239_v53 = vsel %vm238_vm4, %v4384_v30, %v235_v47  ;;  %4403 = vpow2.f32 %v4240_v2  ;;  %vm316_vm1 = vcmp.eq.f32.partialorder %v315_v25, 8.507059e+37  ;;  %vm271_vm2 = vcmp.eq.f32.partialorder %v270_v27, 8.507059e+37 }
  0xe5   :  { %v5098_v46 = vpop.eup %4395  ;;  %v5108_v58 = vsel %vm241_vm5, %v243_v56, %v239_v53  ;;  %v250_v62 = vadd.f32 %v4390_v39, %v249_v54  ;;  %4405 = vpow2.f32 %v4241_v24  ;;  %v302_v43 = vand.u32 2147483648, %v5096_v45 }
  0xe6   :  { %v5100_v49 = vpop.eup %4397  ;;  %v262_v52 = vmul.f32 %v5098_v46, %v5088_v36  ;;  %vm267_vm10 = vweird.f32 %v5098_v46  ;;  %vm281_vm5 = vweird.f32 %v5094_v44  ;;  %vm296_vm6 = vweird.f32 %v5096_v45 }
  0xe7   :  { %v307_v55 = vmul.f32 %v5100_v49, %v5090_v37  ;;  %v254_v8 = vsel %vm253_vm8, %v4390_v39, %v250_v62  ;;  %vm312_vm11 = vweird.f32 %v5100_v49  ;;  %vm5139_vm14 = vmor %vm266_vm12, %vm267_vm10  ;;  %v300_v47 = vand.u32 2147483647, %v5096_v45 }
  0xe8   :  { %v263_v59 = vsub.f32 1.0, %v262_v52  ;;  %v5110_v60 = vpop.eup %4399  ;;  %v5125_v15 = vsel %vm256_vm9, %v258_v11, %v254_v8  ;;  %vm313_vm15 = vmor %vm311_vm13, %vm312_vm11  ;;  %v285_v48 = vand.u32 2147483647, %v5094_v44  ;;  %v303_v52 = vor.u32 1.1754944e-38, %v302_v43 }
  0xe9   :  { %v308_v63 = vsub.f32 1.0, %v307_v55  ;;  %v5113_v0 = vpop.eup %4401  ;;  %v277_v5 = vmul.f32 %v5110_v60, %v5094_v44  ;;  %vm282_vm3 = vweird.f32 %v5110_v60  ;;  %vm301_vm9 = vcmp.eq.f32.partialorder %v300_v47, 8.507059e+37 }
  0xea   :  { %v264_v4 = vmul.f32 %v5098_v46, %v263_v59  ;;  %v292_v7 = vmul.f32 %v5113_v0, %v5096_v45  ;;  %v4404_v29 = vpop.eup %4403  ;;  %vm297_vm4 = vweird.f32 %v5113_v0  ;;  %vm283_vm7 = vmor %vm281_vm5, %vm282_vm3  ;;  %vm286_vm10 = vcmp.eq.f32.partialorder %v285_v48, 8.507059e+37 }
  0xeb   :  { %v309_v10 = vmul.f32 %v5100_v49, %v308_v63  ;;  %v278_v17 = vsub.f32 1.0, %v277_v5  ;;  %v229_v39 = vadd.f32 1.0, %v4404_v29  ;;  %vm298_vm8 = vmor %vm296_vm6, %vm297_vm4  ;;  %v360_v24 = vmul.f32 0.0, %v5125_v15 }
  0xec   :  { %v265_v16 = vadd.f32 %v5098_v46, %v264_v4  ;;  %v293_v18 = vsub.f32 1.0, %v292_v7  ;;  %v359_v29 = vmul.f32 0.0, %v5108_v58  ;;  %vm523_vm4 = vcmask 1041409  }
  0xed   :  { %v310_v21 = vadd.f32 %v5100_v49, %v309_v10  ;;  %v279_v28 = vmul.f32 %v5110_v60, %v278_v17  ;;  %4407 = vrcp.f32 %v229_v39  ;;  %v332_v3 = vand.u32 2147483648, %v229_v39 }
  0xee   :  { %v294_v30 = vmul.f32 %v5113_v0, %v293_v18  ;;  %v269_v31 = vsel %vm5139_vm14, %v5098_v46, %v265_v16  ;;  %v287_v46 = vand.u32 2147483648, %v5094_v44  ;;  %vm326_vm12 = vweird.f32 %v229_v39 }
  0xef   :  { %v314_v20 = vsel %vm313_vm15, %v5100_v49, %v310_v21  ;;  %v5153_v36 = vsel %vm271_vm2, %v273_v33, %v269_v31  ;;  %v280_v38 = vadd.f32 %v5110_v60, %v279_v28  ;;  %v4406_v49 = vpop.eup %4405  ;;  %v330_v4 = vand.u32 2147483647, %v229_v39 }
  0xf0   :  { %v5151_v34 = vsel %vm316_vm1, %v318_v32, %v314_v20  ;;  %v295_v40 = vadd.f32 %v5113_v0, %v294_v30  ;;  %v288_v53 = vor.u32 1.1754944e-38, %v287_v46  ;;  %v230_v56 = vadd.f32 1.0, %v4406_v49 }
  0xf1   :  { %v284_v51 = vsel %vm283_vm7, %v5110_v60, %v280_v38  ;;  %v333_v8 = vor.u32 1.1754944e-38, %v332_v3  ;;  %vm331_vm14 = vcmp.eq.f32.partialorder %v330_v4, 8.507059e+37  ;;  %v364_v38 = vmul.f32 0.0, %v5151_v34 }
  0xf2   :  { %v299_v50 = vsel %vm298_vm8, %v5113_v0, %v295_v40  ;;  %v5174_v54 = vsel %vm286_vm10, %v288_v53, %v284_v51  ;;  %4409 = vrcp.f32 %v230_v56  ;;  %v347_v16 = vand.u32 2147483648, %v230_v56 }
  0xf3   :  { %v5172_v45 = vsel %vm301_vm9, %v303_v52, %v299_v50  ;;  %v4408_v59 = vpop.eup %4407  ;;  %vm341_vm1 = vweird.f32 %v230_v56  ;;  %v345_v17 = vand.u32 2147483647, %v230_v56  ;;  %v362_v28 = vmul.f32 0.0, %v5174_v54 }
  0xf4   :  { %v322_v60 = vmul.f32 %v4408_v59, %v229_v39  ;;  %vm327_vm11 = vweird.f32 %v4408_v59  ;;  %v363_v43 = vmul.f32 0.0, %v5172_v45  ;;  %vm526_vm5 = vcmask 1042434  }
  0xf5   :  { %vm328_vm13 = vmor %vm326_vm12, %vm327_vm11  ;;  %vm346_vm3 = vcmp.eq.f32.partialorder %v345_v17, 8.507059e+37  ;;  %vm529_vm6 = vcmask 1043459   ;;  %vm532_vm7 = vcmask 1044484   ;;  %vm535_vm8 = vcmask 1045509  }
  0xf6   :  { %vm538_vm9 = vcmask 1046534   ;;  %vm541_vm10 = vcmask 1047559   ;;  %vm158_vm11 = vcmask 261120  }
  0xf8   :  { %v4410_v62 = vpop.eup %4409 }
  0xf9   :  { %v337_v0 = vmul.f32 %v4410_v62, %v230_v56  ;;  %vm342_vm15 = vweird.f32 %v4410_v62 }
  0xfa   :  { %vm343_vm2 = vmor %vm341_vm1, %vm342_vm15 }
  0xfb   :  { %v338_v2 = vsub.f32 1.0, %v337_v0  ;;  %v5237_v0 = vld [vmem:[%s7119_s5 + $0x8] sm:$0xff] }
  0xfc   :  { %592 = vmatpush.bf16.msra.mxu3 %v5237_v0 }
  0xfd   :  { %v339_v7 = vmul.f32 %v4410_v62, %v338_v2  ;;  %v5249_v2 = vld [vmem:[%s7119_s5] sm:$0xff] }
 0x100   :  { %593 = vmatpush.bf16.msra.mxu3 %v5249_v2 }
 0x103   :  { %594 = vmatmul.bf16.vlgmr.msra.gmra.mxu3 %v4952_v13 }
 0x104   :  { %1048 = vmatpush.bf16.msrb.mxu3 %v5237_v0 }
 0x108   :  { %1049 = vmatpush.bf16.msrb.mxu3 %v5249_v2 }
 0x10c   :  { %v376_v57 = vpop.permute.xlu1 %375  ;;  %1504 = vmatpush.bf16.msra.mxu3 %v5237_v0 }
 0x10d   :  { %v399_v61 = vmul.f32 %v376_v57, %v5108_v58 }
 0x10f   :  { %415 = vrot.lane.b32.xlu1 %v399_v61, %s4953_s0  ;;  %v323_v61 = vsub.f32 1.0, %v322_v60 }
 0x110   :  { %1505 = vmatpush.bf16.msra.mxu3 %v5249_v2 }
 0x111   :  { %v324_v63 = vmul.f32 %v4408_v59, %v323_v61 }
 0x113   :  { %v325_v1 = vadd.f32 %v4408_v59, %v324_v63  ;;  %v5232_v63 = vld [vmem:[%s7118_s4 + $0x8] sm:$0xff] }
 0x114   :  { %v5123_v12 = vpop.permute.xlu2 %383  ;;  %v378_v14 = vpop.permute.xlu0 %377  ;;  %567 = vmatpush.bf16.msra.mxu2 %v5232_v63  ;;  %2852 = vmatpush.bf16.msra.mxu0 %v5232_v63 }
 0x115   :  { %v400_v19 = vmul.f32 %v378_v14, %v5125_v15  ;;  %v403_v44 = vmul.f32 %v5123_v12, %v5172_v45  ;;  %v329_v5 = vsel %vm328_vm13, %v4408_v59, %v325_v1  ;;  %v340_v14 = vadd.f32 %v4410_v62, %v339_v7  ;;  %v5244_v1 = vld [vmem:[%s7118_s4] sm:$0xff] }
 0x116   :  { %v5181_v10 = vsel %vm331_vm14, %v333_v8, %v329_v5 }
 0x117   :  { %417 = vrot.lane.b32.xlu2 %v400_v19, %s4953_s0  ;;  %v344_v18 = vsel %vm343_vm2, %v4410_v62, %v340_v14  ;;  %v348_v19 = vor.u32 1.1754944e-38, %v347_v16  ;;  %v365_v46 = vmul.f32 0.0, %v5181_v10 }
 0x118   :  { %568 = vmatpush.bf16.msra.mxu2 %v5244_v1  ;;  %2853 = vmatpush.bf16.msra.mxu0 %v5244_v1 }
 0x119   :  { %v5185_v21 = vsel %vm346_vm3, %v348_v19, %v344_v18 }
 0x11a   :  { %v366_v56 = vmul.f32 0.0, %v5185_v21 }
 0x11c   :  { %v386_v35 = vpop.permute.xlu2 %385  ;;  %v380_v37 = vpop.permute.xlu0 %379  ;;  %1028 = vmatpush.bf16.msrb.mxu2 %v5232_v63 }
 0x11d   :  { %v404_v41 = vmul.f32 %v386_v35, %v5151_v34  ;;  %v401_v42 = vmul.f32 %v380_v37, %v5153_v36  ;;  %v361_v37 = vmul.f32 0.0, %v5153_v36 }
 0x11f   :  { %419 = vrot.lane.b32.xlu0 %v401_v42, %s4953_s0  ;;  %425 = vrot.lane.b32.xlu1 %v404_v41, %s4953_s0 }
 0x120   :  { %1029 = vmatpush.bf16.msrb.mxu2 %v5244_v1 }
 0x124   :  { %v382_v55 = vpop.permute.xlu1 %381 }
 0x125   :  { %v402_v57 = vmul.f32 %v382_v55, %v5174_v54 }
 0x127   :  { %423 = vrot.lane.b32.xlu0 %v403_v44, %s4953_s0  ;;  %421 = vrot.lane.b32.xlu2 %v402_v57, %s4953_s0 }
 0x13c   :  { %v388_v11 = vpop.permute.xlu0 %387 }
 0x13d   :  { %v405_v12 = vmul.f32 %v388_v11, %v5181_v10 }
 0x13f   :  { %427 = vrot.lane.b32.xlu2 %v405_v12, %s4953_s0 }
 0x144   :  { %v390_v22 = vpop.permute.xlu1 %389 }
 0x145   :  { %v406_v23 = vmul.f32 %v390_v22, %v5185_v21 }
 0x147   :  { %429 = vrot.lane.b32.xlu0 %v406_v23, %s4953_s0 }
 0x171   :  { %v418_v25 = vpop.permute.xlu2 %417 }
 0x172   :  { %v5190_v26 = vadd.f32 %v418_v25, %v360_v24 }
 0x174   :  { %4411 = vtanh.f32 %v5190_v26 }
 0x17a   :  { %v4412_v27 = vpop.eup %4411 }
 0x17b   :  { %465 = vrot.lane.b32.xlu1 %v4412_v27, %s4953_s0 }
 0x181   :  { %v422_v30 = vpop.permute.xlu2 %421  ;;  %v416_v20 = vpop.permute.xlu1 %415 }
 0x182   :  { %v5196_v31 = vadd.f32 %v422_v30, %v362_v28  ;;  %v5198_v32 = vadd.f32 %v416_v20, %v359_v29 }
 0x184   :  { %4413 = vtanh.f32 %v5196_v31 }
 0x185   :  { %4415 = vtanh.f32 %v5198_v32 }
 0x18a   :  { %v4414_v33 = vpop.eup %4413 }
 0x18b   :  { %v4416_v35 = vpop.eup %4415  ;;  %469 = vrot.lane.b32.xlu1 %v4414_v33, %s4953_s0 }
 0x18c   :  { %463 = vrot.lane.b32.xlu0 %v4416_v35, %s4953_s0 }
 0x191   :  { %v420_v39 = vpop.permute.xlu0 %419  ;;  %v426_v40 = vpop.permute.xlu1 %425 }
 0x192   :  { %v5206_v41 = vadd.f32 %v420_v39, %v361_v37  ;;  %v5208_v42 = vadd.f32 %v426_v40, %v364_v38 }
 0x194   :  { %4417 = vtanh.f32 %v5206_v41 }
 0x195   :  { %4419 = vtanh.f32 %v5208_v42 }
 0x199   :  { %v424_v47 = vpop.permute.xlu0 %423  ;;  %v428_v48 = vpop.permute.xlu2 %427 }
 0x19a   :  { %v4418_v49 = vpop.eup %4417  ;;  %v5214_v50 = vadd.f32 %v424_v47, %v363_v43  ;;  %v5216_v51 = vadd.f32 %v428_v48, %v365_v46 }
 0x19b   :  { %v4420_v52 = vpop.eup %4419  ;;  %467 = vrot.lane.b32.xlu2 %v4418_v49, %s4953_s0 }
 0x19c   :  { %4421 = vtanh.f32 %v5214_v50  ;;  %473 = vrot.lane.b32.xlu0 %v4420_v52, %s4953_s0 }
 0x19d   :  { %4423 = vtanh.f32 %v5216_v51 }
 0x1a2   :  { %v4422_v53 = vpop.eup %4421 }
 0x1a3   :  { %v4424_v55 = vpop.eup %4423  ;;  %471 = vrot.lane.b32.xlu2 %v4422_v53, %s4953_s0 }
 0x1a4   :  { %475 = vrot.lane.b32.xlu1 %v4424_v55, %s4953_s0 }
 0x1b9   :  { %v430_v44 = vpop.permute.xlu0 %429 }
 0x1ba   :  { %v5225_v57 = vadd.f32 %v430_v44, %v366_v56  ;;  %v595_v44 = vpop.f32.mrf.mxu3 }
 0x1bc   :  { %4425 = vtanh.f32 %v5225_v57 }
 0x1c2   :  { %v4426_v59 = vpop.eup %4425 }
 0x1c3   :  { %477 = vrot.lane.b32.xlu2 %v4426_v59, %s4953_s0  ;;  %v597_v59 = vpop.f32.mrf.mxu3 }
 0x1ed   :  { %v466_v60 = vpop.permute.xlu1 %465 }
 0x1ee   :  { %v488_v3 = vmul.f32 %v466_v60, %v5125_v15 }
 0x1f0   :  { %v496_v8 = vpack.c.bf16 %v488_v3, %v488_v3 }
 0x1f2   :  { %v515_v16 = vunpack.c.l.b16 %v496_v8  ;;  %v638_v8 = vld [vmem:[#allocation2 + $0x9] sm:$0x1] }
 0x1f4   :  { %v522_v24 = vrot.slane %v515_v16, 7 }
 0x1f5   :  { %v468_v61 = vpop.permute.xlu2 %467 }
 0x1f6   :  { %v489_v7 = vmul.f32 %v468_v61, %v5153_v36  ;;  %v637_v61 = vld [vmem:[#allocation2 + $0x1] sm:$0x1] }
 0x1fd   :  { %v470_v4 = vpop.permute.xlu1 %469  ;;  %v472_v11 = vpop.permute.xlu2 %471 }
 0x1fe   :  { %v464_v62 = vpop.permute.xlu0 %463  ;;  %v490_v12 = vmul.f32 %v470_v4, %v5174_v54  ;;  %v491_v36 = vmul.f32 %v472_v11, %v5172_v45 }
 0x1ff   :  { %v487_v5 = vmul.f32 %v464_v62, %v5108_v58  ;;  %v497_v58 = vpack.c.bf16 %v489_v7, %v489_v7  ;;  %v5287_v7 = vld [vmem:[%s7120_s6] ss:$0 sm:$0xff] }
 0x200   :  { %v498_v17 = vpack.c.bf16 %v490_v12, %v490_v12  ;;  %v499_v23 = vpack.c.bf16 %v491_v36, %v491_v36 }
 0x201   :  { %v495_v14 = vpack.c.bf16 %v487_v5, %v487_v5  ;;  %v516_v22 = vunpack.c.l.b16 %v497_v58  ;;  %v639_v5 = vld [vmem:[#allocation2 + $0x11] sm:$0x1] }
 0x202   :  { %v517_v25 = vunpack.c.l.b16 %v498_v17  ;;  %v518_v29 = vunpack.c.l.b16 %v499_v23 }
 0x203   :  { %v514_v54 = vunpack.c.l.b16 %v495_v14  ;;  %v525_v28 = vrot.slane %v516_v22, 6 }
 0x204   :  { %v528_v30 = vrot.slane %v517_v25, 5  ;;  %v531_v38 = vrot.slane %v518_v29, 4  ;;  %v644_v29 = vld [vmem:[#allocation2 + $0x39] sm:$0x1] }
 0x20e   :  { %v474_v15 = vpop.permute.xlu0 %473 }
 0x20f   :  { %v492_v18 = vmul.f32 %v474_v15, %v5151_v34  ;;  %v524_v34 = vsel %vm523_vm4, %v522_v24, %v514_v54  ;;  %v642_v15 = vld [vmem:[#allocation2 + $0x29] sm:$0x1] }
 0x210   :  { %v527_v33 = vsel %vm526_vm5, %v525_v28, %v524_v34 }
 0x211   :  { %v500_v45 = vpack.c.bf16 %v492_v18, %v492_v18  ;;  %v530_v39 = vsel %vm529_vm6, %v528_v30, %v527_v33 }
 0x212   :  { %v533_v48 = vsel %vm532_vm7, %v531_v38, %v530_v39 }
 0x213   :  { %v519_v20 = vunpack.c.l.b16 %v500_v45 }
 0x215   :  { %v534_v40 = vrot.slane %v519_v20, 3  ;;  %v643_v20 = vld [vmem:[#allocation2 + $0x31] sm:$0x1] }
 0x216   :  { %v476_v19 = vpop.permute.xlu1 %475 }
 0x217   :  { %v493_v13 = vmul.f32 %v476_v19, %v5181_v10  ;;  %v536_v49 = vsel %vm535_vm8, %v534_v40, %v533_v48  ;;  %v641_v19 = vld [vmem:[#allocation2 + $0x21] sm:$0x1] }
 0x219   :  { %v501_v27 = vpack.c.bf16 %v493_v13, %v493_v13  ;;  %v640_v13 = vld [vmem:[#allocation2 + $0x19] sm:$0x1] }
 0x21b   :  { %v520_v35 = vunpack.c.l.b16 %v501_v27 }
 0x21d   :  { %v478_v37 = vpop.permute.xlu2 %477  ;;  %v537_v46 = vrot.slane %v520_v35, 2 }
 0x21e   :  { %v494_v10 = vmul.f32 %v478_v37, %v5185_v21 }
 0x21f   :  { %v539_v53 = vsel %vm538_vm9, %v537_v46, %v536_v49 }
 0x220   :  { %v502_v43 = vpack.c.bf16 %v494_v10, %v494_v10 }
 0x222   :  { %v521_v47 = vunpack.c.l.b16 %v502_v43 }
 0x224   :  { %v540_v52 = vrot.slane %v521_v47, 1 }
 0x226   :  { %v542_v21 = vsel %vm541_vm10, %v540_v52, %v539_v53 }
 0x227   :  { %v543_v55 = vpack.c.b16 %v542_v21, %v542_v21 }
 0x229   :  { %544 = vrot.lane.b32.xlu0 %v543_v55, %s4954_s17 }
 0x29b   :  { %v545_v56 = vpop.permute.xlu0 %544 }
 0x29c   :  { %4250 = vmatmul.msk.bf16.vlgmr.msra.gmra.mxu2 %vm158_vm11, %v545_v56  ;;  %4260 = vmatmul.msk.bf16.vlgmr.msrb.gmra.mxu1 %vm158_vm11, %v545_v56 }
 0x29d   :  { %1563 = vmatpush.bf16.msrb.mxu1 %v5019_v6  ;;  %1484 = vmatpush.bf16.msra.mxu2 %v5232_v63 }
 0x2a1   :  { %1564 = vmatpush.bf16.msrb.mxu1 %v5025_v9  ;;  %1485 = vmatpush.bf16.msra.mxu2 %v5244_v1 }
 0x319   :  { %v654_v60 = vpop.f32.mrf.mxu1 }
 0x31a   :  { %v674_v62 = vadd.f32 %v654_v60, %v637_v61  ;;  %v660_v3 = vrot.slane %v654_v60, 2  ;;  %v659_v4 = vrot.slane %v654_v60, 1  ;;  %v663_v11 = vrot.slane %v654_v60, 5 }
 0x31b   :  { %v662_v36 = vrot.slane %v654_v60, 4  ;;  %v661_v54 = vrot.slane %v654_v60, 3  ;;  %v665_v27 = vrot.slane %v654_v60, 7  ;;  %v664_v28 = vrot.slane %v654_v60, 6 }
 0x31c   :  { %4427 = vtanh.f32 %v674_v62  ;;  %v676_v6 = vadd.f32 %v660_v3, %v639_v5  ;;  %v675_v9 = vadd.f32 %v659_v4, %v638_v8  ;;  %v679_v58 = vadd.f32 %v663_v11, %v642_v15 }
 0x31d   :  { %v678_v22 = vadd.f32 %v662_v36, %v641_v19  ;;  %v677_v24 = vadd.f32 %v661_v54, %v640_v13  ;;  %v681_v30 = vadd.f32 %v665_v27, %v644_v29  ;;  %v680_v35 = vadd.f32 %v664_v28, %v643_v20 }
 0x31e   :  { %4429 = vtanh.f32 %v676_v6  ;;  %v4263_v39 = vmul.f32 -1.442695, %v676_v6  ;;  %v4261_v49 = vmul.f32 -1.442695, %v674_v62  ;;  %v4262_v21 = vmul.f32 -1.442695, %v675_v9 }
 0x31f   :  { %v570_v12 = vpop.f32.mrf.mxu2  ;;  %4431 = vtanh.f32 %v675_v9  ;;  %v4265_v40 = vmul.f32 -1.442695, %v678_v22  ;;  %v4268_v47 = vmul.f32 -1.442695, %v681_v30  ;;  %v4264_v5 = vmul.f32 -1.442695, %v677_v24 }
 0x320   :  { %v571_v14 = vadd.f32 %v5287_v7, %v570_v12  ;;  %4433 = vtanh.f32 %v679_v58 }
 0x321   :  { %v656_v16 = vpop.f32.mrf.mxu1  ;;  %4435 = vtanh.f32 %v678_v22 }
 0x322   :  { %v4428_v17 = vpop.eup %4427  ;;  %v5290_v18 = vadd.f32 %v595_v44, %v571_v14  ;;  %4437 = vtanh.f32 %v677_v24  ;;  %v4266_v44 = vmul.f32 -1.442695, %v679_v58  ;;  %v4267_v16 = vmul.f32 -1.442695, %v680_v35 }
 0x323   :  { %858 = vrot.lane.b32.xlu0 %v4428_v17, %s4953_s0  ;;  %4439 = vtanh.f32 %v681_v30 }
 0x324   :  { %v4430_v23 = vpop.eup %4429  ;;  %4441 = vtanh.f32 %v680_v35 }
 0x325   :  { %862 = vrot.lane.b32.xlu2 %v4430_v23, %s4953_s0  ;;  %v4432_v25 = vpop.eup %4431  ;;  %4443 = vpow2.f32 %v4263_v39 }
 0x326   :  { %860 = vrot.lane.b32.xlu1 %v4432_v25, %s4953_s0  ;;  %v4434_v34 = vpop.eup %4433  ;;  %4445 = vpow2.f32 %v4265_v40 }
 0x327   :  { %v572_v45 = vpop.f32.mrf.mxu2  ;;  %v4436_v33 = vpop.eup %4435 }
 0x328   :  { %v4438_v37 = vpop.eup %4437 }
 0x329   :  { %v4440_v10 = vpop.eup %4439 }
 0x32a   :  { %v4442_v38 = vpop.eup %4441 }
 0x32b   :  { %868 = vrot.lane.b32.xlu0 %v4434_v34, %s4953_s0  ;;  %v4444_v43 = vpop.eup %4443 }
 0x32c   :  { %v708_v46 = vadd.f32 1.0, %v4444_v43  ;;  %v4446_v48 = vpop.eup %4445 }
 0x32d   :  { %866 = vrot.lane.b32.xlu2 %v4436_v33, %s4953_s0  ;;  %v5300_v52 = vadd.f32 1.0, %v4446_v48 }
 0x32e   :  { %864 = vrot.lane.b32.xlu1 %v4438_v37, %s4953_s0  ;;  %4447 = vrcp.f32 %v708_v46  ;;  %v755_v12 = vand.u32 2147483648, %v708_v46  ;;  %vm749_vm13 = vweird.f32 %v708_v46  ;;  %v753_v36 = vand.u32 2147483647, %v708_v46 }
 0x32f   :  { %4449 = vpow2.f32 %v4268_v47  ;;  %v785_v30 = vand.u32 2147483648, %v5300_v52  ;;  %vm779_vm2 = vweird.f32 %v5300_v52  ;;  %v783_v35 = vand.u32 2147483647, %v5300_v52 }
 0x330   :  { %4451 = vpow2.f32 %v4261_v49  ;;  %v756_v19 = vor.u32 1.1754944e-38, %v755_v12  ;;  %vm754_vm15 = vcmp.eq.f32.partialorder %v753_v36, 8.507059e+37 }
 0x331   :  { %4453 = vrcp.f32 %v5300_v52  ;;  %v786_v43 = vor.u32 1.1754944e-38, %v785_v30 }
 0x332   :  { %4455 = vpow2.f32 %v4262_v21 }
 0x333   :  { %4457 = vpow2.f32 %v4266_v44 }
 0x334   :  { %v4448_v53 = vpop.eup %4447 }
 0x335   :  { %872 = vrot.lane.b32.xlu2 %v4440_v10, %s4953_s0  ;;  %v745_v55 = vmul.f32 %v4448_v53, %v708_v46  ;;  %v4450_v56 = vpop.eup %4449  ;;  %vm750_vm12 = vweird.f32 %v4448_v53 }
 0x336   :  { %870 = vrot.lane.b32.xlu1 %v4442_v38, %s4953_s0  ;;  %v5303_v60 = vadd.f32 1.0, %v4450_v56  ;;  %v4452_v61 = vpop.eup %4451  ;;  %vm751_vm14 = vmor %vm749_vm13, %vm750_vm12  ;;  %vm784_vm12 = vcmp.eq.f32.partialorder %v783_v35, 8.507059e+37 }
 0x337   :  { %v746_v59 = vsub.f32 1.0, %v745_v55  ;;  %v4454_v3 = vpop.eup %4453  ;;  %v5306_v62 = vadd.f32 1.0, %v4452_v61 }
 0x338   :  { %4459 = vrcp.f32 %v5303_v60  ;;  %v775_v6 = vmul.f32 %v4454_v3, %v5300_v52  ;;  %v4456_v8 = vpop.eup %4455  ;;  %vm780_vm1 = vweird.f32 %v4454_v3  ;;  %v830_v55 = vand.u32 2147483648, %v5303_v60 }
 0x339   :  { %v747_v4 = vmul.f32 %v4448_v53, %v746_v59  ;;  %4461 = vrcp.f32 %v5306_v62  ;;  %v4458_v9 = vpop.eup %4457  ;;  %v5310_v14 = vadd.f32 1.0, %v4456_v8  ;;  %vm781_vm3 = vmor %vm779_vm2, %vm780_vm1  ;;  %v828_v59 = vand.u32 2147483647, %v5303_v60 }
 0x33a   :  { %4463 = vpow2.f32 %v4264_v5  ;;  %v776_v15 = vsub.f32 1.0, %v775_v6  ;;  %v5314_v54 = vadd.f32 1.0, %v4458_v9  ;;  %v831_v6 = vor.u32 1.1754944e-38, %v830_v55 }
 0x33b   :  { %v748_v11 = vadd.f32 %v4448_v53, %v747_v4  ;;  %4465 = vrcp.f32 %v5310_v14  ;;  %v725_v8 = vand.u32 2147483648, %v5306_v62  ;;  %vm829_vm2 = vcmp.eq.f32.partialorder %v828_v59, 8.507059e+37 }
 0x33c   :  { %v777_v22 = vmul.f32 %v4454_v3, %v776_v15  ;;  %4467 = vpow2.f32 %v4267_v16  ;;  %v800_v30 = vand.u32 2147483648, %v5314_v54  ;;  %v798_v35 = vand.u32 2147483647, %v5314_v54 }
 0x33d   :  { %v752_v17 = vsel %vm751_vm14, %v4448_v53, %v748_v11  ;;  %4469 = vrcp.f32 %v5314_v54  ;;  %vm824_vm14 = vweird.f32 %v5303_v60 }
 0x33e   :  { %v5312_v58 = vpop.eup %4459  ;;  %v5321_v45 = vsel %vm754_vm15, %v756_v19, %v752_v17  ;;  %v778_v34 = vadd.f32 %v4454_v3, %v777_v22  ;;  %v726_v17 = vor.u32 1.1754944e-38, %v725_v8 }
 0x33f   :  { %v820_v23 = vmul.f32 %v5312_v58, %v5303_v60  ;;  %v5319_v13 = vpop.eup %4461  ;;  %vm825_vm13 = vweird.f32 %v5312_v58  ;;  %v723_v60 = vand.u32 2147483647, %v5306_v62 }
 0x340   :  { %v4464_v24 = vpop.eup %4463  ;;  %v715_v29 = vmul.f32 %v5319_v13, %v5306_v62  ;;  %v782_v10 = vsel %vm781_vm3, %v4454_v3, %v778_v34  ;;  %vm826_vm15 = vmor %vm824_vm14, %vm825_vm13  ;;  %vm720_vm1 = vweird.f32 %v5319_v13  ;;  %vm719_vm3 = vweird.f32 %v5306_v62 }
 0x341   :  { %v821_v28 = vsub.f32 1.0, %v820_v23  ;;  %v5329_v20 = vadd.f32 1.0, %v4464_v24  ;;  %v5331_v33 = vpop.eup %4465  ;;  %v5341_v47 = vsel %vm784_vm12, %v786_v43, %v782_v10  ;;  %vm721_vm12 = vmor %vm719_vm3, %vm720_vm1  ;;  %v740_v62 = vand.u32 2147483648, %v5310_v14 }
 0x342   :  { %v4468_v37 = vpop.eup %4467  ;;  %v716_v39 = vsub.f32 1.0, %v715_v29  ;;  %v730_v46 = vmul.f32 %v5331_v33, %v5310_v14  ;;  %vm735_vm13 = vweird.f32 %v5331_v33  ;;  %vm724_vm14 = vcmp.eq.f32.partialorder %v723_v60, 8.507059e+37 }
 0x343   :  { %v822_v38 = vmul.f32 %v5312_v58, %v821_v28  ;;  %v5336_v40 = vpop.eup %4469  ;;  %4471 = vrcp.f32 %v5329_v20  ;;  %v5350_v44 = vadd.f32 1.0, %v4468_v37  ;;  %v741_v29 = vor.u32 1.1754944e-38, %v740_v62 }
 0x344   :  { %v717_v53 = vmul.f32 %v5319_v13, %v716_v39  ;;  %v790_v21 = vmul.f32 %v5336_v40, %v5314_v54  ;;  %v731_v56 = vsub.f32 1.0, %v730_v46  ;;  %vm794_vm3 = vweird.f32 %v5314_v54 }
 0x345   :  { %v823_v52 = vadd.f32 %v5312_v58, %v822_v38  ;;  %4473 = vrcp.f32 %v5350_v44  ;;  %v801_v46 = vor.u32 1.1754944e-38, %v800_v30  ;;  %v815_v8 = vand.u32 2147483648, %v5350_v44 }
 0x346   :  { %v718_v4 = vadd.f32 %v5319_v13, %v717_v53  ;;  %v791_v5 = vsub.f32 1.0, %v790_v21  ;;  %v732_v11 = vmul.f32 %v5331_v33, %v731_v56  ;;  %4475 = vtanh.f32 %v5290_v18 }
 0x347   :  { %v827_v3 = vsel %vm826_vm15, %v5312_v58, %v823_v52  ;;  %vm734_vm15 = vweird.f32 %v5310_v14  ;;  %v770_v53 = vand.u32 2147483648, %v5329_v20  ;;  %v768_v21 = vand.u32 2147483647, %v5329_v20 }
 0x348   :  { %v5367_v12 = vsel %vm829_vm2, %v831_v6, %v827_v3  ;;  %v722_v36 = vsel %vm721_vm12, %v5319_v13, %v718_v4  ;;  %v792_v16 = vmul.f32 %v5336_v40, %v791_v5  ;;  %v733_v19 = vadd.f32 %v5331_v33, %v732_v11  ;;  %vm736_vm1 = vmor %vm734_vm15, %vm735_vm13 }
 0x349   :  { %v5355_v61 = vpop.eup %4471  ;;  %v738_v13 = vand.u32 2147483647, %v5310_v14  ;;  %vm795_vm2 = vweird.f32 %v5336_v40  ;;  %v771_v59 = vor.u32 1.1754944e-38, %v770_v53  ;;  %v816_v11 = vor.u32 1.1754944e-38, %v815_v8 }
 0x34a   :  { %v760_v9 = vmul.f32 %v5355_v61, %v5329_v20  ;;  %v793_v34 = vadd.f32 %v5336_v40, %v792_v16  ;;  %v737_v28 = vsel %vm736_vm1, %v5331_v33, %v733_v19  ;;  %vm796_vm13 = vmor %vm794_vm3, %vm795_vm2  ;;  %vm765_vm15 = vweird.f32 %v5355_v61 }
 0x34b   :  { %v4474_v23 = vpop.eup %4473  ;;  %vm739_vm12 = vcmp.eq.f32.partialorder %v738_v13, 8.507059e+37  ;;  %vm764_vm1 = vweird.f32 %v5329_v20  ;;  %vm769_vm3 = vcmp.eq.f32.partialorder %v768_v21, 8.507059e+37  ;;  %v813_v20 = vand.u32 2147483647, %v5350_v44 }
 0x34c   :  { %v761_v22 = vsub.f32 1.0, %v760_v9  ;;  %v805_v37 = vmul.f32 %v4474_v23, %v5350_v44  ;;  %v5391_v38 = vsel %vm739_vm12, %v741_v29, %v737_v28  ;;  %v797_v33 = vsel %vm796_vm13, %v5336_v40, %v793_v34  ;;  %v4476_v39 = vpop.eup %4475  ;;  %vm766_vm2 = vmor %vm764_vm1, %vm765_vm15 }
 0x34d   :  { %vm810_vm12 = vweird.f32 %v4474_v23  ;;  %vm809_vm13 = vweird.f32 %v5350_v44  ;;  %vm814_vm15 = vcmp.eq.f32.partialorder %v813_v20, 8.507059e+37  ;;  %v844_v44 = vmul.f32 %v5321_v45, %v5206_v41 }
 0x34e   :  { %v762_v14 = vmul.f32 %v5355_v61, %v761_v22  ;;  %v846_v22 = vmul.f32 %v5341_v47, %v5214_v50  ;;  %v4259_v41 = vmul.f32 -1.442695, %v5290_v18  ;;  %v849_v13 = vmul.f32 %v5367_v12, %v5225_v57 }
 0x34f   :  { %v843_v29 = vmul.f32 %v5391_v38, %v5190_v26 }
 0x350   :  { %v763_v54 = vadd.f32 %v5355_v61, %v762_v14 }
 0x352   :  { %v767_v55 = vsel %vm766_vm2, %v5355_v61, %v763_v54 }
 0x353   :  { %v5407_v3 = vsel %vm769_vm3, %v771_v59, %v767_v55 }
 0x354   :  { %v845_v57 = vmul.f32 %v5407_v3, %v5196_v31 }
 0x37f   :  { %v863_v25 = vpop.permute.xlu2 %862 }
 0x380   :  { %v884_v27 = vmul.f32 %v863_v25, %v5321_v45  ;;  %v5377_v25 = vsel %vm724_vm14, %v726_v17, %v722_v36  ;;  %vm799_vm14 = vcmp.eq.f32.partialorder %v798_v35, 8.507059e+37 }
 0x381   :  { %v5399_v52 = vsel %vm799_vm14, %v801_v46, %v797_v33  ;;  %vm811_vm14 = vmor %vm809_vm13, %vm810_vm12 }
 0x382   :  { %902 = vrot.lane.b32.xlu1 %v884_v27, %s4953_s0 }
 0x387   :  { %v867_v48 = vpop.permute.xlu2 %866 }
 0x388   :  { %v886_v49 = vmul.f32 %v867_v48, %v5341_v47  ;;  %v806_v48 = vsub.f32 1.0, %v805_v37 }
 0x38a   :  { %906 = vrot.lane.b32.xlu1 %v886_v49, %s4953_s0  ;;  %v807_v56 = vmul.f32 %v4474_v23, %v806_v48 }
 0x38c   :  { %v808_v6 = vadd.f32 %v4474_v23, %v807_v56 }
 0x38e   :  { %v812_v61 = vsel %vm811_vm14, %v4474_v23, %v808_v6 }
 0x38f   :  { %v873_v15 = vpop.permute.xlu2 %872  ;;  %v5414_v60 = vsel %vm814_vm15, %v816_v11, %v812_v61 }
 0x390   :  { %v889_v58 = vmul.f32 %v873_v15, %v5367_v12  ;;  %v848_v48 = vmul.f32 %v5414_v60, %v5216_v51 }
 0x392   :  { %912 = vrot.lane.b32.xlu1 %v889_v58, %s4953_s0  ;;  %v842_v58 = vmul.f32 %v5377_v25, %v5198_v32 }
 0x395   :  { %v859_v24 = vpop.permute.xlu0 %858 }
 0x396   :  { %v882_v27 = vmul.f32 %v859_v24, %v5377_v25 }
 0x398   :  { %898 = vrot.lane.b32.xlu2 %v882_v27, %s4953_s0  ;;  %v861_v10 = vpop.permute.xlu1 %860 }
 0x399   :  { %v883_v43 = vmul.f32 %v861_v10, %v5391_v38 }
 0x39a   :  { %622 = vrot.lane.b32.xlu1 %v4476_v39, %s4953_s0 }
 0x39b   :  { %900 = vrot.lane.b32.xlu0 %v883_v43, %s4953_s0  ;;  %v847_v43 = vmul.f32 %v5399_v52, %v5208_v42 }
 0x39d   :  { %v869_v49 = vpop.permute.xlu0 %868 }
 0x39e   :  { %v887_v40 = vmul.f32 %v869_v49, %v5399_v52 }
 0x3a0   :  { %908 = vrot.lane.b32.xlu2 %v887_v40, %s4953_s0  ;;  %v865_v4 = vpop.permute.xlu1 %864 }
 0x3a1   :  { %v885_v5 = vmul.f32 %v865_v4, %v5407_v3 }
 0x3a3   :  { %904 = vrot.lane.b32.xlu0 %v885_v5, %s4953_s0 }
 0x3a8   :  { %v871_v9 = vpop.permute.xlu1 %870 }
 0x3a9   :  { %v888_v15 = vmul.f32 %v871_v9, %v5414_v60 }
 0x3ab   :  { %910 = vrot.lane.b32.xlu0 %v888_v15, %s4953_s0 }
 0x3f2   :  { %v899_v36 = vpop.permute.xlu2 %898 }
 0x3f3   :  { %v5420_v16 = vadd.f32 %v899_v36, %v842_v58 }
 0x3f4   :  { %v903_v17 = vpop.permute.xlu1 %902 }
 0x3f5   :  { %4477 = vtanh.f32 %v5420_v16  ;;  %v5425_v19 = vadd.f32 %v903_v17, %v844_v44 }
 0x3f7   :  { %4479 = vtanh.f32 %v5425_v19 }
 0x3fa   :  { %v909_v26 = vpop.permute.xlu2 %908 }
 0x3fb   :  { %v4478_v62 = vpop.eup %4477  ;;  %v5456_v54 = vadd.f32 %v909_v26, %v847_v43 }
 0x3fc   :  { %946 = vrot.lane.b32.xlu1 %v4478_v62, %s4953_s0  ;;  %v907_v23 = vpop.permute.xlu1 %906 }
 0x3fd   :  { %v4480_v32 = vpop.eup %4479  ;;  %v5431_v24 = vadd.f32 %v907_v23, %v846_v22 }
 0x3fe   :  { %950 = vrot.lane.b32.xlu0 %v4480_v32, %s4953_s0 }
 0x3ff   :  { %4481 = vtanh.f32 %v5431_v24 }
 0x400   :  { %4483 = vpow2.f32 %v4259_v41 }
 0x404   :  { %v913_v27 = vpop.permute.xlu1 %912 }
 0x405   :  { %v4482_v34 = vpop.eup %4481  ;;  %v5438_v28 = vadd.f32 %v913_v27, %v849_v13 }
 0x406   :  { %954 = vrot.lane.b32.xlu0 %v4482_v34, %s4953_s0  ;;  %v4484_v50 = vpop.eup %4483 }
 0x407   :  { %4485 = vtanh.f32 %v5438_v28  ;;  %v603_v35 = vadd.f32 1.0, %v4484_v50 }
 0x409   :  { %v615_v59 = vand.u32 2147483648, %v603_v35  ;;  %vm609_vm2 = vweird.f32 %v603_v35  ;;  %v613_v4 = vand.u32 2147483647, %v603_v35 }
 0x40b   :  { %v616_v6 = vor.u32 1.1754944e-38, %v615_v59  ;;  %vm614_vm12 = vcmp.eq.f32.partialorder %v613_v4, 8.507059e+37 }
 0x40c   :  { %v623_v5 = vpop.permute.xlu1 %622 }
 0x40d   :  { %v4486_v30 = vpop.eup %4485  ;;  %v901_v14 = vpop.permute.xlu0 %900 }
 0x40e   :  { %v5444_v18 = vadd.f32 %v901_v14, %v843_v29  ;;  %960 = vrot.lane.b32.xlu1 %v4486_v30, %s4953_s0 }
 0x410   :  { %4487 = vtanh.f32 %v5444_v18 }
 0x411   :  { %4489 = vrcp.f32 %v603_v35 }
 0x415   :  { %v905_v10 = vpop.permute.xlu0 %904 }
 0x416   :  { %v4488_v37 = vpop.eup %4487  ;;  %v5450_v39 = vadd.f32 %v905_v10, %v845_v57 }
 0x417   :  { %v4490_v33 = vpop.eup %4489  ;;  %948 = vrot.lane.b32.xlu2 %v4488_v37, %s4953_s0 }
 0x418   :  { %4491 = vtanh.f32 %v5450_v39  ;;  %v605_v46 = vmul.f32 %v4490_v33, %v603_v35  ;;  %vm610_vm1 = vweird.f32 %v4490_v33 }
 0x419   :  { %4493 = vtanh.f32 %v5456_v54  ;;  %vm611_vm3 = vmor %vm609_vm2, %vm610_vm1 }
 0x41a   :  { %v606_v31 = vsub.f32 1.0, %v605_v46 }
 0x41c   :  { %v607_v21 = vmul.f32 %v4490_v33, %v606_v31 }
 0x41d   :  { %v911_v49 = vpop.permute.xlu0 %910 }
 0x41e   :  { %v4492_v53 = vpop.eup %4491  ;;  %v5460_v40 = vadd.f32 %v911_v49, %v848_v48  ;;  %v608_v42 = vadd.f32 %v4490_v33, %v607_v21 }
 0x41f   :  { %952 = vrot.lane.b32.xlu2 %v4492_v53, %s4953_s0  ;;  %v4494_v55 = vpop.eup %4493 }
 0x420   :  { %4495 = vtanh.f32 %v5460_v40  ;;  %v612_v51 = vsel %vm611_vm3, %v4490_v33, %v608_v42 }
 0x421   :  { %v617_v8 = vsel %vm614_vm12, %v616_v6, %v612_v51 }
 0x422   :  { %v625_v20 = vmul.f32 %v623_v5, %v617_v8  ;;  %v620_v58 = vmul.f32 0.0, %v617_v8 }
 0x426   :  { %v4496_v56 = vpop.eup %4495 }
 0x427   :  { %958 = vrot.lane.b32.xlu0 %v4496_v56, %s4953_s0  ;;  %956 = vrot.lane.b32.xlu2 %v4494_v55, %s4953_s0 }
 0x42f   :  { %627 = vrot.lane.b32.xlu2 %v625_v20, %s4953_s0 }
 0x46e   :  { %v947_v17 = vpop.permute.xlu1 %946 }
 0x46f   :  { %v970_v13 = vmul.f32 %v947_v17, %v5377_v25 }
 0x470   :  { %v951_v15 = vpop.permute.xlu0 %950 }
 0x471   :  { %v949_v61 = vpop.permute.xlu2 %948  ;;  %v972_v22 = vmul.f32 %v951_v15, %v5321_v45  ;;  %v978_v14 = vpack.c.bf16 %v970_v13, %v970_v13  ;;  %v1095_v13 = vld [vmem:[#allocation2 + $0x12] sm:$0x1] }
 0x472   :  { %v971_v36 = vmul.f32 %v949_v61, %v5391_v38 }
 0x473   :  { %v980_v27 = vpack.c.bf16 %v972_v22, %v972_v22  ;;  %v994_v25 = vunpack.c.l.b16 %v978_v14 }
 0x474   :  { %v979_v32 = vpack.c.bf16 %v971_v36, %v971_v36 }
 0x475   :  { %v996_v45 = vunpack.c.l.b16 %v980_v27 }
 0x476   :  { %v995_v50 = vunpack.c.l.b16 %v979_v32 }
 0x477   :  { %v1004_v26 = vrot.slane %v996_v45, 6  ;;  %v1097_v45 = vld [vmem:[#allocation2 + $0x22] sm:$0x1] }
 0x478   :  { %v955_v23 = vpop.permute.xlu0 %954  ;;  %v1002_v37 = vrot.slane %v995_v50, 7 }
 0x479   :  { %v953_v11 = vpop.permute.xlu2 %952  ;;  %v974_v34 = vmul.f32 %v955_v23, %v5341_v47  ;;  %v1094_v23 = vld [vmem:[#allocation2 + $0xa] sm:$0x1] }
 0x47a   :  { %v973_v41 = vmul.f32 %v953_v11, %v5407_v3  ;;  %v1003_v47 = vsel %vm523_vm4, %v1002_v37, %v994_v25  ;;  %v1099_v25 = vld [vmem:[#allocation2 + $0x32] sm:$0x1] }
 0x47b   :  { %v982_v57 = vpack.c.bf16 %v974_v34, %v974_v34  ;;  %v1005_v21 = vsel %vm526_vm5, %v1004_v26, %v1003_v47 }
 0x47c   :  { %v981_v29 = vpack.c.bf16 %v973_v41, %v973_v41 }
 0x47d   :  { %v998_v43 = vunpack.c.l.b16 %v982_v57 }
 0x47e   :  { %v997_v10 = vunpack.c.l.b16 %v981_v29 }
 0x47f   :  { %v1008_v53 = vrot.slane %v998_v43, 4 }
 0x480   :  { %v961_v35 = vpop.permute.xlu1 %960  ;;  %v1006_v46 = vrot.slane %v997_v10, 5 }
 0x481   :  { %v957_v9 = vpop.permute.xlu2 %956  ;;  %v977_v3 = vmul.f32 %v961_v35, %v5367_v12 }
 0x482   :  { %v975_v38 = vmul.f32 %v957_v9, %v5399_v52  ;;  %v1007_v42 = vsel %vm529_vm6, %v1006_v46, %v1005_v21  ;;  %v1100_v46 = vld [vmem:[#allocation2 + $0x3a] sm:$0x1] }
 0x483   :  { %v985_v52 = vpack.c.bf16 %v977_v3, %v977_v3  ;;  %v1009_v4 = vsel %vm532_vm7, %v1008_v53, %v1007_v42 }
 0x484   :  { %v983_v33 = vpack.c.bf16 %v975_v38, %v975_v38 }
 0x485   :  { %v1001_v59 = vunpack.c.l.b16 %v985_v52 }
 0x486   :  { %v999_v48 = vunpack.c.l.b16 %v983_v33 }
 0x487   :  { %v1014_v6 = vrot.slane %v1001_v59, 1 }
 0x488   :  { %v1010_v56 = vrot.slane %v999_v48, 3 }
 0x489   :  { %v628_v44 = vpop.permute.xlu2 %627 }
 0x48a   :  { %v5469_v62 = vadd.f32 %v628_v44, %v620_v58  ;;  %v1011_v5 = vsel %vm535_vm8, %v1010_v56, %v1009_v4  ;;  %v1093_v44 = vld [vmem:[#allocation2 + $0x2] sm:$0x1] }
 0x48c   :  { %4497 = vtanh.f32 %v5469_v62 }
 0x492   :  { %v4498_v30 = vpop.eup %4497 }
 0x493   :  { %633 = vrot.lane.b32.xlu1 %v4498_v30, %s4953_s0 }
 0x499   :  { %v959_v31 = vpop.permute.xlu0 %958 }
 0x49a   :  { %v976_v49 = vmul.f32 %v959_v31, %v5414_v60 }
 0x49c   :  { %v984_v55 = vpack.c.bf16 %v976_v49, %v976_v49 }
 0x49e   :  { %v1000_v12 = vunpack.c.l.b16 %v984_v55 }
 0x4a0   :  { %v1012_v51 = vrot.slane %v1000_v12, 2 }
 0x4a2   :  { %v1013_v20 = vsel %vm538_vm9, %v1012_v51, %v1011_v5 }
 0x4a3   :  { %v1015_v61 = vsel %vm541_vm10, %v1014_v6, %v1013_v20 }
 0x4a4   :  { %v1016_v60 = vpack.c.b16 %v1015_v61, %v1015_v61 }
 0x4a6   :  { %1017 = vrot.lane.b32.xlu0 %v1016_v60, %s4954_s17 }
 0x505   :  { %v634_v11 = vpop.permute.xlu1 %633 }
 0x506   :  { %v5488_v9 = vmul.f32 %v634_v11, %v617_v8 }
 0x508   :  { %v1035_v15 = vpack.c.bf16 %v5488_v9, %v5488_v9 }
 0x50a   :  { %1037 = vrot.lane.b32.xlu2 %v1035_v15, %s4954_s17 }
 0x518   :  { %v1018_v58 = vpop.permute.xlu0 %1017 }
 0x519   :  { %4269 = vmatmul.msk.bf16.vlgmr.msrb.gmra.mxu2 %vm158_vm11, %v1018_v58  ;;  %4272 = vmatmul.msk.bf16.vlgmr.msra.gmra.mxu1 %vm158_vm11, %v1018_v58 }
 0x51a   :  { %1940 = vmatpush.bf16.msrb.mxu2 %v5232_v63  ;;  %2396 = vmatpush.bf16.msra.mxu1 %v5232_v63 }
 0x51e   :  { %1941 = vmatpush.bf16.msrb.mxu2 %v5244_v1  ;;  %2397 = vmatpush.bf16.msra.mxu1 %v5244_v1  ;;  %v1098_v1 = vld [vmem:[#allocation2 + $0x2a] sm:$0x1] }
 0x564   :  { %v1038_v8 = vpop.permute.xlu2 %1037 }
 0x565   :  { %4270 = vmatmul.msk.bf16.vlgmr.msrb.gmra.mxu3 %vm158_vm11, %v1038_v8 }
 0x566   :  { %1960 = vmatpush.bf16.msrb.mxu3 %v5237_v0 }
 0x56a   :  { %1961 = vmatpush.bf16.msrb.mxu3 %v5249_v2  ;;  %v1096_v2 = vld [vmem:[#allocation2 + $0x1a] sm:$0x1] }
 0x596   :  { %v1110_v36 = vpop.f32.mrf.mxu1 }
 0x597   :  { %v1130_v17 = vadd.f32 %v1110_v36, %v1093_v44  ;;  %v1115_v22 = vrot.slane %v1110_v36, 1  ;;  %v1116_v32 = vrot.slane %v1110_v36, 2  ;;  %v1119_v63 = vrot.slane %v1110_v36, 5 }
 0x598   :  { %v1117_v50 = vrot.slane %v1110_v36, 3  ;;  %v1118_v30 = vrot.slane %v1110_v36, 4  ;;  %v1120_v10 = vrot.slane %v1110_v36, 6  ;;  %v1121_v26 = vrot.slane %v1110_v36, 7 }
 0x599   :  { %4499 = vtanh.f32 %v1130_v17  ;;  %v1131_v41 = vadd.f32 %v1115_v22, %v1094_v23  ;;  %v1132_v27 = vadd.f32 %v1116_v32, %v1095_v13  ;;  %v1135_v29 = vadd.f32 %v1119_v63, %v1098_v1 }
 0x59a   :  { %v1133_v35 = vadd.f32 %v1117_v50, %v1096_v2  ;;  %v1134_v57 = vadd.f32 %v1118_v30, %v1097_v45  ;;  %v1136_v43 = vadd.f32 %v1120_v10, %v1099_v25  ;;  %v1137_v48 = vadd.f32 %v1121_v26, %v1100_v46 }
 0x59b   :  { %4501 = vtanh.f32 %v1131_v41  ;;  %v4273_v53 = vmul.f32 -1.442695, %v1130_v17  ;;  %v4278_v21 = vmul.f32 -1.442695, %v1135_v29  ;;  %v4274_v51 = vmul.f32 -1.442695, %v1131_v41 }
 0x59c   :  { %v5502_v34 = vpop.f32.mrf.mxu2  ;;  %4503 = vtanh.f32 %v1132_v27  ;;  %v4275_v6 = vmul.f32 -1.442695, %v1132_v27  ;;  %v4276_v15 = vmul.f32 -1.442695, %v1133_v35  ;;  %v4277_v36 = vmul.f32 -1.442695, %v1134_v57 }
 0x59d   :  { %4505 = vtanh.f32 %v1135_v29  ;;  %v4279_v63 = vmul.f32 -1.442695, %v1136_v43 }
 0x59e   :  { %v1112_v0 = vpop.f32.mrf.mxu1  ;;  %4507 = vtanh.f32 %v1133_v35 }
 0x59f   :  { %v4500_v38 = vpop.eup %4499  ;;  %4509 = vtanh.f32 %v1134_v57  ;;  %v4280_v0 = vmul.f32 -1.442695, %v1137_v48 }
 0x5a0   :  { %1314 = vrot.lane.b32.xlu2 %v4500_v38, %s4953_s0  ;;  %4511 = vtanh.f32 %v1136_v43 }
 0x5a1   :  { %v4502_v14 = vpop.eup %4501  ;;  %4513 = vtanh.f32 %v1137_v48 }
 0x5a2   :  { %1316 = vrot.lane.b32.xlu0 %v4502_v14, %s4953_s0  ;;  %v4504_v33 = vpop.eup %4503  ;;  %4515 = vpow2.f32 %v4273_v53 }
 0x5a3   :  { %1318 = vrot.lane.b32.xlu1 %v4504_v33, %s4953_s0  ;;  %v4506_v3 = vpop.eup %4505  ;;  %4517 = vpow2.f32 %v4278_v21 }
 0x5a4   :  { %v1033_v37 = vpop.f32.mrf.mxu2  ;;  %v4508_v47 = vpop.eup %4507 }
 0x5a5   :  { %v4510_v52 = vpop.eup %4509 }
 0x5a6   :  { %v4512_v31 = vpop.eup %4511 }
 0x5a7   :  { %v4514_v49 = vpop.eup %4513 }
 0x5a8   :  { %1324 = vrot.lane.b32.xlu2 %v4506_v3, %s4953_s0  ;;  %v4516_v55 = vpop.eup %4515  ;;  %v1032_v3 = vadd.f32 %v5287_v7, %v5502_v34 }
 0x5a9   :  { %v1162_v42 = vadd.f32 1.0, %v4516_v55  ;;  %v4518_v56 = vpop.eup %4517 }
 0x5aa   :  { %1320 = vrot.lane.b32.xlu0 %v4508_v47, %s4953_s0  ;;  %v1167_v59 = vadd.f32 1.0, %v4518_v56 }
 0x5ab   :  { %1322 = vrot.lane.b32.xlu1 %v4510_v52, %s4953_s0  ;;  %4519 = vrcp.f32 %v1162_v42  ;;  %v1181_v22 = vand.u32 2147483648, %v1162_v42  ;;  %vm1175_vm14 = vweird.f32 %v1162_v42  ;;  %v1179_v23 = vand.u32 2147483647, %v1162_v42 }
 0x5ac   :  { %4521 = vrcp.f32 %v1167_v59  ;;  %v1256_v14 = vand.u32 2147483648, %v1167_v59  ;;  %vm1250_vm3 = vweird.f32 %v1167_v59  ;;  %v1254_v57 = vand.u32 2147483647, %v1167_v59 }
 0x5ad   :  { %4523 = vpow2.f32 %v4274_v51  ;;  %v1182_v1 = vor.u32 1.1754944e-38, %v1181_v22  ;;  %vm1180_vm1 = vcmp.eq.f32.partialorder %v1179_v23, 8.507059e+37 }
 0x5ae   :  { %4525 = vpow2.f32 %v4275_v6  ;;  %v1257_v25 = vor.u32 1.1754944e-38, %v1256_v14 }
 0x5af   :  { %4527 = vpow2.f32 %v4276_v15 }
 0x5b0   :  { %4529 = vpow2.f32 %v4277_v36 }
 0x5b1   :  { %v4520_v12 = vpop.eup %4519 }
 0x5b2   :  { %1326 = vrot.lane.b32.xlu0 %v4512_v31, %s4953_s0  ;;  %v1171_v4 = vmul.f32 %v4520_v12, %v1162_v42  ;;  %v4522_v61 = vpop.eup %4521  ;;  %vm1176_vm13 = vweird.f32 %v4520_v12 }
 0x5b3   :  { %1328 = vrot.lane.b32.xlu1 %v4514_v49, %s4953_s0  ;;  %v1246_v11 = vmul.f32 %v4522_v61, %v1167_v59  ;;  %v4524_v8 = vpop.eup %4523  ;;  %vm1177_vm15 = vmor %vm1175_vm14, %vm1176_vm13  ;;  %vm1251_vm2 = vweird.f32 %v4522_v61  ;;  %vm1255_vm13 = vcmp.eq.f32.partialorder %v1254_v57, 8.507059e+37 }
 0x5b4   :  { %v1172_v20 = vsub.f32 1.0, %v1171_v4  ;;  %v4526_v32 = vpop.eup %4525  ;;  %v5512_v41 = vadd.f32 1.0, %v4524_v8  ;;  %vm1252_vm12 = vmor %vm1250_vm3, %vm1251_vm2 }
 0x5b5   :  { %v1247_v17 = vsub.f32 1.0, %v1246_v11  ;;  %v5514_v50 = vadd.f32 1.0, %v4526_v32  ;;  %v4528_v29 = vpop.eup %4527 }
 0x5b6   :  { %v1173_v60 = vmul.f32 %v4520_v12, %v1172_v20  ;;  %4531 = vrcp.f32 %v5512_v41  ;;  %v4530_v45 = vpop.eup %4529  ;;  %v5522_v37 = vadd.f32 1.0, %v4528_v29  ;;  %v1196_v11 = vand.u32 2147483648, %v5512_v41 }
 0x5b7   :  { %v1248_v27 = vmul.f32 %v4522_v61, %v1247_v17  ;;  %4533 = vpow2.f32 %v4279_v63  ;;  %v5526_v26 = vadd.f32 1.0, %v4530_v45  ;;  %v1194_v15 = vand.u32 2147483647, %v5512_v41 }
 0x5b8   :  { %v1174_v44 = vadd.f32 %v4520_v12, %v1173_v60  ;;  %4535 = vrcp.f32 %v5514_v50  ;;  %vm1205_vm3 = vweird.f32 %v5514_v50  ;;  %v1209_v63 = vand.u32 2147483647, %v5514_v50 }
 0x5b9   :  { %v1249_v35 = vadd.f32 %v4522_v61, %v1248_v27  ;;  %4537 = vpow2.f32 %v4280_v0 }
 0x5ba   :  { %v1178_v13 = vsel %vm1177_vm15, %v4520_v12, %v1174_v44  ;;  %4539 = vrcp.f32 %v5522_v37  ;;  %vm1190_vm15 = vweird.f32 %v5512_v41 }
 0x5bb   :  { %v5517_v38 = vsel %vm1180_vm1, %v1182_v1, %v1178_v13  ;;  %v1253_v33 = vsel %vm1252_vm12, %v4522_v61, %v1249_v35  ;;  %4541 = vrcp.f32 %v5526_v26  ;;  %vm1195_vm12 = vcmp.eq.f32.partialorder %v1194_v15, 8.507059e+37 }
 0x5bc   :  { %v4532_v10 = vpop.eup %4531  ;;  %v5531_v48 = vsel %vm1255_vm13, %v1257_v25, %v1253_v33 }
 0x5bd   :  { %v4534_v43 = vpop.eup %4533  ;;  %v1186_v31 = vmul.f32 %v4532_v10, %v5512_v41  ;;  %vm1191_vm14 = vweird.f32 %v4532_v10  ;;  %v1197_v41 = vor.u32 1.1754944e-38, %v1196_v11 }
 0x5be   :  { %v4536_v47 = vpop.eup %4535  ;;  %v5538_v53 = vadd.f32 1.0, %v4534_v43  ;;  %vm5560_vm1 = vmor %vm1190_vm15, %vm1191_vm14  ;;  %vm1210_vm15 = vcmp.eq.f32.partialorder %v1209_v63, 8.507059e+37 }
 0x5bf   :  { %v4538_v7 = vpop.eup %4537  ;;  %v1201_v34 = vmul.f32 %v4536_v47, %v5514_v50  ;;  %v1187_v21 = vsub.f32 1.0, %v1186_v31  ;;  %vm1206_vm2 = vweird.f32 %v4536_v47 }
 0x5c0   :  { %v5541_v55 = vpop.eup %4539  ;;  %v5543_v42 = vadd.f32 1.0, %v4538_v7  ;;  %vm1207_vm13 = vmor %vm1205_vm3, %vm1206_vm2 }
 0x5c1   :  { %v1202_v56 = vsub.f32 1.0, %v1201_v34  ;;  %v5546_v59 = vpop.eup %4541  ;;  %v1188_v12 = vmul.f32 %v4532_v10, %v1187_v21  ;;  %v1216_v4 = vmul.f32 %v5541_v55, %v5522_v37  ;;  %vm1221_vm14 = vweird.f32 %v5541_v55 }
 0x5c2   :  { %v1231_v6 = vmul.f32 %v5546_v59, %v5526_v26  ;;  %vm1236_vm3 = vweird.f32 %v5546_v59  ;;  %v1284_v15 = vand.u32 2147483647, %v5543_v42 }
 0x5c3   :  { %v1189_v20 = vadd.f32 %v4532_v10, %v1188_v12  ;;  %v1217_v61 = vsub.f32 1.0, %v1216_v4  ;;  %v1271_v4 = vand.u32 2147483648, %v5538_v53 }
 0x5c4   :  { %v1232_v44 = vsub.f32 1.0, %v1231_v6 }
 0x5c5   :  { %v1193_v22 = vsel %vm5560_vm1, %v4532_v10, %v1189_v20  ;;  %v1218_v32 = vmul.f32 %v5541_v55, %v1217_v61  ;;  %vm1220_vm1 = vweird.f32 %v5522_v37  ;;  %v1224_v10 = vand.u32 2147483647, %v5522_v37 }
 0x5c6   :  { %v5573_v1 = vsel %vm1195_vm12, %v1197_v41, %v1193_v22  ;;  %v1233_v0 = vmul.f32 %v5546_v59, %v1232_v44  ;;  %vm1222_vm2 = vmor %vm1220_vm1, %vm1221_vm14  ;;  %vm1235_vm12 = vweird.f32 %v5526_v26  ;;  %v1286_v61 = vand.u32 2147483648, %v5543_v42 }
 0x5c7   :  { %v1219_v35 = vadd.f32 %v5541_v55, %v1218_v32  ;;  %vm1237_vm14 = vmor %vm1235_vm12, %vm1236_vm3  ;;  %v1272_v11 = vor.u32 1.1754944e-38, %v1271_v4 }
 0x5c8   :  { %v1287_v44 = vor.u32 1.1754944e-38, %v1286_v61 }
 0x5c9   :  { %v1223_v43 = vsel %vm1222_vm2, %v5541_v55, %v1219_v35  ;;  %vm1265_vm2 = vweird.f32 %v5538_v53 }
 0x5e8   :  { %v1051_v5 = vpop.f32.mrf.mxu3 }
 0x5e9   :  { %v5529_v46 = vadd.f32 %v1051_v5, %v1032_v3  ;;  %v1203_v5 = vmul.f32 %v4536_v47, %v1202_v56  ;;  %v1234_v3 = vadd.f32 %v5546_v59, %v1233_v0 }
 0x5eb   :  { %4543 = vtanh.f32 %v5529_v46  ;;  %v1204_v36 = vadd.f32 %v4536_v47, %v1203_v5  ;;  %v1238_v34 = vsel %vm1237_vm14, %v5546_v59, %v1234_v3  ;;  %v1269_v59 = vand.u32 2147483647, %v5538_v53 }
 0x5ec   :  { %4545 = vrcp.f32 %v5538_v53 }
 0x5ed   :  { %4547 = vrcp.f32 %v5543_v42  ;;  %v1208_v29 = vsel %vm1207_vm13, %v4536_v47, %v1204_v36  ;;  %v1241_v47 = vand.u32 2147483648, %v5526_v26  ;;  %vm1225_vm13 = vcmp.eq.f32.partialorder %v1224_v10, 8.507059e+37 }
 0x5ee   :  { %vm1270_vm14 = vcmp.eq.f32.partialorder %v1269_v59, 8.507059e+37 }
 0x5ef   :  { %v1242_v56 = vor.u32 1.1754944e-38, %v1241_v47 }
 0x5f0   :  { %v1053_v58 = vpop.f32.mrf.mxu3 }
 0x5f1   :  { %v4544_v51 = vpop.eup %4543  ;;  %v1211_v58 = vand.u32 2147483648, %v5514_v50  ;;  %v1226_v50 = vand.u32 2147483648, %v5522_v37  ;;  %v1239_v37 = vand.u32 2147483647, %v5526_v26 }
 0x5f2   :  { %v5554_v60 = vpop.eup %4545 }
 0x5f3   :  { %v5564_v17 = vpop.eup %4547  ;;  %v1261_v23 = vmul.f32 %v5554_v60, %v5538_v53  ;;  %v1212_v13 = vor.u32 1.1754944e-38, %v1211_v58  ;;  %v1227_v31 = vor.u32 1.1754944e-38, %v1226_v50  ;;  %vm1240_vm1 = vcmp.eq.f32.partialorder %v1239_v37, 8.507059e+37 }
 0x5f4   :  { %v5604_v26 = vsel %vm1240_vm1, %v1242_v56, %v1238_v34  ;;  %vm1281_vm12 = vweird.f32 %v5564_v17 }
 0x5f5   :  { %v1262_v14 = vsub.f32 1.0, %v1261_v23  ;;  %v5582_v45 = vsel %vm1210_vm15, %v1212_v13, %v1208_v29  ;;  %vm1266_vm15 = vweird.f32 %v5554_v60  ;;  %v1299_v29 = vmul.f32 %v5573_v1, %v5444_v18 }
 0x5f6   :  { %vm1267_vm3 = vmor %vm1265_vm2, %vm1266_vm15  ;;  %vm1285_vm15 = vcmp.eq.f32.partialorder %v1284_v15, 8.507059e+37  ;;  %v1302_v59 = vmul.f32 %v5604_v26, %v5431_v24 }
 0x5fa   :  { %v1315_v2 = vpop.permute.xlu2 %1314 }
 0x5fb   :  { %v1338_v30 = vmul.f32 %v1315_v2, %v5517_v38  ;;  %v1276_v2 = vmul.f32 %v5564_v17, %v5543_v42 }
 0x5fd   :  { %1354 = vrot.lane.b32.xlu1 %v1338_v30, %s4953_s0  ;;  %v1277_v25 = vsub.f32 1.0, %v1276_v2 }
 0x5ff   :  { %v1278_v21 = vmul.f32 %v5564_v17, %v1277_v25 }
 0x601   :  { %v1279_v6 = vadd.f32 %v5564_v17, %v1278_v21 }
 0x602   :  { %v1325_v52 = vpop.permute.xlu2 %1324 }
 0x603   :  { %v1343_v49 = vmul.f32 %v1325_v52, %v5531_v48  ;;  %v1263_v52 = vmul.f32 %v5554_v60, %v1262_v14 }
 0x605   :  { %1364 = vrot.lane.b32.xlu1 %v1343_v49, %s4953_s0  ;;  %v5596_v49 = vsel %vm1225_vm13, %v1227_v31, %v1223_v43  ;;  %v1264_v12 = vadd.f32 %v5554_v60, %v1263_v52  ;;  %vm1280_vm13 = vweird.f32 %v5543_v42  ;;  %v4271_v42 = vmul.f32 -1.442695, %v5529_v46 }
 0x606   :  { %vm1282_vm1 = vmor %vm1280_vm13, %vm1281_vm12 }
 0x607   :  { %v1268_v20 = vsel %vm1267_vm3, %v5554_v60, %v1264_v12  ;;  %v1283_v8 = vsel %vm1282_vm1, %v5564_v17, %v1279_v6  ;;  %4549 = vpow2.f32 %v4271_v42  ;;  %v1298_v17 = vmul.f32 %v5517_v38, %v5420_v16 }
 0x608   :  { %v5617_v53 = vsel %vm1270_vm14, %v1272_v11, %v1268_v20  ;;  %v5621_v60 = vsel %vm1285_vm15, %v1287_v44, %v1283_v8  ;;  %v1300_v12 = vmul.f32 %v5582_v45, %v5425_v19 }
 0x609   :  { %v1305_v19 = vmul.f32 %v5621_v60, %v5438_v28 }
 0x60d   :  { %1078 = vrot.lane.b32.xlu1 %v4544_v51, %s4953_s0  ;;  %v4550_v23 = vpop.eup %4549 }
 0x60e   :  { %v1059_v41 = vadd.f32 1.0, %v4550_v23 }
 0x610   :  { %4551 = vrcp.f32 %v1059_v41  ;;  %v1071_v43 = vand.u32 2147483648, %v1059_v41  ;;  %vm1065_vm3 = vweird.f32 %v1059_v41  ;;  %v1069_v47 = vand.u32 2147483647, %v1059_v41 }
 0x612   :  { %v1072_v34 = vor.u32 1.1754944e-38, %v1071_v43  ;;  %vm1070_vm13 = vcmp.eq.f32.partialorder %v1069_v47, 8.507059e+37 }
 0x614   :  { %v1317_v27 = vpop.permute.xlu0 %1316 }
 0x615   :  { %v1339_v30 = vmul.f32 %v1317_v27, %v5573_v1  ;;  %v1319_v57 = vpop.permute.xlu1 %1318 }
 0x616   :  { %v1340_v33 = vmul.f32 %v1319_v57, %v5582_v45  ;;  %v4552_v13 = vpop.eup %4551  ;;  %v1301_v57 = vmul.f32 %v5596_v49, %v5450_v39  ;;  %v1304_v39 = vmul.f32 %v5617_v53, %v5460_v40 }
 0x617   :  { %1356 = vrot.lane.b32.xlu2 %v1339_v30, %s4953_s0  ;;  %v1061_v46 = vmul.f32 %v4552_v13, %v1059_v41  ;;  %v1303_v30 = vmul.f32 %v5531_v48, %v5456_v54  ;;  %vm1066_vm2 = vweird.f32 %v4552_v13 }
 0x618   :  { %1358 = vrot.lane.b32.xlu0 %v1340_v33, %s4953_s0  ;;  %vm1067_vm12 = vmor %vm1065_vm3, %vm1066_vm2 }
 0x619   :  { %v1062_v16 = vsub.f32 1.0, %v1061_v46 }
 0x61b   :  { %v1063_v3 = vmul.f32 %v4552_v13, %v1062_v16 }
 0x61c   :  { %v1321_v7 = vpop.permute.xlu0 %1320 }
 0x61d   :  { %v1341_v55 = vmul.f32 %v1321_v7, %v5596_v49  ;;  %v1323_v51 = vpop.permute.xlu1 %1322  ;;  %v1064_v54 = vadd.f32 %v4552_v13, %v1063_v3 }
 0x61e   :  { %v1342_v5 = vmul.f32 %v1323_v51, %v5604_v26 }
 0x61f   :  { %1360 = vrot.lane.b32.xlu2 %v1341_v55, %s4953_s0  ;;  %v1068_v37 = vsel %vm1067_vm12, %v4552_v13, %v1064_v54 }
 0x620   :  { %1362 = vrot.lane.b32.xlu0 %v1342_v5, %s4953_s0  ;;  %v5656_v55 = vsel %vm1070_vm13, %v1072_v34, %v1068_v37 }
 0x624   :  { %v1327_v58 = vpop.permute.xlu0 %1326 }
 0x625   :  { %v1344_v36 = vmul.f32 %v1327_v58, %v5617_v53  ;;  %v1329_v22 = vpop.permute.xlu1 %1328 }
 0x626   :  { %v1345_v32 = vmul.f32 %v1329_v22, %v5621_v60 }
 0x627   :  { %1366 = vrot.lane.b32.xlu2 %v1344_v36, %s4953_s0  ;;  %v1076_v36 = vmul.f32 %v5656_v55, %v5469_v62 }
 0x628   :  { %1368 = vrot.lane.b32.xlu0 %v1345_v32, %s4953_s0 }
 0x66f   :  { %v1355_v63 = vpop.permute.xlu1 %1354 }
 0x670   :  { %v5629_v27 = vadd.f32 %v1355_v63, %v1298_v17 }
 0x671   :  { %v1357_v0 = vpop.permute.xlu2 %1356 }
 0x672   :  { %4553 = vtanh.f32 %v5629_v27  ;;  %v5634_v2 = vadd.f32 %v1357_v0, %v1299_v29 }
 0x674   :  { %4555 = vtanh.f32 %v5634_v2 }
 0x677   :  { %v1365_v35 = vpop.permute.xlu1 %1364 }
 0x678   :  { %v4554_v14 = vpop.eup %4553  ;;  %v5639_v50 = vadd.f32 %v1365_v35, %v1303_v30 }
 0x679   :  { %1402 = vrot.lane.b32.xlu1 %v4554_v14, %s4953_s0  ;;  %v1361_v18 = vpop.permute.xlu2 %1360 }
 0x67a   :  { %4557 = vtanh.f32 %v5639_v50  ;;  %v4556_v10 = vpop.eup %4555  ;;  %v5645_v33 = vadd.f32 %v1361_v18, %v1301_v57 }
 0x67b   :  { %1404 = vrot.lane.b32.xlu2 %v4556_v10, %s4953_s0 }
 0x67c   :  { %4559 = vtanh.f32 %v5645_v33 }
 0x67f   :  { %v1079_v21 = vpop.permute.xlu1 %1078 }
 0x680   :  { %v4558_v25 = vpop.eup %4557  ;;  %v1081_v56 = vmul.f32 %v1079_v21, %v5656_v55 }
 0x681   :  { %1412 = vrot.lane.b32.xlu1 %v4558_v25, %s4953_s0  ;;  %v1367_v52 = vpop.permute.xlu2 %1366 }
 0x682   :  { %v4560_v31 = vpop.eup %4559  ;;  %v5652_v7 = vadd.f32 %v1367_v52, %v1304_v39 }
 0x683   :  { %1408 = vrot.lane.b32.xlu2 %v4560_v31, %s4953_s0 }
 0x684   :  { %4561 = vtanh.f32 %v5652_v7 }
 0x689   :  { %1083 = vrot.lane.b32.xlu1 %v1081_v56, %s4953_s0 }
 0x68a   :  { %v4562_v40 = vpop.eup %4561  ;;  %v1359_v4 = vpop.permute.xlu0 %1358 }
 0x68b   :  { %1414 = vrot.lane.b32.xlu2 %v4562_v40, %s4953_s0  ;;  %v5663_v51 = vadd.f32 %v1359_v4, %v1300_v12 }
 0x68d   :  { %4563 = vtanh.f32 %v5663_v51 }
 0x692   :  { %v1363_v5 = vpop.permute.xlu0 %1362 }
 0x693   :  { %v4564_v6 = vpop.eup %4563  ;;  %v5668_v20 = vadd.f32 %v1363_v5, %v1302_v59 }
 0x694   :  { %1406 = vrot.lane.b32.xlu0 %v4564_v6, %s4953_s0 }
 0x695   :  { %4565 = vtanh.f32 %v5668_v20 }
 0x69a   :  { %v1369_v61 = vpop.permute.xlu0 %1368 }
 0x69b   :  { %v4566_v11 = vpop.eup %4565  ;;  %v5674_v15 = vadd.f32 %v1369_v61, %v1305_v19 }
 0x69c   :  { %1410 = vrot.lane.b32.xlu0 %v4566_v11, %s4953_s0 }
 0x69d   :  { %4567 = vtanh.f32 %v5674_v15 }
 0x6a3   :  { %v4568_v24 = vpop.eup %4567 }
 0x6a4   :  { %1416 = vrot.lane.b32.xlu0 %v4568_v24, %s4953_s0 }
 0x6d5   :  { %v1405_v22 = vpop.permute.xlu2 %1404 }
 0x6d6   :  { %v1427_v23 = vmul.f32 %v1405_v22, %v5573_v1  ;;  %v5733_v22 = vld [vmem:[%s7116_s2] sm:$0xff] }
 0x6d8   :  { %v1435_v13 = vpack.c.bf16 %v1427_v23, %v1427_v23 }
 0x6da   :  { %v1451_v30 = vunpack.c.l.b16 %v1435_v13 }
 0x6dc   :  { %v1458_v3 = vrot.slane %v1451_v30, 7  ;;  %v1554_v30 = vld [vmem:[#allocation2 + $0x2b] sm:$0x1] }
 0x6dd   :  { %v1409_v42 = vpop.permute.xlu2 %1408 }
 0x6de   :  { %v1429_v62 = vmul.f32 %v1409_v42, %v5596_v49  ;;  %v1549_v42 = vld [vmem:[#allocation2 + $0x3] sm:$0x1] }
 0x6e0   :  { %v1437_v35 = vpack.c.bf16 %v1429_v62, %v1429_v62 }
 0x6e5   :  { %v1415_v16 = vpop.permute.xlu2 %1414 }
 0x6e6   :  { %v1432_v10 = vmul.f32 %v1415_v16, %v5617_v53 }
 0x6e8   :  { %v1440_v47 = vpack.c.bf16 %v1432_v10, %v1432_v10 }
 0x6ea   :  { %v1456_v53 = vunpack.c.l.b16 %v1440_v47  ;;  %v1555_v47 = vld [vmem:[#allocation2 + $0x33] sm:$0x1] }
 0x6eb   :  { %v1403_v58 = vpop.permute.xlu1 %1402 }
 0x6ec   :  { %v1426_v17 = vmul.f32 %v1403_v58, %v5517_v38  ;;  %v1468_v59 = vrot.slane %v1456_v53, 2 }
 0x6ee   :  { %v1434_v0 = vpack.c.bf16 %v1426_v17, %v1426_v17 }
 0x6f0   :  { %v1450_v18 = vunpack.c.l.b16 %v1434_v0 }
 0x6f2   :  { %v1459_v49 = vsel %vm523_vm4, %v1458_v3, %v1450_v18  ;;  %v1552_v18 = vld [vmem:[#allocation2 + $0x1b] sm:$0x1]  ;;  %v1553_v3 = vld [vmem:[#allocation2 + $0x23] sm:$0x1] }
 0x6f3   :  { %v1413_v8 = vpop.permute.xlu1 %1412 }
 0x6f4   :  { %v1431_v14 = vmul.f32 %v1413_v8, %v5531_v48  ;;  %v5712_v8 = vld [vmem:[%s7119_s5 + $0x8] sm:$0xff] }
 0x6f6   :  { %v1439_v54 = vpack.c.bf16 %v1431_v14, %v1431_v14 }
 0x6f8   :  { %v1455_v31 = vunpack.c.l.b16 %v1439_v54 }
 0x6fa   :  { %v1466_v56 = vrot.slane %v1455_v31, 3 }
 0x6fb   :  { %v1084_v44 = vpop.permute.xlu1 %1083 }
 0x6fc   :  { %v5681_v32 = vadd.f32 %v1084_v44, %v1076_v36  ;;  %v5727_v44 = vld [vmem:[%s7116_s2 + $0x8] sm:$0xff] }
 0x6fe   :  { %4569 = vtanh.f32 %v5681_v32 }
 0x704   :  { %v4570_v28 = vpop.eup %4569 }
 0x705   :  { %1089 = vrot.lane.b32.xlu0 %v4570_v28, %s4953_s0 }
 0x706   :  { %v1407_v41 = vpop.permute.xlu0 %1406 }
 0x707   :  { %v1428_v63 = vmul.f32 %v1407_v41, %v5582_v45  ;;  %v1453_v45 = vunpack.c.l.b16 %v1437_v35 }
 0x709   :  { %v1436_v29 = vpack.c.bf16 %v1428_v63, %v1428_v63  ;;  %v1462_v52 = vrot.slane %v1453_v45, 5  ;;  %v1550_v63 = vld [vmem:[#allocation2 + $0xb] sm:$0x1] }
 0x70b   :  { %v1452_v46 = vunpack.c.l.b16 %v1436_v29  ;;  %v1551_v29 = vld [vmem:[#allocation2 + $0x13] sm:$0x1] }
 0x70d   :  { %v1460_v38 = vrot.slane %v1452_v46, 6 }
 0x70e   :  { %v1411_v57 = vpop.permute.xlu0 %1410 }
 0x70f   :  { %v1430_v1 = vmul.f32 %v1411_v57, %v5604_v26  ;;  %v1461_v39 = vsel %vm526_vm5, %v1460_v38, %v1459_v49 }
 0x710   :  { %v1463_v34 = vsel %vm529_vm6, %v1462_v52, %v1461_v39 }
 0x711   :  { %v1438_v25 = vpack.c.bf16 %v1430_v1, %v1430_v1 }
 0x713   :  { %v1454_v43 = vunpack.c.l.b16 %v1438_v25 }
 0x715   :  { %v1464_v48 = vrot.slane %v1454_v43, 4 }
 0x716   :  { %v1417_v37 = vpop.permute.xlu0 %1416 }
 0x717   :  { %v1433_v26 = vmul.f32 %v1417_v37, %v5621_v60  ;;  %v1465_v21 = vsel %vm532_vm7, %v1464_v48, %v1463_v34  ;;  %v1556_v48 = vld [vmem:[#allocation2 + $0x3b] sm:$0x1] }
 0x718   :  { %v1467_v4 = vsel %vm535_vm8, %v1466_v56, %v1465_v21 }
 0x719   :  { %v1441_v40 = vpack.c.bf16 %v1433_v26, %v1433_v26  ;;  %v1469_v6 = vsel %vm538_vm9, %v1468_v59, %v1467_v4 }
 0x71b   :  { %v1457_v12 = vunpack.c.l.b16 %v1441_v40 }
 0x71d   :  { %v1470_v5 = vrot.slane %v1457_v12, 1 }
 0x71f   :  { %v1471_v19 = vsel %vm541_vm10, %v1470_v5, %v1469_v6 }
 0x720   :  { %v1472_v61 = vpack.c.b16 %v1471_v19, %v1471_v19 }
 0x722   :  { %1473 = vrot.lane.b32.xlu2 %v1472_v61, %s4954_s17 }
 0x777   :  { %v1090_v11 = vpop.permute.xlu0 %1089 }
 0x778   :  { %v5702_v60 = vmul.f32 %v1090_v11, %v5656_v55  ;;  %v5719_v55 = vld [vmem:[%s7119_s5] sm:$0xff] }
 0x77a   :  { %v1491_v24 = vpack.c.bf16 %v5702_v60, %v5702_v60 }
 0x77c   :  { %1493 = vrot.lane.b32.xlu1 %v1491_v24, %s4954_s17  ;;  %v1474_v58 = vpop.permute.xlu2 %1473 }
 0x77d   :  { %4281 = vmatmul.msk.bf16.vlgmr.msra.gmra.mxu2 %vm158_vm11, %v1474_v58  ;;  %4284 = vmatmul.msk.bf16.vlgmr.msrb.gmra.mxu1 %vm158_vm11, %v1474_v58 }
 0x77e   :  { %2416 = vmatpush.bf16.msra.mxu2 %v5712_v8  ;;  %2872 = vmatpush.bf16.msrb.mxu1 %v5712_v8 }
 0x782   :  { %2417 = vmatpush.bf16.msra.mxu2 %v5719_v55  ;;  %2873 = vmatpush.bf16.msrb.mxu1 %v5719_v55 }
 0x7ee   :  { %v1494_v36 = vpop.permute.xlu1 %1493 }
 0x7ef   :  { %4282 = vmatmul.msk.bf16.vlgmr.msra.gmra.mxu3 %vm158_vm11, %v1494_v36 }
 0x7f0   :  { %2475 = vmatpush.bf16.msra.mxu3 %v5727_v44 }
 0x7f4   :  { %2476 = vmatpush.bf16.msra.mxu3 %v5733_v22 }
 0x7fa   :  { %v1566_v28 = vpop.f32.mrf.mxu1 }
 0x7fb   :  { %v1586_v23 = vadd.f32 %v1566_v28, %v1549_v42  ;;  %v1571_v41 = vrot.slane %v1566_v28, 1  ;;  %v1572_v17 = vrot.slane %v1566_v28, 2  ;;  %v1575_v62 = vrot.slane %v1566_v28, 5 }
 0x7fc   :  { %v1573_v35 = vrot.slane %v1566_v28, 3  ;;  %v1574_v1 = vrot.slane %v1566_v28, 4  ;;  %v1576_v25 = vrot.slane %v1566_v28, 6  ;;  %v1577_v39 = vrot.slane %v1566_v28, 7 }
 0x7fd   :  { %4571 = vtanh.f32 %v1586_v23  ;;  %v1587_v13 = vadd.f32 %v1571_v41, %v1550_v63  ;;  %v1588_v0 = vadd.f32 %v1572_v17, %v1551_v29  ;;  %v1591_v16 = vadd.f32 %v1575_v62, %v1554_v30 }
 0x7fe   :  { %v1589_v10 = vadd.f32 %v1573_v35, %v1552_v18  ;;  %v1590_v45 = vadd.f32 %v1574_v1, %v1553_v3  ;;  %v1592_v52 = vadd.f32 %v1576_v25, %v1555_v47  ;;  %v1593_v37 = vadd.f32 %v1577_v39, %v1556_v48 }
 0x7ff   :  { %4573 = vtanh.f32 %v1587_v13  ;;  %v4286_v21 = vmul.f32 -1.442695, %v1587_v13  ;;  %v4285_v5 = vmul.f32 -1.442695, %v1586_v23  ;;  %v4287_v24 = vmul.f32 -1.442695, %v1588_v0 }
 0x800   :  { %v5736_v46 = vpop.f32.mrf.mxu2  ;;  %4575 = vtanh.f32 %v1588_v0  ;;  %v4288_v56 = vmul.f32 -1.442695, %v1589_v10  ;;  %v4291_v4 = vmul.f32 -1.442695, %v1592_v52  ;;  %v4290_v58 = vmul.f32 -1.442695, %v1591_v16 }
 0x801   :  { %4577 = vtanh.f32 %v1591_v16  ;;  %v4289_v13 = vmul.f32 -1.442695, %v1590_v45  ;;  %v4292_v3 = vmul.f32 -1.442695, %v1593_v37 }
 0x802   :  { %v1568_v14 = vpop.f32.mrf.mxu1  ;;  %4579 = vtanh.f32 %v1589_v10 }
 0x803   :  { %v4572_v57 = vpop.eup %4571  ;;  %4581 = vtanh.f32 %v1590_v45 }
 0x804   :  { %1770 = vrot.lane.b32.xlu1 %v4572_v57, %s4953_s0  ;;  %4583 = vtanh.f32 %v1592_v52 }
 0x805   :  { %v4574_v38 = vpop.eup %4573  ;;  %4585 = vtanh.f32 %v1593_v37 }
 0x806   :  { %1772 = vrot.lane.b32.xlu2 %v4574_v38, %s4953_s0  ;;  %v4576_v49 = vpop.eup %4575  ;;  %4587 = vpow2.f32 %v4286_v21 }
 0x807   :  { %1774 = vrot.lane.b32.xlu0 %v4576_v49, %s4953_s0  ;;  %v4578_v43 = vpop.eup %4577  ;;  %4589 = vpow2.f32 %v4288_v56 }
 0x808   :  { %v1489_v54 = vpop.f32.mrf.mxu2  ;;  %v4580_v31 = vpop.eup %4579 }
 0x809   :  { %v4582_v34 = vpop.eup %4581 }
 0x80a   :  { %v4584_v26 = vpop.eup %4583 }
 0x80b   :  { %v4586_v53 = vpop.eup %4585 }
 0x80c   :  { %1780 = vrot.lane.b32.xlu1 %v4578_v43, %s4953_s0  ;;  %v4588_v40 = vpop.eup %4587 }
 0x80d   :  { %v1619_v12 = vadd.f32 1.0, %v4588_v40  ;;  %v4590_v59 = vpop.eup %4589 }
 0x80e   :  { %1776 = vrot.lane.b32.xlu2 %v4580_v31, %s4953_s0  ;;  %v5746_v6 = vadd.f32 1.0, %v4590_v59 }
 0x80f   :  { %1778 = vrot.lane.b32.xlu0 %v4582_v34, %s4953_s0  ;;  %4591 = vrcp.f32 %v1619_v12  ;;  %v1652_v16 = vand.u32 2147483648, %v1619_v12  ;;  %vm1646_vm1 = vweird.f32 %v1619_v12  ;;  %v1650_v14 = vand.u32 2147483647, %v1619_v12 }
 0x810   :  { %4593 = vpow2.f32 %v4291_v4  ;;  %v1682_v31 = vand.u32 2147483648, %v5746_v6  ;;  %vm1676_vm12 = vweird.f32 %v5746_v6  ;;  %v1680_v37 = vand.u32 2147483647, %v5746_v6 }
 0x811   :  { %4595 = vpow2.f32 %v4285_v5  ;;  %v1653_v45 = vor.u32 1.1754944e-38, %v1652_v16  ;;  %vm1651_vm2 = vcmp.eq.f32.partialorder %v1650_v14, 8.507059e+37 }
 0x812   :  { %4597 = vrcp.f32 %v5746_v6  ;;  %v1683_v40 = vor.u32 1.1754944e-38, %v1682_v31 }
 0x813   :  { %4599 = vpow2.f32 %v4287_v24 }
 0x814   :  { %4601 = vpow2.f32 %v4290_v58 }
 0x815   :  { %v4592_v19 = vpop.eup %4591 }
 0x816   :  { %1782 = vrot.lane.b32.xlu2 %v4584_v26, %s4953_s0  ;;  %v4594_v61 = vpop.eup %4593  ;;  %v1642_v11 = vmul.f32 %v4592_v19, %v1619_v12  ;;  %vm1647_vm14 = vweird.f32 %v4592_v19 }
 0x817   :  { %1784 = vrot.lane.b32.xlu0 %v4586_v53, %s4953_s0  ;;  %v5749_v36 = vadd.f32 1.0, %v4594_v61  ;;  %v4596_v28 = vpop.eup %4595  ;;  %vm1648_vm15 = vmor %vm1646_vm1, %vm1647_vm14  ;;  %vm1681_vm14 = vcmp.eq.f32.partialorder %v1680_v37, 8.507059e+37 }
 0x818   :  { %v1643_v42 = vsub.f32 1.0, %v1642_v11  ;;  %v4598_v41 = vpop.eup %4597  ;;  %v5753_v63 = vadd.f32 1.0, %v4596_v28 }
 0x819   :  { %4603 = vrcp.f32 %v5749_v36  ;;  %v1672_v17 = vmul.f32 %v4598_v41, %v5746_v6  ;;  %v4600_v62 = vpop.eup %4599  ;;  %vm1677_vm3 = vweird.f32 %v4598_v41  ;;  %v1727_v11 = vand.u32 2147483648, %v5749_v36 }
 0x81a   :  { %v1644_v23 = vmul.f32 %v4592_v19, %v1643_v42  ;;  %v4602_v29 = vpop.eup %4601  ;;  %4605 = vrcp.f32 %v5753_v63  ;;  %v5758_v57 = vadd.f32 1.0, %v4600_v62  ;;  %vm1678_vm13 = vmor %vm1676_vm12, %vm1677_vm3  ;;  %v1725_v28 = vand.u32 2147483647, %v5749_v36 }
 0x81b   :  { %v1673_v0 = vsub.f32 1.0, %v1672_v17  ;;  %4607 = vpow2.f32 %v4289_v13  ;;  %v5760_v18 = vadd.f32 1.0, %v4602_v29  ;;  %v1728_v13 = vor.u32 1.1754944e-38, %v1727_v11 }
 0x81c   :  { %v1645_v30 = vadd.f32 %v4592_v19, %v1644_v23  ;;  %4609 = vrcp.f32 %v5758_v57  ;;  %vm1726_vm12 = vcmp.eq.f32.partialorder %v1725_v28, 8.507059e+37  ;;  %v1635_v14 = vand.u32 2147483647, %v5753_v63 }
 0x81d   :  { %v1674_v10 = vmul.f32 %v4598_v41, %v1673_v0  ;;  %4611 = vrcp.f32 %v5760_v18  ;;  %v1665_v31 = vand.u32 2147483647, %v5758_v57 }
 0x81e   :  { %v1649_v1 = vsel %vm1648_vm15, %v4592_v19, %v1645_v30  ;;  %4613 = vpow2.f32 %v4292_v3  ;;  %vm1721_vm15 = vweird.f32 %v5749_v36 }
 0x81f   :  { %v5756_v35 = vpop.eup %4603  ;;  %v5767_v43 = vsel %vm1651_vm2, %v1653_v45, %v1649_v1  ;;  %v1675_v39 = vadd.f32 %v4598_v41, %v1674_v10 }
 0x820   :  { %v1717_v38 = vmul.f32 %v5756_v35, %v5749_v36  ;;  %v5764_v54 = vpop.eup %4605  ;;  %vm1722_vm1 = vweird.f32 %v5756_v35  ;;  %v1637_v36 = vand.u32 2147483648, %v5753_v63 }
 0x821   :  { %v4608_v25 = vpop.eup %4607  ;;  %v1627_v48 = vmul.f32 %v5764_v54, %v5753_v63  ;;  %v1679_v53 = vsel %vm1678_vm13, %v4598_v41, %v1675_v39  ;;  %vm1723_vm2 = vmor %vm1721_vm15, %vm1722_vm1  ;;  %vm1632_vm3 = vweird.f32 %v5764_v54  ;;  %vm1631_vm13 = vweird.f32 %v5753_v63 }
 0x822   :  { %v1718_v52 = vsub.f32 1.0, %v1717_v38  ;;  %v5777_v34 = vadd.f32 1.0, %v4608_v25  ;;  %v5779_v26 = vpop.eup %4609  ;;  %v5785_v59 = vsel %vm1681_vm14, %v1683_v40, %v1679_v53  ;;  %vm1633_vm14 = vmor %vm1631_vm13, %vm1632_vm3  ;;  %v1638_v45 = vor.u32 1.1754944e-38, %v1637_v36 }
 0x823   :  { %v5782_v56 = vpop.eup %4611  ;;  %v1628_v12 = vsub.f32 1.0, %v1627_v48  ;;  %v1657_v6 = vmul.f32 %v5779_v26, %v5758_v57  ;;  %vm1636_vm1 = vcmp.eq.f32.partialorder %v1635_v14, 8.507059e+37  ;;  %vm1662_vm15 = vweird.f32 %v5779_v26 }
 0x824   :  { %v1719_v21 = vmul.f32 %v5756_v35, %v1718_v52  ;;  %4615 = vrcp.f32 %v5777_v34  ;;  %v4614_v4 = vpop.eup %4613  ;;  %v1702_v58 = vmul.f32 %v5782_v56, %v5760_v18  ;;  %vm1707_vm3 = vweird.f32 %v5782_v56 }
 0x825   :  { %v1629_v24 = vmul.f32 %v5764_v54, %v1628_v12  ;;  %v5799_v42 = vadd.f32 1.0, %v4614_v4  ;;  %v1658_v41 = vsub.f32 1.0, %v1657_v6  ;;  %v1710_v53 = vand.u32 2147483647, %v5760_v18  ;;  %v5843_v6 = vld [vmem:[%s7120_s6] ss:$0 sm:$0xff] }
 0x826   :  { %v1720_v61 = vadd.f32 %v5756_v35, %v1719_v21  ;;  %v1703_v30 = vsub.f32 1.0, %v1702_v58  ;;  %v1712_v21 = vand.u32 2147483648, %v5760_v18  ;;  %vm1706_vm13 = vweird.f32 %v5760_v18 }
 0x827   :  { %v1630_v29 = vadd.f32 %v5764_v54, %v1629_v24  ;;  %4617 = vrcp.f32 %v5799_v42 }
 0x828   :  { %v1724_v17 = vsel %vm1723_vm2, %v5756_v35, %v1720_v61  ;;  %v1659_v35 = vmul.f32 %v5779_v26, %v1658_v41  ;;  %v1704_v3 = vmul.f32 %v5782_v56, %v1703_v30  ;;  %vm1661_vm2 = vweird.f32 %v5758_v57 }
 0x829   :  { %v5809_v0 = vsel %vm1726_vm12, %v1728_v13, %v1724_v17  ;;  %v1634_v38 = vsel %vm1633_vm14, %v5764_v54, %v1630_v29  ;;  %v1667_v54 = vand.u32 2147483648, %v5758_v57  ;;  %vm1663_vm12 = vmor %vm1661_vm2, %vm1662_vm15  ;;  %vm1711_vm15 = vcmp.eq.f32.partialorder %v1710_v53, 8.507059e+37 }
 0x82a   :  { %v5801_v23 = vpop.eup %4615  ;;  %v1660_v25 = vadd.f32 %v5779_v26, %v1659_v35  ;;  %v1705_v37 = vadd.f32 %v5782_v56, %v1704_v3  ;;  %vm1708_vm14 = vmor %vm1706_vm13, %vm1707_vm3  ;;  %v1713_v61 = vor.u32 1.1754944e-38, %v1712_v21  ;;  %v1697_v17 = vand.u32 2147483648, %v5777_v34 }
 0x82b   :  { %v1687_v1 = vmul.f32 %v5801_v23, %v5777_v34  ;;  %v1668_v4 = vor.u32 1.1754944e-38, %v1667_v54  ;;  %vm1692_vm2 = vweird.f32 %v5801_v23  ;;  %vm1691_vm3 = vweird.f32 %v5777_v34 }
 0x82c   :  { %v1664_v40 = vsel %vm1663_vm12, %v5779_v26, %v1660_v25  ;;  %v1488_v26 = vadd.f32 %v5843_v6, %v5736_v46  ;;  %v1695_v13 = vand.u32 2147483647, %v5777_v34  ;;  %vm1693_vm12 = vmor %vm1691_vm3, %vm1692_vm2  ;;  %v1698_v30 = vor.u32 1.1754944e-38, %v1697_v17 }
 0x82d   :  { %v1688_v63 = vsub.f32 1.0, %v1687_v1  ;;  %v1742_v34 = vand.u32 2147483648, %v5799_v42 }
 0x82e   :  { %vm1696_vm13 = vcmp.eq.f32.partialorder %v1695_v13, 8.507059e+37 }
 0x82f   :  { %v1689_v12 = vmul.f32 %v5801_v23, %v1688_v63 }
 0x831   :  { %v1690_v24 = vadd.f32 %v5801_v23, %v1689_v12 }
 0x833   :  { %v1694_v29 = vsel %vm1693_vm12, %v5801_v23, %v1690_v24  ;;  %v1740_v23 = vand.u32 2147483647, %v5799_v42 }
 0x834   :  { %v5862_v36 = vsel %vm1696_vm13, %v1698_v30, %v1694_v29 }
 0x835   :  { %vm1741_vm2 = vcmp.eq.f32.partialorder %v1740_v23, 8.507059e+37 }
 0x860   :  { %v1773_v49 = vpop.permute.xlu2 %1772 }
 0x861   :  { %v1795_v47 = vmul.f32 %v1773_v49, %v5767_v43  ;;  %v5821_v49 = vpop.eup %4617 }
 0x862   :  { %v1732_v57 = vmul.f32 %v5821_v49, %v5799_v42 }
 0x863   :  { %1812 = vrot.lane.b32.xlu1 %v1795_v47, %s4953_s0  ;;  %v5823_v47 = vsel %vm1636_vm1, %v1638_v45, %v1634_v38  ;;  %vm1666_vm1 = vcmp.eq.f32.partialorder %v1665_v31, 8.507059e+37  ;;  %v1743_v38 = vor.u32 1.1754944e-38, %v1742_v34 }
 0x868   :  { %v1777_v5 = vpop.permute.xlu2 %1776 }
 0x869   :  { %v1797_v19 = vmul.f32 %v1777_v5, %v5785_v59  ;;  %v1709_v5 = vsel %vm1708_vm14, %v5782_v56, %v1705_v37  ;;  %v1733_v56 = vsub.f32 1.0, %v1732_v57  ;;  %vm1737_vm14 = vweird.f32 %v5821_v49 }
 0x86a   :  { %v5852_v28 = vsel %vm1711_vm15, %v1713_v61, %v1709_v5 }
 0x86b   :  { %1816 = vrot.lane.b32.xlu1 %v1797_v19, %s4953_s0  ;;  %v5847_v19 = vsel %vm1666_vm1, %v1668_v4, %v1664_v40  ;;  %vm1736_vm1 = vweird.f32 %v5799_v42  ;;  %v1758_v40 = vmul.f32 %v5862_v36, %v5668_v20  ;;  %v1759_v13 = vmul.f32 %v5852_v28, %v5639_v50 }
 0x86c   :  { %vm1738_vm15 = vmor %vm1736_vm1, %vm1737_vm14  ;;  %vm4012_vm1 = vcmask 1040384  }
 0x870   :  { %v1783_v16 = vpop.permute.xlu2 %1782 }
 0x871   :  { %v1800_v10 = vmul.f32 %v1783_v16, %v5809_v0 }
 0x872   :  { %v1507_v62 = vpop.f32.mrf.mxu3 }
 0x873   :  { %1822 = vrot.lane.b32.xlu1 %v1800_v10, %s4953_s0  ;;  %v1511_v58 = vadd.f32 %v1507_v62, %v1488_v26  ;;  %v1734_v62 = vmul.f32 %v5821_v49, %v1733_v56  ;;  %v1754_v56 = vmul.f32 %v5823_v47, %v5629_v27 }
 0x875   :  { %4619 = vtanh.f32 %v1511_v58  ;;  %v1735_v35 = vadd.f32 %v5821_v49, %v1734_v62  ;;  %v4283_v63 = vmul.f32 -1.442695, %v1511_v58 }
 0x876   :  { %v1771_v39 = vpop.permute.xlu1 %1770 }
 0x877   :  { %v1794_v52 = vmul.f32 %v1771_v39, %v5823_v47  ;;  %v1739_v10 = vsel %vm1738_vm15, %v5821_v49, %v1735_v35  ;;  %v1755_v39 = vmul.f32 %v5767_v43, %v5634_v2  ;;  %4621 = vpow2.f32 %v4283_v63 }
 0x878   :  { %v5873_v3 = vsel %vm1741_vm2, %v1743_v38, %v1739_v10  ;;  %v1756_v49 = vmul.f32 %v5847_v19, %v5663_v51 }
 0x879   :  { %1810 = vrot.lane.b32.xlu0 %v1794_v52, %s4953_s0  ;;  %v1775_v18 = vpop.permute.xlu0 %1774 }
 0x87a   :  { %v1509_v48 = vpop.f32.mrf.mxu3  ;;  %v1796_v11 = vmul.f32 %v1775_v18, %v5847_v19  ;;  %v1761_v18 = vmul.f32 %v5873_v3, %v5674_v15 }
 0x87b   :  { %v4620_v1 = vpop.eup %4619  ;;  %v1757_v48 = vmul.f32 %v5785_v59, %v5645_v33  ;;  %v1760_v33 = vmul.f32 %v5809_v0, %v5652_v7 }
 0x87c   :  { %1814 = vrot.lane.b32.xlu2 %v1796_v11, %s4953_s0 }
 0x87d   :  { %v4622_v37 = vpop.eup %4621 }
 0x87e   :  { %v1781_v41 = vpop.permute.xlu1 %1780  ;;  %v1515_v57 = vadd.f32 1.0, %v4622_v37 }
 0x87f   :  { %v1799_v46 = vmul.f32 %v1781_v41, %v5852_v28 }
 0x880   :  { %v1527_v34 = vand.u32 2147483648, %v1515_v57  ;;  %vm1521_vm12 = vweird.f32 %v1515_v57  ;;  %v1525_v23 = vand.u32 2147483647, %v1515_v57 }
 0x881   :  { %1820 = vrot.lane.b32.xlu0 %v1799_v46, %s4953_s0  ;;  %v1779_v16 = vpop.permute.xlu0 %1778 }
 0x882   :  { %v1798_v14 = vmul.f32 %v1779_v16, %v5862_v36  ;;  %vm1526_vm14 = vcmp.eq.f32.partialorder %v1525_v23, 8.507059e+37 }
 0x884   :  { %1818 = vrot.lane.b32.xlu2 %v1798_v14, %s4953_s0 }
 0x889   :  { %1534 = vrot.lane.b32.xlu0 %v4620_v1, %s4953_s0  ;;  %v1785_v45 = vpop.permute.xlu0 %1784  ;;  %v1528_v1 = vor.u32 1.1754944e-38, %v1527_v34 }
 0x88a   :  { %v1801_v25 = vmul.f32 %v1785_v45, %v5873_v3 }
 0x88c   :  { %1824 = vrot.lane.b32.xlu2 %v1801_v25, %s4953_s0 }
 0x8d5   :  { %v1813_v42 = vpop.permute.xlu1 %1812 }
 0x8d6   :  { %v5879_v54 = vadd.f32 %v1813_v42, %v1755_v39  ;;  %v1815_v52 = vpop.permute.xlu2 %1814 }
 0x8d7   :  { %v5884_v31 = vadd.f32 %v1815_v52, %v1756_v49 }
 0x8d8   :  { %4623 = vtanh.f32 %v5879_v54 }
 0x8d9   :  { %4625 = vtanh.f32 %v5884_v31 }
 0x8dd   :  { %v1817_v53 = vpop.permute.xlu1 %1816 }
 0x8de   :  { %v4624_v2 = vpop.eup %4623  ;;  %v5889_v21 = vadd.f32 %v1817_v53, %v1757_v48  ;;  %v1819_v51 = vpop.permute.xlu2 %1818 }
 0x8df   :  { %1860 = vrot.lane.b32.xlu1 %v4624_v2, %s4953_s0  ;;  %v4626_v12 = vpop.eup %4625  ;;  %v5895_v4 = vadd.f32 %v1819_v51, %v1758_v40 }
 0x8e0   :  { %4627 = vtanh.f32 %v5889_v21  ;;  %1862 = vrot.lane.b32.xlu2 %v4626_v12, %s4953_s0 }
 0x8e1   :  { %4629 = vtanh.f32 %v5895_v4 }
 0x8e2   :  { %4631 = vrcp.f32 %v1515_v57 }
 0x8e5   :  { %v1823_v5 = vpop.permute.xlu1 %1822 }
 0x8e6   :  { %v4628_v26 = vpop.eup %4627  ;;  %v5901_v20 = vadd.f32 %v1823_v5, %v1760_v33  ;;  %v1825_v61 = vpop.permute.xlu2 %1824 }
 0x8e7   :  { %1864 = vrot.lane.b32.xlu1 %v4628_v26, %s4953_s0  ;;  %v4630_v11 = vpop.eup %4629  ;;  %v5907_v24 = vadd.f32 %v1825_v61, %v1761_v18 }
 0x8e8   :  { %4633 = vtanh.f32 %v5901_v20  ;;  %1866 = vrot.lane.b32.xlu2 %v4630_v11, %s4953_s0  ;;  %v4632_v58 = vpop.eup %4631 }
 0x8e9   :  { %4635 = vtanh.f32 %v5907_v24  ;;  %v1517_v17 = vmul.f32 %v4632_v58, %v1515_v57  ;;  %vm1522_vm3 = vweird.f32 %v4632_v58 }
 0x8ea   :  { %vm1523_vm13 = vmor %vm1521_vm12, %vm1522_vm3 }
 0x8eb   :  { %v1811_v7 = vpop.permute.xlu0 %1810  ;;  %v1518_v29 = vsub.f32 1.0, %v1517_v17 }
 0x8ec   :  { %v5913_v41 = vadd.f32 %v1811_v7, %v1754_v56 }
 0x8ed   :  { %v1519_v16 = vmul.f32 %v4632_v58, %v1518_v29 }
 0x8ee   :  { %4637 = vtanh.f32 %v5913_v41  ;;  %v4634_v15 = vpop.eup %4633 }
 0x8ef   :  { %1870 = vrot.lane.b32.xlu1 %v4634_v15, %s4953_s0  ;;  %v4636_v46 = vpop.eup %4635  ;;  %v1520_v14 = vadd.f32 %v4632_v58, %v1519_v16 }
 0x8f0   :  { %1872 = vrot.lane.b32.xlu2 %v4636_v46, %s4953_s0 }
 0x8f1   :  { %v1524_v50 = vsel %vm1523_vm13, %v4632_v58, %v1520_v14 }
 0x8f2   :  { %v5925_v38 = vsel %vm1526_vm14, %v1528_v1, %v1524_v50 }
 0x8f3   :  { %v1821_v27 = vpop.permute.xlu0 %1820  ;;  %v1532_v34 = vmul.f32 %v5925_v38, %v5681_v32  ;;  %v3846_v32 = vrot.slane %v5702_v60, 2 }
 0x8f4   :  { %v4638_v62 = vpop.eup %4637  ;;  %v5920_v30 = vadd.f32 %v1821_v27, %v1759_v13 }
 0x8f5   :  { %1858 = vrot.lane.b32.xlu0 %v4638_v62, %s4953_s0 }
 0x8f6   :  { %4639 = vtanh.f32 %v5920_v30 }
 0x8fb   :  { %v1535_v10 = vpop.permute.xlu0 %1534 }
 0x8fc   :  { %v4640_v35 = vpop.eup %4639  ;;  %v1537_v45 = vmul.f32 %v1535_v10, %v5925_v38 }
 0x8fd   :  { %1868 = vrot.lane.b32.xlu0 %v4640_v35, %s4953_s0 }
 0x905   :  { %1539 = vrot.lane.b32.xlu0 %v1537_v45, %s4953_s0 }
 0x93a   :  { %v1863_v63 = vpop.permute.xlu2 %1862 }
 0x93b   :  { %v1884_v52 = vmul.f32 %v1863_v63, %v5847_v19 }
 0x93d   :  { %v1892_v53 = vpack.c.bf16 %v1884_v52, %v1884_v52  ;;  %v3847_v52 = vrot.slane %v5702_v60, 3 }
 0x93f   :  { %v1908_v18 = vunpack.c.l.b16 %v1892_v53  ;;  %v3850_v53 = vrot.slane %v5702_v60, 6 }
 0x941   :  { %v1916_v58 = vrot.slane %v1908_v18, 6  ;;  %v3831_v18 = vrot.slane %v5488_v9, 2 }
 0x942   :  { %v1867_v42 = vpop.permute.xlu2 %1866 }
 0x943   :  { %v1886_v57 = vmul.f32 %v1867_v42, %v5862_v36 }
 0x945   :  { %v1894_v56 = vpack.c.bf16 %v1886_v57, %v1886_v57 }
 0x947   :  { %v1910_v46 = vunpack.c.l.b16 %v1894_v56 }
 0x949   :  { %v1920_v14 = vrot.slane %v1910_v46, 4 }
 0x94a   :  { %v1873_v33 = vpop.permute.xlu2 %1872 }
 0x951   :  { %v1861_v25 = vpop.permute.xlu1 %1860 }
 0x952   :  { %v1883_v49 = vmul.f32 %v1861_v25, %v5767_v43  ;;  %v1889_v43 = vmul.f32 %v1873_v33, %v5873_v3 }
 0x954   :  { %v1891_v48 = vpack.c.bf16 %v1883_v49, %v1883_v49  ;;  %v3845_v49 = vrot.slane %v5702_v60, 1 }
 0x956   :  { %v1907_v40 = vunpack.c.l.b16 %v1891_v48  ;;  %v3849_v48 = vrot.slane %v5702_v60, 5 }
 0x958   :  { %v1914_v19 = vrot.slane %v1907_v40, 7  ;;  %v3902_v40 = vperm.slane %v3846_v32, 0  ;;  %v3905_v57 = vperm.slane %v3849_v48, 0 }
 0x959   :  { %v1865_v39 = vpop.permute.xlu1 %1864 }
 0x95a   :  { %v1885_v37 = vmul.f32 %v1865_v39, %v5785_v59 }
 0x95c   :  { %v1893_v5 = vpack.c.bf16 %v1885_v37, %v1885_v37  ;;  %v3848_v37 = vrot.slane %v5702_v60, 4 }
 0x95e   :  { %v1909_v59 = vunpack.c.l.b16 %v1893_v5  ;;  %v3904_v33 = vperm.slane %v3848_v37, 0  ;;  %v3906_v5 = vperm.slane %v3850_v53, 0 }
 0x960   :  { %v1918_v27 = vrot.slane %v1909_v59, 5  ;;  %v3833_v59 = vrot.slane %v5488_v9, 4 }
 0x961   :  { %v1871_v51 = vpop.permute.xlu1 %1870 }
 0x962   :  { %v1888_v61 = vmul.f32 %v1871_v51, %v5809_v0  ;;  %v3901_v51 = vperm.slane %v3845_v49, 0  ;;  %v4017_v46 = vsel %vm4012_vm1, %v3833_v59, %v3904_v33  ;;  %v2006_v33 = vld [vmem:[#allocation2 + $0xc] sm:$0x1] }
 0x964   :  { %v1896_v15 = vpack.c.bf16 %v1888_v61, %v1888_v61  ;;  %v3830_v61 = vrot.slane %v5488_v9, 1 }
 0x966   :  { %v1912_v0 = vunpack.c.l.b16 %v1896_v15  ;;  %v4015_v15 = vsel %vm4012_vm1, %v3831_v18, %v3902_v40 }
 0x967   :  { %v1859_v2 = vpop.permute.xlu0 %1858 }
 0x968   :  { %v1882_v12 = vmul.f32 %v1859_v2, %v5823_v47  ;;  %v1897_v47 = vpack.c.bf16 %v1889_v43, %v1889_v43  ;;  %v1924_v23 = vrot.slane %v1912_v0, 2  ;;  %v3900_v2 = vperm.slane %v5702_v60, 0 }
 0x969   :  { %v3832_v43 = vrot.slane %v5488_v9, 3 }
 0x96a   :  { %v1890_v26 = vpack.c.bf16 %v1882_v12, %v1882_v12  ;;  %v1913_v62 = vunpack.c.l.b16 %v1897_v47  ;;  %v3903_v12 = vperm.slane %v3847_v52, 0  ;;  %v4013_v56 = vsel %vm4012_vm1, %v5488_v9, %v3900_v2 }
 0x96c   :  { %v1906_v11 = vunpack.c.l.b16 %v1890_v26  ;;  %v3851_v26 = vrot.slane %v5702_v60, 7  ;;  %v4016_v47 = vsel %vm4012_vm1, %v3832_v43, %v3903_v12 }
 0x96e   :  { %v1915_v7 = vsel %vm523_vm4, %v1914_v19, %v1906_v11  ;;  %v3834_v19 = vrot.slane %v5488_v9, 5 }
 0x96f   :  { %v1869_v17 = vpop.permute.xlu0 %1868  ;;  %v1917_v13 = vsel %vm526_vm5, %v1916_v58, %v1915_v7  ;;  %v3835_v7 = vrot.slane %v5488_v9, 6  ;;  %v3836_v58 = vrot.slane %v5488_v9, 7 }
 0x970   :  { %v1887_v36 = vmul.f32 %v1869_v17, %v5852_v28  ;;  %v1919_v3 = vsel %vm529_vm6, %v1918_v27, %v1917_v13  ;;  %v1926_v28 = vrot.slane %v1913_v62, 1  ;;  %v4014_v17 = vsel %vm4012_vm1, %v3830_v61, %v3901_v51  ;;  %v6011_v51 = vld [vmem:[%s7118_s4 + $0x8] sm:$0xff] }
 0x971   :  { %v1921_v50 = vsel %vm532_vm7, %v1920_v14, %v1919_v3  ;;  %v4019_v13 = vsel %vm4012_vm1, %v3835_v7, %v3906_v5  ;;  %v3907_v27 = vperm.slane %v3851_v26, 0  ;;  %v2007_v5 = vld [vmem:[#allocation2 + $0x14] sm:$0x1] }
 0x972   :  { %v1895_v29 = vpack.c.bf16 %v1887_v36, %v1887_v36  ;;  %v4018_v36 = vsel %vm4012_vm1, %v3834_v19, %v3905_v57 }
 0x973   :  { %v4020_v32 = vsel %vm4012_vm1, %v3836_v58, %v3907_v27  ;;  %v2008_v58 = vld [vmem:[#allocation2 + $0x1c] sm:$0x1] }
 0x974   :  { %v1911_v16 = vunpack.c.l.b16 %v1895_v29 }
 0x976   :  { %v1922_v35 = vrot.slane %v1911_v16, 3 }
 0x977   :  { %v1540_v1 = vpop.permute.xlu0 %1539 }
 0x978   :  { %v1923_v10 = vsel %vm535_vm8, %v1922_v35, %v1921_v50  ;;  %v5944_v45 = vadd.f32 %v1540_v1, %v1532_v34 }
 0x979   :  { %v1925_v25 = vsel %vm538_vm9, %v1924_v23, %v1923_v10 }
 0x97a   :  { %4641 = vtanh.f32 %v5944_v45  ;;  %v1927_v63 = vsel %vm541_vm10, %v1926_v28, %v1925_v25 }
 0x97b   :  { %v1928_v39 = vpack.c.b16 %v1927_v63, %v1927_v63 }
 0x97d   :  { %1929 = vrot.lane.b32.xlu1 %v1928_v39, %s4954_s17 }
 0x980   :  { %v4642_v42 = vpop.eup %4641 }
 0x981   :  { %1545 = vrot.lane.b32.xlu2 %v4642_v42, %s4953_s0 }
 0x9db   :  { %v1546_v11 = vpop.permute.xlu2 %1545 }
 0x9dc   :  { %v1548_v60 = vmul.f32 %v1546_v11, %v5925_v38  ;;  %v2010_v11 = vld [vmem:[#allocation2 + $0x2c] sm:$0x1] }
 0x9de   :  { %v1947_v29 = vpack.c.bf16 %v1548_v60, %v1548_v60  ;;  %v3916_v0 = vperm.slane %v1548_v60, 0  ;;  %v3854_v62 = vrot.slane %v1548_v60, 2  ;;  %v3853_v3 = vrot.slane %v1548_v60, 1 }
 0x9df   :  { %v3855_v9 = vrot.slane %v1548_v60, 3  ;;  %v3857_v16 = vrot.slane %v1548_v60, 5  ;;  %v3856_v38 = vrot.slane %v1548_v60, 4  ;;  %v3858_v14 = vrot.slane %v1548_v60, 6 }
 0x9e0   :  { %1949 = vrot.lane.b32.xlu0 %v1947_v29, %s4954_s17  ;;  %v5977_v35 = vsel %vm84_vm0, %v4013_v56, %v3916_v0  ;;  %v3918_v34 = vperm.slane %v3854_v62, 0  ;;  %v3917_v23 = vperm.slane %v3853_v3, 0  ;;  %v3859_v50 = vrot.slane %v1548_v60, 7  ;;  %v2011_v0 = vld [vmem:[#allocation2 + $0x34] sm:$0x1] }
 0x9e1   :  { %v3919_v1 = vperm.slane %v3855_v9, 0  ;;  %v3921_v28 = vperm.slane %v3857_v16, 0  ;;  %v3920_v10 = vperm.slane %v3856_v38, 0  ;;  %v3922_v25 = vperm.slane %v3858_v14, 0  ;;  %v2012_v9 = vld [vmem:[#allocation2 + $0x3c] sm:$0x1] }
 0x9e2   :  { %v5980_v63 = vsel %vm84_vm0, %v4015_v15, %v3918_v34  ;;  %v5983_v39 = vsel %vm84_vm0, %v4014_v17, %v3917_v23  ;;  %v3923_v42 = vperm.slane %v3859_v50, 0  ;;  %v2009_v17 = vld [vmem:[#allocation2 + $0x24] sm:$0x1] }
 0x9e3   :  { %v5987_v49 = vsel %vm84_vm0, %v4016_v47, %v3919_v1  ;;  %v5990_v52 = vsel %vm84_vm0, %v4018_v36, %v3921_v28  ;;  %v5993_v48 = vsel %vm84_vm0, %v4017_v46, %v3920_v10  ;;  %v5996_v37 = vsel %vm84_vm0, %v4019_v13, %v3922_v25 }
 0x9e4   :  { %v5999_v53 = vsel %vm84_vm0, %v4020_v32, %v3923_v42 }
 0x9ef   :  { %v1930_v2 = vpop.permute.xlu1 %1929 }
 0x9f0   :  { %4293 = vmatmul.msk.bf16.vlgmr.msrb.gmra.mxu2 %vm158_vm11, %v1930_v2  ;;  %4296 = vmatmul.msk.bf16.vlgmr.msrb.gmra.mxu0 %vm158_vm11, %v1930_v2 }
 0x9f1   :  { %2931 = vmatpush.bf16.msrb.mxu2 %v5727_v44  ;;  %3328 = vmatpush.bf16.msrb.mxu0 %v5712_v8  ;;  %v6017_v44 = vld [vmem:[%s7118_s4] sm:$0xff] }
 0x9f5   :  { %2932 = vmatpush.bf16.msrb.mxu2 %v5733_v22  ;;  %3329 = vmatpush.bf16.msrb.mxu0 %v5719_v55  ;;  %v2005_v22 = vld [vmem:[#allocation2 + $0x4] sm:$0x1] }
 0xa52   :  { %v1950_v40 = vpop.permute.xlu0 %1949 }
 0xa53   :  { %4294 = vmatmul.msk.bf16.vlgmr.msrb.gmra.mxu3 %vm158_vm11, %v1950_v40 }
 0xa54   :  { %3308 = vmatpush.bf16.msrb.mxu3 %v6011_v51 }
 0xa58   :  { %3309 = vmatpush.bf16.msrb.mxu3 %v6017_v44 }
 0xa6d   :  { %v2022_v8 = vpop.f32.mrf.mxu0 }
 0xa6e   :  { %v2042_v55 = vadd.f32 %v2022_v8, %v2005_v22  ;;  %v2027_v12 = vrot.slane %v2022_v8, 1  ;;  %v2028_v57 = vrot.slane %v2022_v8, 2  ;;  %v2031_v61 = vrot.slane %v2022_v8, 5 }
 0xa6f   :  { %v2029_v43 = vrot.slane %v2022_v8, 3  ;;  %v2030_v56 = vrot.slane %v2022_v8, 4  ;;  %v2032_v13 = vrot.slane %v2022_v8, 6  ;;  %v2033_v29 = vrot.slane %v2022_v8, 7 }
 0xa70   :  { %4643 = vtanh.f32 %v2042_v55  ;;  %v2043_v26 = vadd.f32 %v2027_v12, %v2006_v33  ;;  %v2044_v18 = vadd.f32 %v2028_v57, %v2007_v5  ;;  %v2047_v59 = vadd.f32 %v2031_v61, %v2010_v11 }
 0xa71   :  { %v2045_v15 = vadd.f32 %v2029_v43, %v2008_v58  ;;  %v2046_v47 = vadd.f32 %v2030_v56, %v2009_v17  ;;  %v2048_v3 = vadd.f32 %v2032_v13, %v2011_v0  ;;  %v2049_v16 = vadd.f32 %v2033_v29, %v2012_v9 }
 0xa72   :  { %4645 = vtanh.f32 %v2043_v26  ;;  %v4299_v50 = vmul.f32 -1.442695, %v2044_v18  ;;  %v4297_v32 = vmul.f32 -1.442695, %v2042_v55  ;;  %v4298_v8 = vmul.f32 -1.442695, %v2043_v26 }
 0xa73   :  { %v6020_v19 = vpop.f32.mrf.mxu2  ;;  %4647 = vtanh.f32 %v2044_v18  ;;  %v4301_v1 = vmul.f32 -1.442695, %v2046_v47  ;;  %v4304_v25 = vmul.f32 -1.442695, %v2049_v16  ;;  %v4302_v57 = vmul.f32 -1.442695, %v2047_v59 }
 0xa74   :  { %4649 = vtanh.f32 %v2047_v59  ;;  %v4300_v43 = vmul.f32 -1.442695, %v2045_v15 }
 0xa75   :  { %v2024_v7 = vpop.f32.mrf.mxu0  ;;  %4651 = vtanh.f32 %v2045_v15  ;;  %v4303_v15 = vmul.f32 -1.442695, %v2048_v3 }
 0xa76   :  { %v4644_v60 = vpop.eup %4643  ;;  %4653 = vtanh.f32 %v2046_v47 }
 0xa77   :  { %2226 = vrot.lane.b32.xlu0 %v4644_v60, %s4953_s0  ;;  %4655 = vtanh.f32 %v2048_v3 }
 0xa78   :  { %v4646_v36 = vpop.eup %4645  ;;  %4657 = vtanh.f32 %v2049_v16 }
 0xa79   :  { %v4648_v46 = vpop.eup %4647  ;;  %2228 = vrot.lane.b32.xlu1 %v4646_v36, %s4953_s0  ;;  %4659 = vpow2.f32 %v4299_v50 }
 0xa7a   :  { %2230 = vrot.lane.b32.xlu2 %v4648_v46, %s4953_s0  ;;  %v4650_v62 = vpop.eup %4649  ;;  %4661 = vpow2.f32 %v4301_v1 }
 0xa7b   :  { %v1945_v27 = vpop.f32.mrf.mxu2  ;;  %v4652_v38 = vpop.eup %4651 }
 0xa7c   :  { %v4654_v14 = vpop.eup %4653 }
 0xa7d   :  { %v4656_v34 = vpop.eup %4655 }
 0xa7e   :  { %v4658_v23 = vpop.eup %4657 }
 0xa7f   :  { %2236 = vrot.lane.b32.xlu0 %v4650_v62, %s4953_s0  ;;  %v4660_v28 = vpop.eup %4659 }
 0xa80   :  { %v2076_v10 = vadd.f32 1.0, %v4660_v28  ;;  %v4662_v42 = vpop.eup %4661 }
 0xa81   :  { %2232 = vrot.lane.b32.xlu1 %v4652_v38, %s4953_s0  ;;  %v6030_v2 = vadd.f32 1.0, %v4662_v42 }
 0xa82   :  { %2234 = vrot.lane.b32.xlu2 %v4654_v14, %s4953_s0  ;;  %4663 = vrcp.f32 %v2076_v10  ;;  %v2123_v47 = vand.u32 2147483648, %v2076_v10  ;;  %vm2117_vm15 = vweird.f32 %v2076_v10  ;;  %v2121_v36 = vand.u32 2147483647, %v2076_v10 }
 0xa83   :  { %4665 = vpow2.f32 %v4304_v25  ;;  %v2153_v28 = vand.u32 2147483648, %v6030_v2  ;;  %vm2147_vm13 = vweird.f32 %v6030_v2  ;;  %v2151_v25 = vand.u32 2147483647, %v6030_v2 }
 0xa84   :  { %4667 = vpow2.f32 %v4297_v32  ;;  %v2124_v62 = vor.u32 1.1754944e-38, %v2123_v47  ;;  %vm2122_vm3 = vcmp.eq.f32.partialorder %v2121_v36, 8.507059e+37 }
 0xa85   :  { %4669 = vrcp.f32 %v6030_v2  ;;  %vm2152_vm1 = vcmp.eq.f32.partialorder %v2151_v25, 8.507059e+37 }
 0xa86   :  { %4671 = vpow2.f32 %v4298_v8 }
 0xa87   :  { %4673 = vpow2.f32 %v4302_v57 }
 0xa88   :  { %v4664_v40 = vpop.eup %4663 }
 0xa89   :  { %2238 = vrot.lane.b32.xlu1 %v4656_v34, %s4953_s0  ;;  %v4666_v22 = vpop.eup %4665  ;;  %v2113_v12 = vmul.f32 %v4664_v40, %v2076_v10  ;;  %vm2118_vm0 = vweird.f32 %v4664_v40 }
 0xa8a   :  { %2240 = vrot.lane.b32.xlu2 %v4658_v23, %s4953_s0  ;;  %v6033_v33 = vadd.f32 1.0, %v4666_v22  ;;  %v4668_v5 = vpop.eup %4667  ;;  %vm2119_vm2 = vmor %vm2117_vm15, %vm2118_vm0  ;;  %v2154_v22 = vor.u32 1.1754944e-38, %v2153_v28 }
 0xa8b   :  { %v2114_v18 = vsub.f32 1.0, %v2113_v12  ;;  %v4670_v61 = vpop.eup %4669  ;;  %v6037_v56 = vadd.f32 1.0, %v4668_v5 }
 0xa8c   :  { %v4672_v55 = vpop.eup %4671  ;;  %4675 = vrcp.f32 %v6033_v33  ;;  %v2143_v26 = vmul.f32 %v4670_v61, %v6030_v2  ;;  %vm2148_vm12 = vweird.f32 %v4670_v61  ;;  %vm2192_vm15 = vweird.f32 %v6033_v33 }
 0xa8d   :  { %v2115_v11 = vmul.f32 %v4664_v40, %v2114_v18  ;;  %4677 = vpow2.f32 %v4300_v43  ;;  %v6039_v7 = vadd.f32 1.0, %v4672_v55  ;;  %v4674_v58 = vpop.eup %4673  ;;  %vm2149_vm14 = vmor %vm2147_vm13, %vm2148_vm12  ;;  %vm2087_vm13 = vweird.f32 %v6037_v56 }
 0xa8e   :  { %v2144_v60 = vsub.f32 1.0, %v2143_v26  ;;  %4679 = vrcp.f32 %v6037_v56  ;;  %v6047_v0 = vadd.f32 1.0, %v4674_v58  ;;  %v2198_v58 = vand.u32 2147483648, %v6033_v33 }
 0xa8f   :  { %v2116_v59 = vadd.f32 %v4664_v40, %v2115_v11  ;;  %4681 = vrcp.f32 %v6039_v7 }
 0xa90   :  { %v2145_v27 = vmul.f32 %v4670_v61, %v2144_v60  ;;  %4683 = vpow2.f32 %v4303_v15  ;;  %v2196_v15 = vand.u32 2147483647, %v6033_v33 }
 0xa91   :  { %v2120_v13 = vsel %vm2119_vm2, %v4664_v40, %v2116_v59  ;;  %4685 = vrcp.f32 %v6047_v0 }
 0xa92   :  { %v6042_v17 = vpop.eup %4675  ;;  %v6053_v16 = vsel %vm2122_vm3, %v2124_v62, %v2120_v13  ;;  %v2146_v23 = vadd.f32 %v4670_v61, %v2145_v27  ;;  %v2199_v13 = vor.u32 1.1754944e-38, %v2198_v58  ;;  %vm2197_vm12 = vcmp.eq.f32.partialorder %v2196_v15, 8.507059e+37 }
 0xa93   :  { %v4678_v46 = vpop.eup %4677  ;;  %v2188_v29 = vmul.f32 %v6042_v17, %v6033_v33  ;;  %vm2193_vm0 = vweird.f32 %v6042_v17  ;;  %v2091_v33 = vand.u32 2147483647, %v6037_v56  ;;  %v2093_v62 = vand.u32 2147483648, %v6037_v56 }
 0xa94   :  { %v6049_v9 = vpop.eup %4679  ;;  %v6051_v3 = vadd.f32 1.0, %v4678_v46  ;;  %v2150_v40 = vsel %vm2149_vm14, %v4670_v61, %v2146_v23  ;;  %vm2194_vm2 = vmor %vm2192_vm15, %vm2193_vm0  ;;  %vm2102_vm0 = vweird.f32 %v6039_v7 }
 0xa95   :  { %v6055_v14 = vpop.eup %4681  ;;  %v2189_v50 = vsub.f32 1.0, %v2188_v29  ;;  %v2083_v10 = vmul.f32 %v6049_v9, %v6037_v56  ;;  %v6075_v18 = vsel %vm2152_vm1, %v2154_v22, %v2150_v40  ;;  %vm2088_vm3 = vweird.f32 %v6049_v9 }
 0xa96   :  { %4687 = vrcp.f32 %v6051_v3  ;;  %v4684_v42 = vpop.eup %4683  ;;  %v2098_v32 = vmul.f32 %v6055_v14, %v6039_v7  ;;  %vm2103_vm14 = vweird.f32 %v6055_v14  ;;  %vm2089_vm1 = vmor %vm2087_vm13, %vm2088_vm3  ;;  %v2106_v56 = vand.u32 2147483647, %v6039_v7 }
 0xa97   :  { %v2190_v8 = vmul.f32 %v6042_v17, %v2189_v50  ;;  %v2084_v12 = vsub.f32 1.0, %v2083_v10  ;;  %v6071_v57 = vpop.eup %4685  ;;  %v6073_v5 = vadd.f32 1.0, %v4684_v42  ;;  %v2108_v10 = vand.u32 2147483648, %v6039_v7  ;;  %vm2104_vm15 = vmor %vm2102_vm0, %vm2103_vm14 }
 0xa98   :  { %v2099_v43 = vsub.f32 1.0, %v2098_v32  ;;  %v2158_v60 = vmul.f32 %v6071_v57, %v6047_v0  ;;  %v2094_v32 = vor.u32 1.1754944e-38, %v2093_v62  ;;  %vm2107_vm3 = vcmp.eq.f32.partialorder %v2106_v56, 8.507059e+37 }
 0xa99   :  { %v2191_v26 = vadd.f32 %v6042_v17, %v2190_v8  ;;  %v2085_v59 = vmul.f32 %v6049_v9, %v2084_v12  ;;  %4689 = vrcp.f32 %v6073_v5  ;;  %vm2162_vm13 = vweird.f32 %v6047_v0 }
 0xa9a   :  { %v2100_v47 = vmul.f32 %v6055_v14, %v2099_v43  ;;  %v2159_v29 = vsub.f32 1.0, %v2158_v60  ;;  %v2138_v15 = vand.u32 2147483648, %v6051_v3  ;;  %vm2132_vm0 = vweird.f32 %v6051_v3 }
 0xa9b   :  { %v2195_v46 = vsel %vm2194_vm2, %v6042_v17, %v2191_v26  ;;  %v2086_v27 = vadd.f32 %v6049_v9, %v2085_v59  ;;  %vm2092_vm2 = vcmp.eq.f32.partialorder %v2091_v33, 8.507059e+37 }
 0xa9c   :  { %v6077_v55 = vpop.eup %4687  ;;  %v2101_v23 = vadd.f32 %v6055_v14, %v2100_v47  ;;  %v2160_v42 = vmul.f32 %v6071_v57, %v2159_v29 }
 0xa9d   :  { %v2128_v36 = vmul.f32 %v6077_v55, %v6051_v3  ;;  %v2090_v25 = vsel %vm2089_vm1, %v6049_v9, %v2086_v27  ;;  %vm2133_vm14 = vweird.f32 %v6077_v55 }
 0xa9e   :  { %v2105_v40 = vsel %vm2104_vm15, %v6055_v14, %v2101_v23  ;;  %v6116_v12 = vsel %vm2092_vm2, %v2094_v32, %v2090_v25  ;;  %v2161_v43 = vadd.f32 %v6071_v57, %v2160_v42  ;;  %v2166_v14 = vand.u32 2147483647, %v6047_v0  ;;  %vm2134_vm15 = vmor %vm2132_vm0, %vm2133_vm14 }
 0xa9f   :  { %v2129_v17 = vsub.f32 1.0, %v2128_v36  ;;  %v6103_v50 = vpop.eup %4689  ;;  %v1944_v36 = vadd.f32 %v5843_v6, %v6020_v19 }
 0xaa0   :  { %v2173_v22 = vmul.f32 %v6103_v50, %v6073_v5  ;;  %vm2167_vm2 = vcmp.eq.f32.partialorder %v2166_v14, 8.507059e+37 }
 0xaa1   :  { %v2130_v8 = vmul.f32 %v6077_v55, %v2129_v17 }
 0xaa2   :  { %v2174_v60 = vsub.f32 1.0, %v2173_v22 }
 0xaa3   :  { %v2131_v59 = vadd.f32 %v6077_v55, %v2130_v8 }
 0xaa4   :  { %v2175_v27 = vmul.f32 %v6103_v50, %v2174_v60  ;;  %v2214_v60 = vmul.f32 %v6075_v18, %v5895_v4 }
 0xaa6   :  { %v2176_v19 = vadd.f32 %v6103_v50, %v2175_v27 }
 0xad4   :  { %v2231_v38 = vpop.permute.xlu2 %2230 }
 0xad5   :  { %v2252_v34 = vmul.f32 %v2231_v38, %v6053_v16  ;;  %v6099_v38 = vsel %vm2197_vm12, %v2199_v13, %v2195_v46  ;;  %vm2163_vm12 = vweird.f32 %v6071_v57  ;;  %v2135_v13 = vsel %vm2134_vm15, %v6077_v55, %v2131_v59 }
 0xad6   :  { %v6059_v1 = vpop.f32.mrf.mxu3  ;;  %vm2164_vm1 = vmor %vm2162_vm13, %vm2163_vm12  ;;  %vm2178_vm12 = vweird.f32 %v6103_v50  ;;  %vm2177_vm13 = vweird.f32 %v6073_v5  ;;  %v2181_v55 = vand.u32 2147483647, %v6073_v5  ;;  %v2217_v4 = vmul.f32 %v6099_v38, %v5907_v24 }
 0xad7   :  { %2270 = vrot.lane.b32.xlu1 %v2252_v34, %s4953_s0  ;;  %v2165_v47 = vsel %vm2164_vm1, %v6071_v57, %v2161_v43  ;;  %v1967_v29 = vadd.f32 %v6059_v1, %v1944_v36  ;;  %v2139_v57 = vor.u32 1.1754944e-38, %v2138_v15  ;;  %v2183_v1 = vand.u32 2147483648, %v6073_v5  ;;  %vm2179_vm14 = vmor %vm2177_vm13, %vm2178_vm12 }
 0xad8   :  { %v2180_v17 = vsel %vm2179_vm14, %v6103_v50, %v2176_v19  ;;  %vm2182_vm1 = vcmp.eq.f32.partialorder %v2181_v55, 8.507059e+37  ;;  %v2210_v5 = vmul.f32 %v6116_v12, %v5913_v41  ;;  %vm4029_vm12 = vcmask 1042432  }
 0xad9   :  { %4691 = vtanh.f32 %v1967_v29  ;;  %v4295_v32 = vmul.f32 -1.442695, %v1967_v29 }
 0xadb   :  { %4693 = vpow2.f32 %v4295_v32 }
 0xadc   :  { %v2235_v2 = vpop.permute.xlu2 %2234 }
 0xadd   :  { %v2254_v11 = vmul.f32 %v2235_v2, %v6075_v18  ;;  %v2109_v2 = vor.u32 1.1754944e-38, %v2108_v10 }
 0xade   :  { %v1965_v61 = vpop.f32.mrf.mxu3 }
 0xadf   :  { %2274 = vrot.lane.b32.xlu1 %v2254_v11, %s4953_s0  ;;  %v6121_v26 = vsel %vm2107_vm3, %v2109_v2, %v2105_v40  ;;  %v2168_v61 = vand.u32 2147483648, %v6047_v0  ;;  %v2136_v0 = vand.u32 2147483647, %v6051_v3  ;;  %v4692_v10 = vpop.eup %4691  ;;  %v2212_v2 = vmul.f32 %v6053_v16, %v5884_v31 }
 0xae0   :  { %v2211_v24 = vmul.f32 %v6121_v26, %v5879_v54 }
 0xae1   :  { %v2169_v46 = vor.u32 1.1754944e-38, %v2168_v61  ;;  %vm2137_vm3 = vcmp.eq.f32.partialorder %v2136_v0, 8.507059e+37  ;;  %v4694_v40 = vpop.eup %4693 }
 0xae2   :  { %v6143_v3 = vsel %vm2137_vm3, %v2139_v57, %v2135_v13  ;;  %v1971_v8 = vadd.f32 1.0, %v4694_v40 }
 0xae3   :  { %v6140_v33 = vsel %vm2167_vm2, %v2169_v46, %v2165_v47 }
 0xae4   :  { %v2241_v34 = vpop.permute.xlu2 %2240  ;;  %4695 = vrcp.f32 %v1971_v8  ;;  %v2215_v14 = vmul.f32 %v6140_v33, %v5920_v30  ;;  %v1983_v46 = vand.u32 2147483648, %v1971_v8  ;;  %vm1977_vm15 = vweird.f32 %v1971_v8 }
 0xae5   :  { %v2257_v28 = vmul.f32 %v2241_v34, %v6099_v38  ;;  %v1981_v13 = vand.u32 2147483647, %v1971_v8 }
 0xae7   :  { %2280 = vrot.lane.b32.xlu1 %v2257_v28, %s4953_s0  ;;  %v2184_v28 = vor.u32 1.1754944e-38, %v2183_v1  ;;  %vm1982_vm3 = vcmp.eq.f32.partialorder %v1981_v13, 8.507059e+37 }
 0xae9   :  { %v2227_v9 = vpop.permute.xlu0 %2226  ;;  %v6154_v25 = vsel %vm2182_vm1, %v2184_v28, %v2180_v17  ;;  %v2213_v28 = vmul.f32 %v6143_v3, %v5889_v21 }
 0xaea   :  { %v2250_v7 = vmul.f32 %v2227_v9, %v6116_v12  ;;  %v4696_v22 = vpop.eup %4695  ;;  %v2216_v54 = vmul.f32 %v6154_v25, %v5901_v20 }
 0xaeb   :  { %v2229_v11 = vpop.permute.xlu1 %2228  ;;  %vm1978_vm0 = vweird.f32 %v4696_v22 }
 0xaec   :  { %v2251_v58 = vmul.f32 %v2229_v11, %v6121_v26  ;;  %2266 = vrot.lane.b32.xlu2 %v2250_v7, %s4953_s0  ;;  %v1973_v11 = vmul.f32 %v4696_v22, %v1971_v8  ;;  %vm1979_vm2 = vmor %vm1977_vm15, %vm1978_vm0 }
 0xaee   :  { %2268 = vrot.lane.b32.xlu0 %v2251_v58, %s4953_s0  ;;  %v1974_v41 = vsub.f32 1.0, %v1973_v11 }
 0xaf0   :  { %v1975_v0 = vmul.f32 %v4696_v22, %v1974_v41 }
 0xaf1   :  { %v2237_v62 = vpop.permute.xlu0 %2236 }
 0xaf2   :  { %v2255_v34 = vmul.f32 %v2237_v62, %v6140_v33  ;;  %v1976_v30 = vadd.f32 %v4696_v22, %v1975_v0 }
 0xaf3   :  { %v2233_v23 = vpop.permute.xlu1 %2232 }
 0xaf4   :  { %v2253_v6 = vmul.f32 %v2233_v23, %v6143_v3  ;;  %2276 = vrot.lane.b32.xlu2 %v2255_v34, %s4953_s0  ;;  %v1980_v62 = vsel %vm1979_vm2, %v4696_v22, %v1976_v30  ;;  %v1984_v34 = vor.u32 1.1754944e-38, %v1983_v46 }
 0xaf6   :  { %2272 = vrot.lane.b32.xlu0 %v2253_v6, %s4953_s0  ;;  %v6188_v6 = vsel %vm1982_vm3, %v1984_v34, %v1980_v62 }
 0xaf7   :  { %v1988_v22 = vmul.f32 %v6188_v6, %v5944_v45 }
 0xafb   :  { %v2239_v56 = vpop.permute.xlu1 %2238 }
 0xafc   :  { %v2256_v42 = vmul.f32 %v2239_v56, %v6154_v25  ;;  %1990 = vrot.lane.b32.xlu2 %v4692_v10, %s4953_s0 }
 0xafe   :  { %2278 = vrot.lane.b32.xlu0 %v2256_v42, %s4953_s0 }
 0xb46   :  { %v2267_v50 = vpop.permute.xlu2 %2266 }
 0xb47   :  { %v6161_v9 = vadd.f32 %v2267_v50, %v2210_v5 }
 0xb49   :  { %4697 = vtanh.f32 %v6161_v9  ;;  %v2271_v7 = vpop.permute.xlu1 %2270 }
 0xb4a   :  { %v6166_v43 = vadd.f32 %v2271_v7, %v2212_v2 }
 0xb4c   :  { %4699 = vtanh.f32 %v6166_v43 }
 0xb4e   :  { %v2277_v61 = vpop.permute.xlu2 %2276 }
 0xb4f   :  { %v4698_v58 = vpop.eup %4697  ;;  %v6171_v59 = vadd.f32 %v2277_v61, %v2215_v14 }
 0xb50   :  { %2314 = vrot.lane.b32.xlu2 %v4698_v58, %s4953_s0 }
 0xb51   :  { %4701 = vtanh.f32 %v6171_v59  ;;  %v2275_v31 = vpop.permute.xlu1 %2274 }
 0xb52   :  { %v4700_v15 = vpop.eup %4699  ;;  %v6177_v47 = vadd.f32 %v2275_v31, %v2214_v60 }
 0xb53   :  { %2318 = vrot.lane.b32.xlu1 %v4700_v15, %s4953_s0 }
 0xb54   :  { %4703 = vtanh.f32 %v6177_v47 }
 0xb56   :  { %v1991_v23 = vpop.permute.xlu2 %1990 }
 0xb57   :  { %v4702_v36 = vpop.eup %4701  ;;  %v1993_v19 = vmul.f32 %v1991_v23, %v6188_v6 }
 0xb58   :  { %2324 = vrot.lane.b32.xlu2 %v4702_v36, %s4953_s0 }
 0xb59   :  { %v2281_v27 = vpop.permute.xlu1 %2280 }
 0xb5a   :  { %v4704_v29 = vpop.eup %4703  ;;  %v6184_v57 = vadd.f32 %v2281_v27, %v2217_v4 }
 0xb5b   :  { %2322 = vrot.lane.b32.xlu1 %v4704_v29, %s4953_s0 }
 0xb5c   :  { %4705 = vtanh.f32 %v6184_v57 }
 0xb60   :  { %v2269_v1 = vpop.permute.xlu0 %2268  ;;  %1995 = vrot.lane.b32.xlu2 %v1993_v19, %s4953_s0 }
 0xb61   :  { %v6194_v55 = vadd.f32 %v2269_v1, %v2211_v24 }
 0xb62   :  { %v4706_v17 = vpop.eup %4705 }
 0xb63   :  { %4707 = vtanh.f32 %v6194_v55  ;;  %2328 = vrot.lane.b32.xlu1 %v4706_v17, %s4953_s0 }
 0xb68   :  { %v2273_v10 = vpop.permute.xlu0 %2272 }
 0xb69   :  { %v4708_v56 = vpop.eup %4707  ;;  %v6200_v42 = vadd.f32 %v2273_v10, %v2213_v28 }
 0xb6a   :  { %2316 = vrot.lane.b32.xlu0 %v4708_v56, %s4953_s0 }
 0xb6b   :  { %4709 = vtanh.f32 %v6200_v42 }
 0xb70   :  { %v2279_v32 = vpop.permute.xlu0 %2278 }
 0xb71   :  { %v4710_v40 = vpop.eup %4709  ;;  %v6206_v8 = vadd.f32 %v2279_v32, %v2216_v54 }
 0xb72   :  { %2320 = vrot.lane.b32.xlu0 %v4710_v40, %s4953_s0 }
 0xb73   :  { %4711 = vtanh.f32 %v6206_v8 }
 0xb79   :  { %v4712_v21 = vpop.eup %4711 }
 0xb7a   :  { %2326 = vrot.lane.b32.xlu0 %v4712_v21, %s4953_s0 }
 0xbaa   :  { %v2315_v5 = vpop.permute.xlu2 %2314 }
 0xbab   :  { %v2338_v31 = vmul.f32 %v2315_v5, %v6116_v12 }
 0xbad   :  { %v2346_v30 = vpack.c.bf16 %v2338_v31, %v2338_v31 }
 0xbaf   :  { %v2362_v34 = vunpack.c.l.b16 %v2346_v30 }
 0xbb2   :  { %v2325_v50 = vpop.permute.xlu2 %2324 }
 0xbb3   :  { %v2343_v4 = vmul.f32 %v2325_v50, %v6140_v33 }
 0xbb5   :  { %v2351_v12 = vpack.c.bf16 %v2343_v4, %v2343_v4 }
 0xbb7   :  { %v2367_v10 = vunpack.c.l.b16 %v2351_v12 }
 0xbb9   :  { %v2378_v5 = vrot.slane %v2367_v10, 3  ;;  %v2462_v10 = vld [vmem:[#allocation2 + $0xd] sm:$0x1] }
 0xbba   :  { %v1996_v2 = vpop.permute.xlu2 %1995 }
 0xbbb   :  { %v6213_v7 = vadd.f32 %v1996_v2, %v1988_v22 }
 0xbbd   :  { %4713 = vtanh.f32 %v6213_v7 }
 0xbc3   :  { %v4714_v20 = vpop.eup %4713 }
 0xbc4   :  { %2001 = vrot.lane.b32.xlu1 %v4714_v20, %s4953_s0 }
 0xbc5   :  { %v2319_v11 = vpop.permute.xlu1 %2318 }
 0xbc6   :  { %v2340_v58 = vmul.f32 %v2319_v11, %v6053_v16 }
 0xbc8   :  { %v2348_v45 = vpack.c.bf16 %v2340_v58, %v2340_v58 }
 0xbca   :  { %v2364_v29 = vunpack.c.l.b16 %v2348_v45 }
 0xbcc   :  { %v2372_v24 = vrot.slane %v2364_v29, 6 }
 0xbcd   :  { %v2323_v14 = vpop.permute.xlu1 %2322 }
 0xbce   :  { %v2342_v0 = vmul.f32 %v2323_v14, %v6075_v18 }
 0xbd0   :  { %v2350_v62 = vpack.c.bf16 %v2342_v0, %v2342_v0 }
 0xbd2   :  { %v2366_v18 = vunpack.c.l.b16 %v2350_v62 }
 0xbd4   :  { %v2376_v54 = vrot.slane %v2366_v18, 4 }
 0xbd5   :  { %v2329_v46 = vpop.permute.xlu1 %2328 }
 0xbd6   :  { %v2345_v16 = vmul.f32 %v2329_v46, %v6099_v38 }
 0xbd8   :  { %v2353_v17 = vpack.c.bf16 %v2345_v16, %v2345_v16 }
 0xbda   :  { %v2369_v40 = vunpack.c.l.b16 %v2353_v17 }
 0xbdc   :  { %v2317_v61 = vpop.permute.xlu0 %2316  ;;  %v2382_v22 = vrot.slane %v2369_v40, 1 }
 0xbdd   :  { %v2339_v41 = vmul.f32 %v2317_v61, %v6121_v26 }
 0xbdf   :  { %v2347_v60 = vpack.c.bf16 %v2339_v41, %v2339_v41 }
 0xbe1   :  { %v2363_v15 = vunpack.c.l.b16 %v2347_v60 }
 0xbe3   :  { %v2370_v27 = vrot.slane %v2363_v15, 7 }
 0xbe4   :  { %v2321_v36 = vpop.permute.xlu0 %2320 }
 0xbe5   :  { %v2341_v13 = vmul.f32 %v2321_v36, %v6143_v3  ;;  %v2371_v19 = vsel %vm523_vm4, %v2370_v27, %v2362_v34 }
 0xbe6   :  { %v2373_v3 = vsel %vm526_vm5, %v2372_v24, %v2371_v19 }
 0xbe7   :  { %v2349_v26 = vpack.c.bf16 %v2341_v13, %v2341_v13 }
 0xbe9   :  { %v2365_v23 = vunpack.c.l.b16 %v2349_v26 }
 0xbeb   :  { %v2374_v1 = vrot.slane %v2365_v23, 5 }
 0xbec   :  { %v2327_v28 = vpop.permute.xlu0 %2326 }
 0xbed   :  { %v2344_v33 = vmul.f32 %v2327_v28, %v6154_v25  ;;  %v2375_v56 = vsel %vm529_vm6, %v2374_v1, %v2373_v3  ;;  %v2461_v1 = vld [vmem:[#allocation2 + $0x5] sm:$0x1] }
 0xbee   :  { %v2377_v38 = vsel %vm532_vm7, %v2376_v54, %v2375_v56  ;;  %v2463_v56 = vld [vmem:[#allocation2 + $0x15] sm:$0x1] }
 0xbef   :  { %v2352_v32 = vpack.c.bf16 %v2344_v33, %v2344_v33  ;;  %v2379_v2 = vsel %vm535_vm8, %v2378_v5, %v2377_v38  ;;  %v2466_v38 = vld [vmem:[#allocation2 + $0x2d] sm:$0x1] }
 0xbf1   :  { %v2368_v21 = vunpack.c.l.b16 %v2352_v32 }
 0xbf3   :  { %v2380_v50 = vrot.slane %v2368_v21, 2 }
 0xbf5   :  { %v2381_v20 = vsel %vm538_vm9, %v2380_v50, %v2379_v2 }
 0xbf6   :  { %v2383_v11 = vsel %vm541_vm10, %v2382_v22, %v2381_v20  ;;  %v2464_v22 = vld [vmem:[#allocation2 + $0x1d] sm:$0x1]  ;;  %v2465_v20 = vld [vmem:[#allocation2 + $0x25] sm:$0x1] }
 0xbf7   :  { %v2384_v14 = vpack.c.b16 %v2383_v11, %v2383_v11 }
 0xbf9   :  { %2385 = vrot.lane.b32.xlu0 %v2384_v14, %s4954_s17 }
 0xc36   :  { %v2002_v25 = vpop.permute.xlu1 %2001 }
 0xc37   :  { %v2004_v61 = vmul.f32 %v2002_v25, %v6188_v6 }
 0xc39   :  { %v2403_v41 = vpack.c.bf16 %v2004_v61, %v2004_v61  ;;  %v3932_v58 = vperm.slane %v2004_v61, 0  ;;  %v3862_v60 = vrot.slane %v2004_v61, 2  ;;  %v3861_v31 = vrot.slane %v2004_v61, 1 }
 0xc3a   :  { %v3863_v15 = vrot.slane %v2004_v61, 3  ;;  %v3865_v45 = vrot.slane %v2004_v61, 5  ;;  %v3864_v0 = vrot.slane %v2004_v61, 4  ;;  %v3866_v13 = vrot.slane %v2004_v61, 6 }
 0xc3b   :  { %2405 = vrot.lane.b32.xlu2 %v2403_v41, %s4954_s17  ;;  %v6237_v30 = vsel %vm4029_vm12, %v5977_v35, %v3932_v58  ;;  %v3934_v36 = vperm.slane %v3862_v60, 0  ;;  %v3933_v46 = vperm.slane %v3861_v31, 0  ;;  %v3867_v29 = vrot.slane %v2004_v61, 7  ;;  %v2467_v60 = vld [vmem:[#allocation2 + $0x35] sm:$0x1] }
 0xc3c   :  { %v3935_v4 = vperm.slane %v3863_v15, 0  ;;  %v3937_v27 = vperm.slane %v3865_v45, 0  ;;  %v3936_v6 = vperm.slane %v3864_v0, 0  ;;  %v3938_v34 = vperm.slane %v3866_v13, 0  ;;  %v2468_v31 = vld [vmem:[#allocation2 + $0x3d] sm:$0x1] }
 0xc3d   :  { %v6241_v62 = vsel %vm4029_vm12, %v5980_v63, %v3934_v36  ;;  %v6245_v26 = vsel %vm4029_vm12, %v5983_v39, %v3933_v46  ;;  %v3939_v12 = vperm.slane %v3867_v29, 0 }
 0xc3e   :  { %v6249_v35 = vsel %vm4029_vm12, %v5987_v49, %v3935_v4  ;;  %v6253_v16 = vsel %vm4029_vm12, %v5990_v52, %v3937_v27  ;;  %v6257_v23 = vsel %vm4029_vm12, %v5993_v48, %v3936_v6  ;;  %v6261_v63 = vsel %vm4029_vm12, %v5996_v37, %v3938_v34  ;;  %v4946_v49 = vld [vmem:[%s7116_s2 + $0x8] sm:$0xff]  ;;  %v4948_v48 = vld [vmem:[%s7116_s2] sm:$0xff] }
 0xc3f   :  { %v6265_v39 = vsel %vm4029_vm12, %v5999_v53, %v3939_v12  ;;  %v4947_v52 = vld [vmem:[%s7119_s5 + $0x8] sm:$0xff]  ;;  %v4949_v37 = vld [vmem:[%s7119_s5] sm:$0xff] }
 0xc40   :  { %v6295_v4 = vld [vmem:[%s7120_s6] ss:$0 sm:$0xff] }
 0xc6b   :  { %v2386_v19 = vpop.permute.xlu0 %2385 }
 0xc6c   :  { %4305 = vmatmul.msk.bf16.vlgmr.msra.gmra.mxu1 %vm158_vm11, %v2386_v19  ;;  %4308 = vmatmul.msk.bf16.vlgmr.msra.gmra.mxu3 %vm158_vm11, %v2386_v19 }
 0xc6d   :  { %3387 = vmatpush.bf16.msra.mxu1 %v4946_v49  ;;  %3784 = vmatpush.bf16.msra.mxu3 %v4947_v52 }
 0xc71   :  { %3388 = vmatpush.bf16.msra.mxu1 %v4948_v48  ;;  %3785 = vmatpush.bf16.msra.mxu3 %v4949_v37 }
 0xc95   :  { %v2406_v53 = vpop.permute.xlu2 %2405 }
 0xc96   :  { %4306 = vmatmul.msk.bf16.vlgmr.msra.gmra.mxu2 %vm158_vm11, %v2406_v53 }
 0xc97   :  { %3764 = vmatpush.bf16.msra.mxu2 %v6011_v51 }
 0xc9b   :  { %3765 = vmatpush.bf16.msra.mxu2 %v6017_v44 }
 0xce9   :  { %v2399_v24 = vpop.f32.mrf.mxu1 }
 0xcea   :  { %v2400_v27 = vadd.f32 %v6295_v4, %v2399_v24 }
 0xcef   :  { %v2478_v18 = vpop.f32.mrf.mxu3 }
 0xcf0   :  { %v2498_v17 = vadd.f32 %v2478_v18, %v2461_v1  ;;  %v2483_v28 = vrot.slane %v2478_v18, 1  ;;  %v2484_v33 = vrot.slane %v2478_v18, 2  ;;  %v2487_v54 = vrot.slane %v2478_v18, 5 }
 0xcf1   :  { %v2401_v3 = vpop.f32.mrf.mxu1  ;;  %v2485_v5 = vrot.slane %v2478_v18, 3  ;;  %v2486_v44 = vrot.slane %v2478_v18, 4  ;;  %v2488_v61 = vrot.slane %v2478_v18, 6  ;;  %v2489_v41 = vrot.slane %v2478_v18, 7 }
 0xcf2   :  { %4715 = vtanh.f32 %v2498_v17  ;;  %v2499_v32 = vadd.f32 %v2483_v28, %v2462_v10  ;;  %v2500_v40 = vadd.f32 %v2484_v33, %v2463_v56  ;;  %v2503_v21 = vadd.f32 %v2487_v54, %v2466_v38 }
 0xcf3   :  { %v2501_v2 = vadd.f32 %v2485_v5, %v2464_v22  ;;  %v2502_v11 = vadd.f32 %v2486_v44, %v2465_v20  ;;  %v2504_v15 = vadd.f32 %v2488_v61, %v2467_v60  ;;  %v2505_v45 = vadd.f32 %v2489_v41, %v2468_v31 }
 0xcf4   :  { %4717 = vtanh.f32 %v2499_v32  ;;  %v4309_v12 = vmul.f32 -1.442695, %v2498_v17  ;;  %v4314_v19 = vmul.f32 -1.442695, %v2503_v21  ;;  %v4310_v1 = vmul.f32 -1.442695, %v2499_v32 }
 0xcf5   :  { %4719 = vtanh.f32 %v2500_v40  ;;  %v4311_v28 = vmul.f32 -1.442695, %v2500_v40  ;;  %v4312_v17 = vmul.f32 -1.442695, %v2501_v2  ;;  %v4313_v56 = vmul.f32 -1.442695, %v2502_v11 }
 0xcf6   :  { %4721 = vtanh.f32 %v2503_v21 }
 0xcf7   :  { %v2480_v51 = vpop.f32.mrf.mxu3  ;;  %4723 = vtanh.f32 %v2501_v2  ;;  %v4315_v2 = vmul.f32 -1.442695, %v2504_v15 }
 0xcf8   :  { %v4716_v50 = vpop.eup %4715  ;;  %4725 = vtanh.f32 %v2502_v11 }
 0xcf9   :  { %2682 = vrot.lane.b32.xlu2 %v4716_v50, %s4953_s0  ;;  %4727 = vtanh.f32 %v2504_v15 }
 0xcfa   :  { %v4718_v14 = vpop.eup %4717  ;;  %4729 = vtanh.f32 %v2505_v45 }
 0xcfb   :  { %v4720_v25 = vpop.eup %4719  ;;  %2684 = vrot.lane.b32.xlu0 %v4718_v14, %s4953_s0  ;;  %4731 = vpow2.f32 %v4309_v12 }
 0xcfc   :  { %2686 = vrot.lane.b32.xlu1 %v4720_v25, %s4953_s0  ;;  %v4722_v58 = vpop.eup %4721  ;;  %4733 = vpow2.f32 %v4314_v19  ;;  %v4316_v25 = vmul.f32 -1.442695, %v2505_v45 }
 0xcfd   :  { %v4724_v0 = vpop.eup %4723 }
 0xcfe   :  { %v4726_v36 = vpop.eup %4725 }
 0xcff   :  { %v4728_v46 = vpop.eup %4727 }
 0xd00   :  { %v4730_v13 = vpop.eup %4729 }
 0xd01   :  { %2692 = vrot.lane.b32.xlu2 %v4722_v58, %s4953_s0  ;;  %v4732_v49 = vpop.eup %4731 }
 0xd02   :  { %v2530_v52 = vadd.f32 1.0, %v4732_v49  ;;  %v4734_v48 = vpop.eup %4733 }
 0xd03   :  { %2688 = vrot.lane.b32.xlu0 %v4724_v0, %s4953_s0  ;;  %v2535_v37 = vadd.f32 1.0, %v4734_v48 }
 0xd04   :  { %2690 = vrot.lane.b32.xlu1 %v4726_v36, %s4953_s0  ;;  %4735 = vrcp.f32 %v2530_v52  ;;  %v2549_v51 = vand.u32 2147483648, %v2530_v52  ;;  %vm2543_vm14 = vweird.f32 %v2530_v52  ;;  %v2547_v44 = vand.u32 2147483647, %v2530_v52 }
 0xd05   :  { %4737 = vrcp.f32 %v2535_v37  ;;  %v2624_v31 = vand.u32 2147483648, %v2535_v37  ;;  %vm2618_vm2 = vweird.f32 %v2535_v37  ;;  %v2622_v0 = vand.u32 2147483647, %v2535_v37 }
 0xd06   :  { %4739 = vpow2.f32 %v4310_v1  ;;  %v2550_v20 = vor.u32 1.1754944e-38, %v2549_v51  ;;  %vm2548_vm0 = vcmp.eq.f32.partialorder %v2547_v44, 8.507059e+37 }
 0xd07   :  { %4741 = vpow2.f32 %v4311_v28  ;;  %vm2623_vm12 = vcmp.eq.f32.partialorder %v2622_v0, 8.507059e+37 }
 0xd08   :  { %4743 = vpow2.f32 %v4312_v17 }
 0xd09   :  { %4745 = vpow2.f32 %v4313_v56 }
 0xd0a   :  { %v4736_v53 = vpop.eup %4735 }
 0xd0b   :  { %2694 = vrot.lane.b32.xlu0 %v4728_v46, %s4953_s0  ;;  %v2539_v18 = vmul.f32 %v4736_v53, %v2530_v52  ;;  %v4738_v24 = vpop.eup %4737  ;;  %vm2544_vm13 = vweird.f32 %v4736_v53 }
 0xd0c   :  { %2696 = vrot.lane.b32.xlu1 %v4730_v13, %s4953_s0  ;;  %v2614_v10 = vmul.f32 %v4738_v24, %v2535_v37  ;;  %v4740_v54 = vpop.eup %4739  ;;  %vm2545_vm1 = vmor %vm2543_vm14, %vm2544_vm13  ;;  %vm2619_vm15 = vweird.f32 %v4738_v24  ;;  %v2625_v13 = vor.u32 1.1754944e-38, %v2624_v31 }
 0xd0d   :  { %v2540_v3 = vsub.f32 1.0, %v2539_v18  ;;  %v4742_v5 = vpop.eup %4741  ;;  %v6300_v32 = vadd.f32 1.0, %v4740_v54  ;;  %vm2620_vm3 = vmor %vm2618_vm2, %vm2619_vm15 }
 0xd0e   :  { %v2615_v21 = vsub.f32 1.0, %v2614_v10  ;;  %v6302_v22 = vadd.f32 1.0, %v4742_v5  ;;  %v4744_v61 = vpop.eup %4743 }
 0xd0f   :  { %v2541_v33 = vmul.f32 %v4736_v53, %v2540_v3  ;;  %4747 = vrcp.f32 %v6300_v32  ;;  %v4746_v60 = vpop.eup %4745  ;;  %v6310_v15 = vadd.f32 1.0, %v4744_v61  ;;  %v2564_v5 = vand.u32 2147483648, %v6300_v32 }
 0xd10   :  { %v2616_v50 = vmul.f32 %v4738_v24, %v2615_v21  ;;  %4749 = vrcp.f32 %v6302_v22  ;;  %v6312_v45 = vadd.f32 1.0, %v4746_v60  ;;  %vm2573_vm15 = vweird.f32 %v6302_v22 }
 0xd11   :  { %v2542_v38 = vadd.f32 %v4736_v53, %v2541_v33  ;;  %4751 = vpow2.f32 %v4315_v2  ;;  %v2577_v2 = vand.u32 2147483647, %v6302_v22 }
 0xd12   :  { %v2617_v58 = vadd.f32 %v4738_v24, %v2616_v50  ;;  %4753 = vpow2.f32 %v4316_v25  ;;  %v2562_v50 = vand.u32 2147483647, %v6300_v32 }
 0xd13   :  { %v2546_v40 = vsel %vm2545_vm1, %v4736_v53, %v2542_v38  ;;  %4755 = vrcp.f32 %v6310_v15  ;;  %vm2558_vm1 = vweird.f32 %v6300_v32 }
 0xd14   :  { %v6304_v11 = vsel %vm2548_vm0, %v2550_v20, %v2546_v40  ;;  %v2621_v36 = vsel %vm2620_vm3, %v4738_v24, %v2617_v58  ;;  %4757 = vrcp.f32 %v6312_v45  ;;  %v2579_v20 = vand.u32 2147483648, %v6302_v22 }
 0xd15   :  { %v4748_v46 = vpop.eup %4747  ;;  %v2565_v58 = vor.u32 1.1754944e-38, %v2564_v5  ;;  %vm2563_vm3 = vcmp.eq.f32.partialorder %v2562_v50, 8.507059e+37 }
 0xd16   :  { %v2554_v49 = vmul.f32 %v4748_v46, %v6300_v32  ;;  %vm2559_vm13 = vweird.f32 %v4748_v46 }
 0xd17   :  { %vm2560_vm0 = vmor %vm2558_vm1, %vm2559_vm13  ;;  %vm2588_vm1 = vweird.f32 %v6310_v15 }
 0xd18   :  { %v2555_v53 = vsub.f32 1.0, %v2554_v49 }
 0xd19   :  { %v2419_v6 = vpop.f32.mrf.mxu2 }
 0xd1a   :  { %v6298_v29 = vadd.f32 %v2419_v6, %v2400_v27  ;;  %v4750_v27 = vpop.eup %4749  ;;  %v6314_v6 = vsel %vm2623_vm12, %v2625_v13, %v2621_v36  ;;  %v2556_v24 = vmul.f32 %v4748_v46, %v2555_v53  ;;  %vm2578_vm12 = vcmp.eq.f32.partialorder %v2577_v2, 8.507059e+37 }
 0xd1b   :  { %v4752_v12 = vpop.eup %4751  ;;  %v2569_v48 = vmul.f32 %v4750_v27, %v6302_v22  ;;  %vm2574_vm14 = vweird.f32 %v4750_v27  ;;  %v2580_v22 = vor.u32 1.1754944e-38, %v2579_v20  ;;  %v2592_v53 = vand.u32 2147483647, %v6310_v15 }
 0xd1c   :  { %v4754_v52 = vpop.eup %4753  ;;  %4759 = vtanh.f32 %v6298_v29  ;;  %v6323_v37 = vadd.f32 1.0, %v4752_v12  ;;  %v2557_v54 = vadd.f32 %v4748_v46, %v2556_v24  ;;  %vm6348_vm2 = vmor %vm2573_vm15, %vm2574_vm14  ;;  %vm2603_vm15 = vweird.f32 %v6312_v45 }
 0xd1d   :  { %v6325_v18 = vadd.f32 1.0, %v4754_v52  ;;  %v6327_v1 = vpop.eup %4755  ;;  %v2570_v28 = vsub.f32 1.0, %v2569_v48  ;;  %v2607_v24 = vand.u32 2147483647, %v6312_v45 }
 0xd1e   :  { %v6329_v3 = vpop.eup %4757  ;;  %4761 = vrcp.f32 %v6323_v37  ;;  %v2584_v33 = vmul.f32 %v6327_v1, %v6310_v15  ;;  %vm2589_vm13 = vweird.f32 %v6327_v1  ;;  %v2637_v2 = vand.u32 2147483647, %v6323_v37 }
 0xd1f   :  { %4763 = vrcp.f32 %v6325_v18  ;;  %v2571_v17 = vmul.f32 %v4750_v27, %v2570_v28  ;;  %v2599_v56 = vmul.f32 %v6329_v3, %v6312_v45  ;;  %vm2604_vm14 = vweird.f32 %v6329_v3 }
 0xd20   :  { %v2585_v38 = vsub.f32 1.0, %v2584_v33  ;;  %v2609_v28 = vand.u32 2147483648, %v6312_v45  ;;  %v2652_v25 = vand.u32 2147483647, %v6325_v18 }
 0xd21   :  { %v2421_v34 = vpop.f32.mrf.mxu2  ;;  %v2572_v51 = vadd.f32 %v4750_v27, %v2571_v17  ;;  %v2600_v44 = vsub.f32 1.0, %v2599_v56 }
 0xd22   :  { %v4760_v10 = vpop.eup %4759  ;;  %v2586_v61 = vmul.f32 %v6327_v1, %v2585_v38 }
 0xd23   :  { %v2576_v32 = vsel %vm6348_vm2, %v4750_v27, %v2572_v51  ;;  %v2601_v60 = vmul.f32 %v6329_v3, %v2600_v44  ;;  %vm2605_vm2 = vmor %vm2603_vm15, %vm2604_vm14  ;;  %vm2648_vm15 = vweird.f32 %v6325_v18 }
 0xd24   :  { %v6338_v21 = vpop.eup %4761  ;;  %v2587_v12 = vadd.f32 %v6327_v1, %v2586_v61 }
 0xd25   :  { %v6341_v40 = vpop.eup %4763  ;;  %v2602_v52 = vadd.f32 %v6329_v3, %v2601_v60 }
 0xd26   :  { %v2644_v31 = vmul.f32 %v6341_v40, %v6325_v18  ;;  %vm2649_vm14 = vweird.f32 %v6341_v40 }
 0xd27   :  { %v2606_v56 = vsel %vm2605_vm2, %v6329_v3, %v2602_v52  ;;  %v2639_v3 = vand.u32 2147483648, %v6323_v37  ;;  %vm2650_vm2 = vmor %vm2648_vm15, %vm2649_vm14  ;;  %vm4038_vm15 = vcmask 1043456  }
 0xd28   :  { %v2645_v48 = vsub.f32 1.0, %v2644_v31 }
 0xd53   :  { %v2683_v14 = vpop.permute.xlu2 %2682 }
 0xd54   :  { %v2706_v41 = vmul.f32 %v2683_v14, %v6304_v11  ;;  %v2561_v14 = vsel %vm2560_vm0, %v4748_v46, %v2557_v54  ;;  %v2594_v46 = vand.u32 2147483648, %v6310_v15  ;;  %vm2590_vm0 = vmor %vm2588_vm1, %vm2589_vm13  ;;  %v2646_v15 = vmul.f32 %v6341_v40, %v2645_v48 }
 0xd55   :  { %v6360_v36 = vsel %vm2563_vm3, %v2565_v58, %v2561_v14  ;;  %v2591_v33 = vsel %vm2590_vm0, %v6327_v1, %v2587_v12  ;;  %vm2593_vm3 = vcmp.eq.f32.partialorder %v2592_v53, 8.507059e+37  ;;  %v2610_v54 = vor.u32 1.1754944e-38, %v2609_v28 }
 0xd56   :  { %2722 = vrot.lane.b32.xlu1 %v2706_v41, %s4953_s0  ;;  %v2629_v41 = vmul.f32 %v6338_v21, %v6323_v37  ;;  %v2595_v17 = vor.u32 1.1754944e-38, %v2594_v46  ;;  %vm2634_vm13 = vweird.f32 %v6338_v21  ;;  %v2647_v20 = vadd.f32 %v6341_v40, %v2646_v15 }
 0xd57   :  { %vm2633_vm1 = vweird.f32 %v6323_v37  ;;  %v2654_v14 = vand.u32 2147483648, %v6325_v18  ;;  %v4307_v18 = vmul.f32 -1.442695, %v6298_v29  ;;  %v2666_v12 = vmul.f32 %v6304_v11, %v6161_v9 }
 0xd58   :  { %v6384_v38 = vsel %vm2593_vm3, %v2595_v17, %v2591_v33  ;;  %vm2635_vm0 = vmor %vm2633_vm1, %vm2634_vm13  ;;  %v2651_v58 = vsel %vm2650_vm2, %v6341_v40, %v2647_v20  ;;  %vm2638_vm3 = vcmp.eq.f32.partialorder %v2637_v2, 8.507059e+37  ;;  %v2667_v48 = vmul.f32 %v6360_v36, %v6194_v55 }
 0xd59   :  { %4765 = vpow2.f32 %v4307_v18  ;;  %v2669_v17 = vmul.f32 %v6384_v38, %v6200_v42  ;;  %v2671_v42 = vmul.f32 %v6314_v6, %v6171_v59 }
 0xd5b   :  { %v2693_v34 = vpop.permute.xlu2 %2692 }
 0xd5c   :  { %v2711_v19 = vmul.f32 %v2693_v34, %v6314_v6  ;;  %v6365_v34 = vsel %vm2578_vm12, %v2580_v22, %v2576_v32  ;;  %vm2608_vm12 = vcmp.eq.f32.partialorder %v2607_v24, 8.507059e+37  ;;  %v2655_v32 = vor.u32 1.1754944e-38, %v2654_v14 }
 0xd5d   :  { %v6387_v44 = vsel %vm2608_vm12, %v2610_v54, %v2606_v56  ;;  %vm2653_vm12 = vcmp.eq.f32.partialorder %v2652_v25, 8.507059e+37  ;;  %v2668_v2 = vmul.f32 %v6365_v34, %v6166_v43 }
 0xd5e   :  { %2732 = vrot.lane.b32.xlu1 %v2711_v19, %s4953_s0  ;;  %v2630_v19 = vsub.f32 1.0, %v2629_v41  ;;  %v2640_v41 = vor.u32 1.1754944e-38, %v2639_v3  ;;  %v6407_v22 = vsel %vm2653_vm12, %v2655_v32, %v2651_v58  ;;  %v2670_v32 = vmul.f32 %v6387_v44, %v6177_v47 }
 0xd66   :  { %2446 = vrot.lane.b32.xlu1 %v4760_v10, %s4953_s0  ;;  %v2631_v10 = vmul.f32 %v6338_v21, %v2630_v19 }
 0xd68   :  { %v2632_v1 = vadd.f32 %v6338_v21, %v2631_v10 }
 0xd6a   :  { %v2636_v61 = vsel %vm2635_vm0, %v6338_v21, %v2632_v1  ;;  %v4766_v21 = vpop.eup %4765 }
 0xd6b   :  { %v6404_v60 = vsel %vm2638_vm3, %v2640_v41, %v2636_v61  ;;  %v2427_v40 = vadd.f32 1.0, %v4766_v21 }
 0xd6c   :  { %v2672_v41 = vmul.f32 %v6404_v60, %v6206_v8 }
 0xd6d   :  { %v2685_v0 = vpop.permute.xlu0 %2684  ;;  %4767 = vrcp.f32 %v2427_v40  ;;  %v2439_v9 = vand.u32 2147483648, %v2427_v40  ;;  %vm2433_vm14 = vweird.f32 %v2427_v40  ;;  %v2437_v56 = vand.u32 2147483647, %v2427_v40 }
 0xd6e   :  { %v2707_v13 = vmul.f32 %v2685_v0, %v6360_v36  ;;  %v2687_v27 = vpop.permute.xlu1 %2686 }
 0xd6f   :  { %v2708_v49 = vmul.f32 %v2687_v27, %v6365_v34  ;;  %vm2438_vm0 = vcmp.eq.f32.partialorder %v2437_v56, 8.507059e+37 }
 0xd70   :  { %2724 = vrot.lane.b32.xlu2 %v2707_v13, %s4953_s0 }
 0xd71   :  { %2726 = vrot.lane.b32.xlu0 %v2708_v49, %s4953_s0 }
 0xd73   :  { %v4768_v13 = vpop.eup %4767 }
 0xd74   :  { %v2429_v27 = vmul.f32 %v4768_v13, %v2427_v40  ;;  %vm2434_vm13 = vweird.f32 %v4768_v13 }
 0xd75   :  { %v2689_v5 = vpop.permute.xlu0 %2688  ;;  %vm2435_vm1 = vmor %vm2433_vm14, %vm2434_vm13 }
 0xd76   :  { %v2709_v51 = vmul.f32 %v2689_v5, %v6384_v38  ;;  %v2691_v45 = vpop.permute.xlu1 %2690  ;;  %v2430_v52 = vsub.f32 1.0, %v2429_v27 }
 0xd77   :  { %v2710_v50 = vmul.f32 %v2691_v45, %v6387_v44 }
 0xd78   :  { %2728 = vrot.lane.b32.xlu2 %v2709_v51, %s4953_s0  ;;  %v2431_v28 = vmul.f32 %v4768_v13, %v2430_v52  ;;  %v2440_v51 = vor.u32 1.1754944e-38, %v2439_v9 }
 0xd79   :  { %2730 = vrot.lane.b32.xlu0 %v2710_v50, %s4953_s0 }
 0xd7a   :  { %v2432_v10 = vadd.f32 %v4768_v13, %v2431_v28 }
 0xd7c   :  { %v2436_v5 = vsel %vm2435_vm1, %v4768_v13, %v2432_v10 }
 0xd7d   :  { %v2695_v37 = vpop.permute.xlu0 %2694  ;;  %v6430_v45 = vsel %vm2438_vm0, %v2440_v51, %v2436_v5 }
 0xd7e   :  { %v2712_v31 = vmul.f32 %v2695_v37, %v6404_v60  ;;  %v2697_v0 = vpop.permute.xlu1 %2696  ;;  %v2444_v40 = vmul.f32 %v6430_v45, %v6213_v7 }
 0xd7f   :  { %v2713_v46 = vmul.f32 %v2697_v0, %v6407_v22  ;;  %v2673_v0 = vmul.f32 %v6407_v22, %v6184_v57 }
 0xd80   :  { %2734 = vrot.lane.b32.xlu2 %v2712_v31, %s4953_s0 }
 0xd81   :  { %2736 = vrot.lane.b32.xlu0 %v2713_v46, %s4953_s0 }
 0xdc8   :  { %v2723_v19 = vpop.permute.xlu1 %2722 }
 0xdc9   :  { %v6415_v49 = vadd.f32 %v2723_v19, %v2666_v12 }
 0xdca   :  { %v2725_v53 = vpop.permute.xlu2 %2724 }
 0xdcb   :  { %4769 = vtanh.f32 %v6415_v49  ;;  %v6420_v29 = vadd.f32 %v2725_v53, %v2667_v48 }
 0xdcd   :  { %4771 = vtanh.f32 %v6420_v29 }
 0xdd0   :  { %v2733_v24 = vpop.permute.xlu1 %2732 }
 0xdd1   :  { %v4770_v33 = vpop.eup %4769  ;;  %v6435_v3 = vadd.f32 %v2733_v24, %v2671_v42 }
 0xdd2   :  { %2770 = vrot.lane.b32.xlu1 %v4770_v33, %s4953_s0  ;;  %v2729_v15 = vpop.permute.xlu2 %2728 }
 0xdd3   :  { %v4772_v55 = vpop.eup %4771  ;;  %v6426_v54 = vadd.f32 %v2729_v15, %v2669_v17 }
 0xdd4   :  { %2772 = vrot.lane.b32.xlu2 %v4772_v55, %s4953_s0 }
 0xdd5   :  { %4773 = vtanh.f32 %v6426_v54 }
 0xdd6   :  { %4775 = vtanh.f32 %v6435_v3 }
 0xdd8   :  { %v2447_v1 = vpop.permute.xlu1 %2446 }
 0xdd9   :  { %v2449_v50 = vmul.f32 %v2447_v1, %v6430_v45 }
 0xdda   :  { %v2735_v59 = vpop.permute.xlu2 %2734 }
 0xddb   :  { %2451 = vrot.lane.b32.xlu0 %v2449_v50, %s4953_s0  ;;  %v4774_v20 = vpop.eup %4773  ;;  %v6448_v58 = vadd.f32 %v2735_v59, %v2672_v41 }
 0xddc   :  { %2776 = vrot.lane.b32.xlu2 %v4774_v20, %s4953_s0  ;;  %v4776_v14 = vpop.eup %4775 }
 0xde3   :  { %v2727_v25 = vpop.permute.xlu0 %2726 }
 0xde4   :  { %v6442_v61 = vadd.f32 %v2727_v25, %v2668_v2  ;;  %2780 = vrot.lane.b32.xlu2 %v4776_v14, %s4953_s0 }
 0xde6   :  { %4777 = vtanh.f32 %v6442_v61 }
 0xde7   :  { %4779 = vtanh.f32 %v6448_v58 }
 0xdeb   :  { %v2731_v37 = vpop.permute.xlu0 %2730 }
 0xdec   :  { %v4778_v31 = vpop.eup %4777  ;;  %v6452_v43 = vadd.f32 %v2731_v37, %v2670_v32 }
 0xded   :  { %2774 = vrot.lane.b32.xlu0 %v4778_v31, %s4953_s0  ;;  %v4780_v46 = vpop.eup %4779 }
 0xdee   :  { %4781 = vtanh.f32 %v6452_v43 }
 0xdf3   :  { %v2737_v8 = vpop.permute.xlu0 %2736 }
 0xdf4   :  { %v4782_v18 = vpop.eup %4781  ;;  %v6459_v21 = vadd.f32 %v2737_v8, %v2673_v0 }
 0xdf5   :  { %2778 = vrot.lane.b32.xlu1 %v4782_v18, %s4953_s0  ;;  %2782 = vrot.lane.b32.xlu0 %v4780_v46, %s4953_s0 }
 0xdf6   :  { %4783 = vtanh.f32 %v6459_v21 }
 0xdfc   :  { %v4784_v47 = vpop.eup %4783 }
 0xdfd   :  { %2784 = vrot.lane.b32.xlu1 %v4784_v47, %s4953_s0 }
 0xe2e   :  { %v2773_v57 = vpop.permute.xlu2 %2772 }
 0xe2f   :  { %v2795_v48 = vmul.f32 %v2773_v57, %v6360_v36 }
 0xe31   :  { %v2803_v33 = vpack.c.bf16 %v2795_v48, %v2795_v48 }
 0xe33   :  { %v2819_v15 = vunpack.c.l.b16 %v2803_v33 }
 0xe36   :  { %v2777_v19 = vpop.permute.xlu2 %2776 }
 0xe37   :  { %v2797_v7 = vmul.f32 %v2777_v19, %v6384_v38 }
 0xe39   :  { %v2805_v55 = vpack.c.bf16 %v2797_v7, %v2797_v7 }
 0xe3b   :  { %v2821_v20 = vunpack.c.l.b16 %v2805_v55 }
 0xe3d   :  { %v2830_v32 = vrot.slane %v2821_v20, 5 }
 0xe3e   :  { %v2781_v9 = vpop.permute.xlu2 %2780 }
 0xe3f   :  { %v2799_v5 = vmul.f32 %v2781_v9, %v6314_v6 }
 0xe41   :  { %v2807_v2 = vpack.c.bf16 %v2799_v5, %v2799_v5 }
 0xe43   :  { %v2823_v6 = vunpack.c.l.b16 %v2807_v2 }
 0xe44   :  { %v2771_v52 = vpop.permute.xlu1 %2770 }
 0xe45   :  { %v2794_v28 = vmul.f32 %v2771_v52, %v6304_v11  ;;  %v2834_v8 = vrot.slane %v2823_v6, 3 }
 0xe47   :  { %v2802_v17 = vpack.c.bf16 %v2794_v28, %v2794_v28 }
 0xe49   :  { %v2818_v42 = vunpack.c.l.b16 %v2802_v17 }
 0xe4d   :  { %v2452_v13 = vpop.permute.xlu0 %2451 }
 0xe4e   :  { %v6467_v27 = vadd.f32 %v2452_v13, %v2444_v40 }
 0xe50   :  { %4785 = vtanh.f32 %v6467_v27 }
 0xe56   :  { %v4786_v12 = vpop.eup %4785 }
 0xe57   :  { %2457 = vrot.lane.b32.xlu2 %v4786_v12, %s4953_s0 }
 0xe5f   :  { %v2775_v53 = vpop.permute.xlu0 %2774 }
 0xe60   :  { %v2796_v24 = vmul.f32 %v2775_v53, %v6365_v34  ;;  %v2826_v34 = vrot.slane %v2819_v15, 7 }
 0xe62   :  { %v2804_v10 = vpack.c.bf16 %v2796_v24, %v2796_v24  ;;  %v2827_v14 = vsel %vm523_vm4, %v2826_v34, %v2818_v42 }
 0xe64   :  { %v2820_v56 = vunpack.c.l.b16 %v2804_v10 }
 0xe66   :  { %v2828_v50 = vrot.slane %v2820_v56, 6 }
 0xe67   :  { %v2783_v51 = vpop.permute.xlu0 %2782  ;;  %v2779_v1 = vpop.permute.xlu1 %2778 }
 0xe68   :  { %v2798_v36 = vmul.f32 %v2779_v1, %v6387_v44  ;;  %v2800_v11 = vmul.f32 %v2783_v51, %v6404_v60  ;;  %v2829_v59 = vsel %vm526_vm5, %v2828_v50, %v2827_v14 }
 0xe69   :  { %v2831_v0 = vsel %vm529_vm6, %v2830_v32, %v2829_v59  ;;  %v2918_v59 = vld [vmem:[#allocation2 + $0xe] sm:$0x1] }
 0xe6a   :  { %v2806_v38 = vpack.c.bf16 %v2798_v36, %v2798_v36  ;;  %v2808_v41 = vpack.c.bf16 %v2800_v11, %v2800_v11 }
 0xe6c   :  { %v2822_v25 = vunpack.c.l.b16 %v2806_v38  ;;  %v2824_v46 = vunpack.c.l.b16 %v2808_v41  ;;  %v2917_v38 = vld [vmem:[#allocation2 + $0x6] sm:$0x1] }
 0xe6e   :  { %v2832_v37 = vrot.slane %v2822_v25, 4  ;;  %v2836_v13 = vrot.slane %v2824_v46, 2  ;;  %v2920_v46 = vld [vmem:[#allocation2 + $0x1e] sm:$0x1] }
 0xe6f   :  { %v2785_v31 = vpop.permute.xlu1 %2784 }
 0xe70   :  { %v2801_v44 = vmul.f32 %v2785_v31, %v6407_v22  ;;  %v2833_v60 = vsel %vm532_vm7, %v2832_v37, %v2831_v0 }
 0xe71   :  { %v2835_v47 = vsel %vm535_vm8, %v2834_v8, %v2833_v60 }
 0xe72   :  { %v2809_v18 = vpack.c.bf16 %v2801_v44, %v2801_v44  ;;  %v2837_v12 = vsel %vm538_vm9, %v2836_v13, %v2835_v47  ;;  %v2922_v44 = vld [vmem:[#allocation2 + $0x2e] sm:$0x1] }
 0xe74   :  { %v2825_v40 = vunpack.c.l.b16 %v2809_v18  ;;  %v2921_v18 = vld [vmem:[#allocation2 + $0x26] sm:$0x1] }
 0xe76   :  { %v2838_v57 = vrot.slane %v2825_v40, 1 }
 0xe78   :  { %v2839_v19 = vsel %vm541_vm10, %v2838_v57, %v2837_v12 }
 0xe79   :  { %v2840_v52 = vpack.c.b16 %v2839_v19, %v2839_v19 }
 0xe7b   :  { %2841 = vrot.lane.b32.xlu0 %v2840_v52, %s4954_s17 }
 0xeb1   :  { %v2458_v48 = vpop.permute.xlu2 %2457 }
 0xeb2   :  { %v2460_v22 = vmul.f32 %v2458_v48, %v6430_v45  ;;  %v2923_v48 = vld [vmem:[#allocation2 + $0x36] sm:$0x1] }
 0xeb4   :  { %v2859_v53 = vpack.c.bf16 %v2460_v22, %v2460_v22  ;;  %v3948_v28 = vperm.slane %v2460_v22, 0  ;;  %v3870_v24 = vrot.slane %v2460_v22, 2  ;;  %v3869_v33 = vrot.slane %v2460_v22, 1 }
 0xeb5   :  { %v3871_v7 = vrot.slane %v2460_v22, 3  ;;  %v3873_v10 = vrot.slane %v2460_v22, 5  ;;  %v3872_v9 = vrot.slane %v2460_v22, 4  ;;  %v3874_v55 = vrot.slane %v2460_v22, 6 }
 0xeb6   :  { %2861 = vrot.lane.b32.xlu1 %v2859_v53, %s4954_s17  ;;  %v6491_v17 = vsel %vm4038_vm15, %v6237_v30, %v3948_v28  ;;  %v3950_v56 = vperm.slane %v3870_v24, 0  ;;  %v3949_v15 = vperm.slane %v3869_v33, 0  ;;  %v3875_v1 = vrot.slane %v2460_v22, 7  ;;  %v2924_v22 = vld [vmem:[#allocation2 + $0x3e] sm:$0x1] }
 0xeb7   :  { %v3951_v5 = vperm.slane %v3871_v7, 0  ;;  %v3953_v51 = vperm.slane %v3873_v10, 0  ;;  %v3952_v45 = vperm.slane %v3872_v9, 0  ;;  %v3954_v50 = vperm.slane %v3874_v55, 0 }
 0xeb8   :  { %v6495_v42 = vsel %vm4038_vm15, %v6241_v62, %v3950_v56  ;;  %v6499_v36 = vsel %vm4038_vm15, %v6245_v26, %v3949_v15  ;;  %v3955_v20 = vperm.slane %v3875_v1, 0 }
 0xeb9   :  { %v6503_v30 = vsel %vm4038_vm15, %v6249_v35, %v3951_v5  ;;  %v6507_v11 = vsel %vm4038_vm15, %v6253_v16, %v3953_v51  ;;  %v6511_v34 = vsel %vm4038_vm15, %v6257_v23, %v3952_v45  ;;  %v6515_v62 = vsel %vm4038_vm15, %v6261_v63, %v3954_v50  ;;  %v2919_v63 = vld [vmem:[#allocation2 + $0x16] sm:$0x1] }
 0xeba   :  { %v6519_v26 = vsel %vm4038_vm15, %v6265_v39, %v3955_v20 }
 0xeed   :  { %v2842_v2 = vpop.permute.xlu0 %2841 }
 0xeee   :  { %4317 = vmatmul.msk.bf16.vlgmr.msra.gmra.mxu0 %vm158_vm11, %v2842_v2  ;;  %4320 = vmatmul.msk.bf16.vlgmr.msrb.gmra.mxu2 %vm158_vm11, %v2842_v2 }
 0xf28   :  { %v2862_v35 = vpop.permute.xlu1 %2861 }
 0xf29   :  { %4318 = vmatmul.msk.bf16.vlgmr.msrb.gmra.mxu1 %vm158_vm11, %v2862_v35 }
 0xf6b   :  { %v2855_v16 = vpop.f32.mrf.mxu0 }
 0xf6c   :  { %v2856_v56 = vadd.f32 %v6295_v4, %v2855_v16 }
 0xf71   :  { %v2934_v23 = vpop.f32.mrf.mxu2 }
 0xf72   :  { %v2939_v14 = vrot.slane %v2934_v23, 1  ;;  %v2940_v25 = vrot.slane %v2934_v23, 2  ;;  %v2954_v41 = vadd.f32 %v2934_v23, %v2917_v38  ;;  %v2943_v37 = vrot.slane %v2934_v23, 5 }
 0xf73   :  { %v2857_v32 = vpop.f32.mrf.mxu0  ;;  %v2941_v31 = vrot.slane %v2934_v23, 3  ;;  %v2942_v0 = vrot.slane %v2934_v23, 4  ;;  %v2944_v19 = vrot.slane %v2934_v23, 6  ;;  %v2945_v52 = vrot.slane %v2934_v23, 7 }
 0xf74   :  { %v2955_v6 = vadd.f32 %v2939_v14, %v2918_v59  ;;  %v2956_v39 = vadd.f32 %v2940_v25, %v2919_v63  ;;  %4787 = vtanh.f32 %v2954_v41  ;;  %v2959_v60 = vadd.f32 %v2943_v37, %v2922_v44 }
 0xf75   :  { %v2957_v47 = vadd.f32 %v2941_v31, %v2920_v46  ;;  %v2958_v13 = vadd.f32 %v2942_v0, %v2921_v18  ;;  %v2960_v53 = vadd.f32 %v2944_v19, %v2923_v48  ;;  %v2961_v24 = vadd.f32 %v2945_v52, %v2924_v22 }
 0xf76   :  { %4789 = vtanh.f32 %v2955_v6  ;;  %v4322_v5 = vmul.f32 -1.442695, %v2955_v6  ;;  %v4321_v23 = vmul.f32 -1.442695, %v2954_v41  ;;  %v4323_v38 = vmul.f32 -1.442695, %v2956_v39 }
 0xf77   :  { %4791 = vtanh.f32 %v2956_v39  ;;  %v4324_v1 = vmul.f32 -1.442695, %v2957_v47  ;;  %v4327_v2 = vmul.f32 -1.442695, %v2960_v53  ;;  %v4326_v6 = vmul.f32 -1.442695, %v2959_v60 }
 0xf78   :  { %4793 = vtanh.f32 %v2959_v60  ;;  %v4325_v31 = vmul.f32 -1.442695, %v2958_v13 }
 0xf79   :  { %v2936_v8 = vpop.f32.mrf.mxu2  ;;  %4795 = vtanh.f32 %v2957_v47 }
 0xf7a   :  { %v4788_v40 = vpop.eup %4787  ;;  %4797 = vtanh.f32 %v2958_v13 }
 0xf7b   :  { %3138 = vrot.lane.b32.xlu1 %v4788_v40, %s4953_s0  ;;  %4799 = vtanh.f32 %v2960_v53 }
 0xf7c   :  { %v4790_v57 = vpop.eup %4789  ;;  %4801 = vtanh.f32 %v2961_v24 }
 0xf7d   :  { %v4792_v12 = vpop.eup %4791  ;;  %3140 = vrot.lane.b32.xlu2 %v4790_v57, %s4953_s0  ;;  %v4328_v57 = vmul.f32 -1.442695, %v2961_v24 }
 0xf7e   :  { %3142 = vrot.lane.b32.xlu0 %v4792_v12, %s4953_s0  ;;  %v4794_v28 = vpop.eup %4793 }
 0xf7f   :  { %v4796_v33 = vpop.eup %4795 }
 0xf80   :  { %v4798_v7 = vpop.eup %4797 }
 0xf81   :  { %v4800_v10 = vpop.eup %4799 }
 0xf82   :  { %v4802_v9 = vpop.eup %4801 }
 0xf83   :  { %3148 = vrot.lane.b32.xlu1 %v4794_v28, %s4953_s0 }
 0xf85   :  { %3144 = vrot.lane.b32.xlu2 %v4796_v33, %s4953_s0 }
 0xf86   :  { %3146 = vrot.lane.b32.xlu0 %v4798_v7, %s4953_s0 }
 0xf8d   :  { %3150 = vrot.lane.b32.xlu2 %v4800_v10, %s4953_s0 }
 0xf8e   :  { %3152 = vrot.lane.b32.xlu0 %v4802_v9, %s4953_s0 }
 0xfa6   :  { %v2875_v15 = vpop.f32.mrf.mxu1 }
 0xfa7   :  { %v6533_v55 = vadd.f32 %v2875_v15, %v2856_v56 }
 0xfa9   :  { %4803 = vtanh.f32 %v6533_v55 }
 0xfaa   :  { %4805 = vpow2.f32 %v4322_v5 }
 0xfab   :  { %4807 = vpow2.f32 %v4324_v1 }
 0xfae   :  { %v2877_v51 = vpop.f32.mrf.mxu1 }
 0xfaf   :  { %v4804_v45 = vpop.eup %4803 }
 0xfb0   :  { %2902 = vrot.lane.b32.xlu1 %v4804_v45, %s4953_s0  ;;  %v4806_v50 = vpop.eup %4805 }
 0xfb1   :  { %v2987_v20 = vadd.f32 1.0, %v4806_v50  ;;  %v4808_v35 = vpop.eup %4807 }
 0xfb2   :  { %v6537_v4 = vadd.f32 1.0, %v4808_v35 }
 0xfb3   :  { %4809 = vrcp.f32 %v2987_v20  ;;  %v3020_v60 = vand.u32 2147483648, %v2987_v20  ;;  %vm3014_vm3 = vweird.f32 %v2987_v20  ;;  %v3018_v40 = vand.u32 2147483647, %v2987_v20 }
 0xfb4   :  { %4811 = vpow2.f32 %v4327_v2  ;;  %v3050_v15 = vand.u32 2147483648, %v6537_v4  ;;  %vm3044_vm1 = vweird.f32 %v6537_v4  ;;  %v3048_v51 = vand.u32 2147483647, %v6537_v4 }
 0xfb5   :  { %4813 = vrcp.f32 %v6537_v4  ;;  %v3021_v22 = vor.u32 1.1754944e-38, %v3020_v60  ;;  %vm3019_vm13 = vcmp.eq.f32.partialorder %v3018_v40, 8.507059e+37 }
 0xfb6   :  { %4815 = vpow2.f32 %v4321_v23  ;;  %v3051_v2 = vor.u32 1.1754944e-38, %v3050_v15  ;;  %vm3049_vm15 = vcmp.eq.f32.partialorder %v3048_v51, 8.507059e+37 }
 0xfb7   :  { %4817 = vpow2.f32 %v4323_v38 }
 0xfb9   :  { %v4810_v16 = vpop.eup %4809 }
 0xfba   :  { %v4812_v14 = vpop.eup %4811  ;;  %v3010_v25 = vmul.f32 %v4810_v16, %v2987_v20  ;;  %vm3015_vm2 = vweird.f32 %v4810_v16 }
 0xfbb   :  { %v6540_v59 = vadd.f32 1.0, %v4812_v14  ;;  %v4814_v32 = vpop.eup %4813  ;;  %vm3016_vm12 = vmor %vm3014_vm3, %vm3015_vm2 }
 0xfbc   :  { %v3011_v63 = vsub.f32 1.0, %v3010_v25  ;;  %v4816_v37 = vpop.eup %4815  ;;  %v3040_v44 = vmul.f32 %v4814_v32, %v6537_v4  ;;  %vm3045_vm14 = vweird.f32 %v4814_v32 }
 0xfbd   :  { %4819 = vrcp.f32 %v6540_v59  ;;  %v4818_v41 = vpop.eup %4817  ;;  %v6544_v46 = vadd.f32 1.0, %v4816_v37  ;;  %vm3046_vm0 = vmor %vm3044_vm1, %vm3045_vm14  ;;  %vm3089_vm3 = vweird.f32 %v6540_v59 }
 0xfbe   :  { %v3012_v0 = vmul.f32 %v4810_v16, %v3011_v63  ;;  %4821 = vpow2.f32 %v4326_v6  ;;  %v3041_v8 = vsub.f32 1.0, %v3040_v44  ;;  %v6546_v18 = vadd.f32 1.0, %v4818_v41 }
 0xfbf   :  { %4823 = vpow2.f32 %v4325_v31  ;;  %v3093_v31 = vand.u32 2147483647, %v6540_v59  ;;  %vm2999_vm1 = vweird.f32 %v6544_v46 }
 0xfc0   :  { %v3013_v39 = vadd.f32 %v4810_v16, %v3012_v0  ;;  %4825 = vrcp.f32 %v6544_v46  ;;  %v3042_v19 = vmul.f32 %v4814_v32, %v3041_v8 }
 0xfc1   :  { %4827 = vrcp.f32 %v6546_v18 }
 0xfc2   :  { %v3017_v12 = vsel %vm3016_vm12, %v4810_v16, %v3013_v39  ;;  %4829 = vpow2.f32 %v4328_v57  ;;  %v3043_v10 = vadd.f32 %v4814_v32, %v3042_v19  ;;  %v3003_v19 = vand.u32 2147483647, %v6544_v46 }
 0xfc3   :  { %v6548_v47 = vpop.eup %4819  ;;  %v6556_v33 = vsel %vm3019_vm13, %v3021_v22, %v3017_v12  ;;  %vm3094_vm13 = vcmp.eq.f32.partialorder %v3093_v31, 8.507059e+37 }
 0xfc4   :  { %v4822_v13 = vpop.eup %4821  ;;  %v3085_v52 = vmul.f32 %v6548_v47, %v6540_v59  ;;  %v3047_v1 = vsel %vm3046_vm0, %v4814_v32, %v3043_v10  ;;  %vm3090_vm2 = vweird.f32 %v6548_v47  ;;  %v3095_v32 = vand.u32 2147483648, %v6540_v59 }
 0xfc5   :  { %v4824_v48 = vpop.eup %4823  ;;  %v6554_v53 = vadd.f32 1.0, %v4822_v13  ;;  %v6576_v16 = vsel %vm3049_vm15, %v3051_v2, %v3047_v1  ;;  %vm3091_vm12 = vmor %vm3089_vm3, %vm3090_vm2  ;;  %vm3029_vm2 = vweird.f32 %v6546_v18  ;;  %v3033_v10 = vand.u32 2147483647, %v6546_v18 }
 0xfc6   :  { %v6558_v7 = vpop.eup %4825  ;;  %v3086_v9 = vsub.f32 1.0, %v3085_v52  ;;  %v6561_v56 = vadd.f32 1.0, %v4824_v48  ;;  %v3096_v39 = vor.u32 1.1754944e-38, %v3095_v32 }
 0xfc7   :  { %v6564_v5 = vpop.eup %4827  ;;  %4831 = vrcp.f32 %v6554_v53  ;;  %v2995_v45 = vmul.f32 %v6558_v7, %v6544_v46  ;;  %vm3000_vm14 = vweird.f32 %v6558_v7 }
 0xfc8   :  { %v3087_v50 = vmul.f32 %v6548_v47, %v3086_v9  ;;  %4833 = vrcp.f32 %v6561_v56  ;;  %v4830_v20 = vpop.eup %4829  ;;  %v3025_v35 = vmul.f32 %v6564_v5, %v6546_v18  ;;  %vm3030_vm0 = vweird.f32 %v6564_v5  ;;  %vm3001_vm15 = vmor %vm2999_vm1, %vm3000_vm14 }
 0xfc9   :  { %v2996_v23 = vsub.f32 1.0, %v2995_v45  ;;  %v6583_v63 = vadd.f32 1.0, %v4830_v20  ;;  %vm3031_vm3 = vmor %vm3029_vm2, %vm3030_vm0  ;;  %vm3074_vm1 = vweird.f32 %v6554_v53  ;;  %v3065_v32 = vand.u32 2147483648, %v6561_v56 }
 0xfca   :  { %v3088_v25 = vadd.f32 %v6548_v47, %v3087_v50  ;;  %v3026_v6 = vsub.f32 1.0, %v3025_v35  ;;  %vm3059_vm2 = vweird.f32 %v6561_v56 }
 0xfcb   :  { %v2997_v0 = vmul.f32 %v6558_v7, %v2996_v23  ;;  %4835 = vrcp.f32 %v6583_v63 }
 0xfcc   :  { %v3092_v41 = vsel %vm3091_vm12, %v6548_v47, %v3088_v25  ;;  %v3027_v8 = vmul.f32 %v6564_v5, %v3026_v6  ;;  %v3005_v47 = vand.u32 2147483648, %v6544_v46  ;;  %vm3004_vm12 = vcmp.eq.f32.partialorder %v3003_v19, 8.507059e+37 }
 0xfcd   :  { %v6578_v38 = vpop.eup %4831  ;;  %v6599_v40 = vsel %vm3094_vm13, %v3096_v39, %v3092_v41  ;;  %v2998_v13 = vadd.f32 %v6558_v7, %v2997_v0  ;;  %vm3034_vm13 = vcmp.eq.f32.partialorder %v3033_v10, 8.507059e+37  ;;  %v4319_v6 = vmul.f32 -1.442695, %v6533_v55 }
 0xfce   :  { %v6586_v37 = vpop.eup %4833  ;;  %v3070_v44 = vmul.f32 %v6578_v38, %v6554_v53  ;;  %v3028_v52 = vadd.f32 %v6564_v5, %v3027_v8  ;;  %v3006_v9 = vor.u32 1.1754944e-38, %v3005_v47  ;;  %vm3075_vm14 = vweird.f32 %v6578_v38 }
 0xfcf   :  { %v3055_v60 = vmul.f32 %v6586_v37, %v6561_v56  ;;  %vm3060_vm0 = vweird.f32 %v6586_v37  ;;  %4837 = vpow2.f32 %v4319_v6  ;;  %v3128_v6 = vmul.f32 %v6599_v40, %v6448_v58 }
 0xfd0   :  { %v3071_v57 = vsub.f32 1.0, %v3070_v44  ;;  %v3032_v15 = vsel %vm3031_vm3, %v6564_v5, %v3028_v52  ;;  %v3078_v5 = vand.u32 2147483647, %v6554_v53  ;;  %vm3061_vm3 = vmor %vm3059_vm2, %vm3060_vm0 }
 0xfd1   :  { %v3056_v48 = vsub.f32 1.0, %v3055_v60  ;;  %v6609_v22 = vpop.eup %4835  ;;  %v3066_v60 = vor.u32 1.1754944e-38, %v3065_v32 }
 0xfd2   :  { %v3072_v46 = vmul.f32 %v6578_v38, %v3071_v57  ;;  %v3100_v45 = vmul.f32 %v6609_v22, %v6583_v63  ;;  %v3108_v57 = vand.u32 2147483647, %v6583_v63 }
 0xfd3   :  { %v3057_v51 = vmul.f32 %v6586_v37, %v3056_v48 }
 0xfd4   :  { %v3101_v25 = vsub.f32 1.0, %v3100_v45 }
 0xfd6   :  { %v3102_v41 = vmul.f32 %v6609_v22, %v3101_v25 }
 0xfd7   :  { %v3141_v28 = vpop.permute.xlu2 %3140 }
 0xfd8   :  { %v3163_v24 = vmul.f32 %v3141_v28, %v6556_v33  ;;  %v3035_v28 = vand.u32 2147483648, %v6546_v18  ;;  %v3073_v18 = vadd.f32 %v6578_v38, %v3072_v46 }
 0xfda   :  { %3180 = vrot.lane.b32.xlu2 %v3163_v24, %s4953_s0  ;;  %v3002_v24 = vsel %vm3001_vm15, %v6558_v7, %v2998_v13  ;;  %v3036_v7 = vor.u32 1.1754944e-38, %v3035_v28  ;;  %vm3076_vm15 = vmor %vm3074_vm1, %vm3075_vm14  ;;  %v3103_v13 = vadd.f32 %v6609_v22, %v3102_v41  ;;  %vm3105_vm14 = vweird.f32 %v6609_v22 }
 0xfdb   :  { %v6621_v1 = vsel %vm3004_vm12, %v3006_v9, %v3002_v24  ;;  %v3077_v31 = vsel %vm3076_vm15, %v6578_v38, %v3073_v18  ;;  %vm3079_vm12 = vcmp.eq.f32.partialorder %v3078_v5, 8.507059e+37  ;;  %vm3104_vm1 = vweird.f32 %v6583_v63 }
 0xfdc   :  { %v6626_v35 = vsel %vm3034_vm13, %v3036_v7, %v3032_v15  ;;  %vm3106_vm0 = vmor %vm3104_vm1, %vm3105_vm14  ;;  %vm3109_vm15 = vcmp.eq.f32.partialorder %v3108_v57, 8.507059e+37  ;;  %vm4047_vm14 = vcmask 1044480  }
 0xfdd   :  { %v3107_v47 = vsel %vm3106_vm0, %v6609_v22, %v3103_v13  ;;  %v3124_v58 = vmul.f32 %v6626_v35, %v6442_v61 }
 0xfdf   :  { %v3145_v4 = vpop.permute.xlu2 %3144 }
 0xfe0   :  { %v3165_v14 = vmul.f32 %v3145_v4, %v6576_v16  ;;  %v3080_v4 = vand.u32 2147483648, %v6554_v53  ;;  %v3063_v53 = vand.u32 2147483647, %v6561_v56 }
 0xfe2   :  { %3184 = vrot.lane.b32.xlu2 %v3165_v14, %s4953_s0  ;;  %v3058_v14 = vadd.f32 %v6586_v37, %v3057_v51  ;;  %v3081_v0 = vor.u32 1.1754944e-38, %v3080_v4  ;;  %vm3064_vm13 = vcmp.eq.f32.partialorder %v3063_v53, 8.507059e+37 }
 0xfe4   :  { %v3062_v44 = vsel %vm3061_vm3, %v6586_v37, %v3058_v14  ;;  %v6643_v39 = vsel %vm3079_vm12, %v3081_v0, %v3077_v31  ;;  %v3110_v37 = vand.u32 2147483648, %v6583_v63  ;;  %v3122_v0 = vmul.f32 %v6621_v1, %v6415_v49 }
 0xfe5   :  { %v6646_v38 = vsel %vm3064_vm13, %v3066_v60, %v3062_v44 }
 0xfe6   :  { %v3111_v19 = vor.u32 1.1754944e-38, %v3110_v37  ;;  %v3126_v49 = vmul.f32 %v6646_v38, %v6452_v43 }
 0xfe7   :  { %v3151_v59 = vpop.permute.xlu2 %3150 }
 0xfe8   :  { %v3168_v12 = vmul.f32 %v3151_v59, %v6599_v40  ;;  %v6657_v48 = vsel %vm3109_vm15, %v3111_v19, %v3107_v47 }
 0xfea   :  { %3190 = vrot.lane.b32.xlu2 %v3168_v12, %s4953_s0  ;;  %v4838_v12 = vpop.eup %4837 }
 0xfeb   :  { %v2883_v52 = vadd.f32 1.0, %v4838_v12  ;;  %v3129_v12 = vmul.f32 %v6657_v48, %v6459_v21 }
 0xfed   :  { %v3139_v50 = vpop.permute.xlu1 %3138  ;;  %4839 = vrcp.f32 %v2883_v52  ;;  %v2895_v51 = vand.u32 2147483648, %v2883_v52  ;;  %vm2889_vm3 = vweird.f32 %v2883_v52  ;;  %v2893_v22 = vand.u32 2147483647, %v2883_v52 }
 0xfee   :  { %v3162_v20 = vmul.f32 %v3139_v50, %v6621_v1 }
 0xfef   :  { %v2896_v50 = vor.u32 1.1754944e-38, %v2895_v51  ;;  %vm2894_vm13 = vcmp.eq.f32.partialorder %v2893_v22, 8.507059e+37 }
 0xff0   :  { %v3143_v2 = vpop.permute.xlu0 %3142  ;;  %3178 = vrot.lane.b32.xlu1 %v3162_v20, %s4953_s0 }
 0xff1   :  { %v3164_v23 = vmul.f32 %v3143_v2, %v6626_v35  ;;  %v3123_v2 = vmul.f32 %v6556_v33, %v6420_v29 }
 0xff3   :  { %3182 = vrot.lane.b32.xlu0 %v3164_v23, %s4953_s0  ;;  %v4840_v10 = vpop.eup %4839  ;;  %v3125_v23 = vmul.f32 %v6576_v16, %v6426_v54 }
 0xff4   :  { %v2885_v46 = vmul.f32 %v4840_v10, %v2883_v52  ;;  %vm2890_vm2 = vweird.f32 %v4840_v10 }
 0xff5   :  { %v3149_v8 = vpop.permute.xlu1 %3148  ;;  %vm2891_vm12 = vmor %vm2889_vm3, %vm2890_vm2 }
 0xff6   :  { %v3167_v55 = vmul.f32 %v3149_v8, %v6643_v39  ;;  %v2886_v9 = vsub.f32 1.0, %v2885_v46 }
 0xff8   :  { %v3147_v59 = vpop.permute.xlu0 %3146  ;;  %3188 = vrot.lane.b32.xlu1 %v3167_v55, %s4953_s0  ;;  %v2887_v15 = vmul.f32 %v4840_v10, %v2886_v9  ;;  %v3127_v55 = vmul.f32 %v6643_v39, %v6435_v3 }
 0xff9   :  { %v3166_v56 = vmul.f32 %v3147_v59, %v6646_v38 }
 0xffa   :  { %v2888_v63 = vadd.f32 %v4840_v10, %v2887_v15 }
 0xffb   :  { %3186 = vrot.lane.b32.xlu0 %v3166_v56, %s4953_s0 }
 0xffc   :  { %v2892_v45 = vsel %vm2891_vm12, %v4840_v10, %v2888_v63 }
 0xffd   :  { %v6661_v7 = vsel %vm2894_vm13, %v2896_v50, %v2892_v45 }
0x1000   :  { %v3153_v28 = vpop.permute.xlu0 %3152 }
0x1001   :  { %v3169_v24 = vmul.f32 %v3153_v28, %v6657_v48  ;;  %v2900_v28 = vmul.f32 %v6661_v7, %v6467_v27 }
0x1003   :  { %3192 = vrot.lane.b32.xlu0 %v3169_v24, %s4953_s0 }
0x1022   :  { %v2903_v20 = vpop.permute.xlu1 %2902 }
0x1023   :  { %v2905_v18 = vmul.f32 %v2903_v20, %v6661_v7 }
0x1025   :  { %2907 = vrot.lane.b32.xlu1 %v2905_v18, %s4953_s0 }
0x1034   :  { %v3181_v5 = vpop.permute.xlu2 %3180 }
0x1035   :  { %v6667_v4 = vadd.f32 %v3181_v5, %v3123_v2 }
0x1037   :  { %4841 = vtanh.f32 %v6667_v4 }
0x103c   :  { %v3185_v14 = vpop.permute.xlu2 %3184 }
0x103d   :  { %v4842_v25 = vpop.eup %4841  ;;  %v6672_v32 = vadd.f32 %v3185_v14, %v3125_v23 }
0x103e   :  { %3228 = vrot.lane.b32.xlu2 %v4842_v25, %s4953_s0 }
0x103f   :  { %4843 = vtanh.f32 %v6672_v32 }
0x1044   :  { %v3191_v29 = vpop.permute.xlu2 %3190 }
0x1045   :  { %v4844_v31 = vpop.eup %4843  ;;  %v6678_v53 = vadd.f32 %v3191_v29, %v3128_v6 }
0x1046   :  { %3232 = vrot.lane.b32.xlu2 %v4844_v31, %s4953_s0 }
0x1047   :  { %4845 = vtanh.f32 %v6678_v53 }
0x104d   :  { %v4846_v54 = vpop.eup %4845 }
0x104e   :  { %3238 = vrot.lane.b32.xlu2 %v4846_v54, %s4953_s0 }
0x1062   :  { %v3179_v44 = vpop.permute.xlu1 %3178 }
0x1063   :  { %v6685_v41 = vadd.f32 %v3179_v44, %v3122_v0 }
0x1065   :  { %v3183_v8 = vpop.permute.xlu0 %3182  ;;  %4847 = vtanh.f32 %v6685_v41 }
0x1066   :  { %v6690_v60 = vadd.f32 %v3183_v8, %v3124_v58 }
0x1068   :  { %4849 = vtanh.f32 %v6690_v60 }
0x106a   :  { %v3189_v59 = vpop.permute.xlu1 %3188 }
0x106b   :  { %v4848_v56 = vpop.eup %4847  ;;  %v6695_v13 = vadd.f32 %v3189_v59, %v3127_v55 }
0x106c   :  { %3226 = vrot.lane.b32.xlu1 %v4848_v56, %s4953_s0 }
0x106d   :  { %v3187_v37 = vpop.permute.xlu0 %3186  ;;  %4851 = vtanh.f32 %v6695_v13 }
0x106e   :  { %v4850_v61 = vpop.eup %4849  ;;  %v6701_v57 = vadd.f32 %v3187_v37, %v3126_v49 }
0x106f   :  { %3230 = vrot.lane.b32.xlu0 %v4850_v61, %s4953_s0 }
0x1070   :  { %4853 = vtanh.f32 %v6701_v57 }
0x1073   :  { %v4852_v3 = vpop.eup %4851 }
0x1074   :  { %3236 = vrot.lane.b32.xlu1 %v4852_v3, %s4953_s0 }
0x1075   :  { %v3193_v47 = vpop.permute.xlu0 %3192 }
0x1076   :  { %v4854_v43 = vpop.eup %4853  ;;  %v6708_v19 = vadd.f32 %v3193_v47, %v3129_v12 }
0x1077   :  { %3234 = vrot.lane.b32.xlu0 %v4854_v43, %s4953_s0 }
0x1078   :  { %4855 = vtanh.f32 %v6708_v19 }
0x107e   :  { %v4856_v52 = vpop.eup %4855 }
0x107f   :  { %3240 = vrot.lane.b32.xlu0 %v4856_v52, %s4953_s0 }
0x1097   :  { %v2908_v24 = vpop.permute.xlu1 %2907 }
0x1098   :  { %v6715_v10 = vadd.f32 %v2908_v24, %v2900_v28  ;;  %v3229_v46 = vpop.permute.xlu2 %3228 }
0x1099   :  { %v3251_v63 = vmul.f32 %v3229_v46, %v6556_v33 }
0x109a   :  { %4857 = vtanh.f32 %v6715_v10 }
0x109b   :  { %v3259_v50 = vpack.c.bf16 %v3251_v63, %v3251_v63 }
0x109d   :  { %v3275_v23 = vunpack.c.l.b16 %v3259_v50 }
0x10a0   :  { %v4858_v21 = vpop.eup %4857  ;;  %v3233_v9 = vpop.permute.xlu2 %3232 }
0x10a1   :  { %2913 = vrot.lane.b32.xlu1 %v4858_v21, %s4953_s0  ;;  %v3253_v27 = vmul.f32 %v3233_v9, %v6576_v16 }
0x10a3   :  { %v3261_v14 = vpack.c.bf16 %v3253_v27, %v3253_v27 }
0x10a5   :  { %v3277_v0 = vunpack.c.l.b16 %v3261_v14 }
0x10a7   :  { %v3286_v56 = vrot.slane %v3277_v0, 5 }
0x10a8   :  { %v3239_v25 = vpop.permute.xlu2 %3238 }
0x10de   :  { %v3227_v15 = vpop.permute.xlu1 %3226 }
0x10df   :  { %v3250_v22 = vmul.f32 %v3227_v15, %v6621_v1  ;;  %v3256_v1 = vmul.f32 %v3239_v25, %v6599_v40 }
0x10e1   :  { %v3231_v51 = vpop.permute.xlu0 %3230  ;;  %v3258_v18 = vpack.c.bf16 %v3250_v22, %v3250_v22  ;;  %v3264_v55 = vpack.c.bf16 %v3256_v1, %v3256_v1 }
0x10e2   :  { %v3252_v45 = vmul.f32 %v3231_v51, %v6626_v35  ;;  %v3282_v35 = vrot.slane %v3275_v23, 7 }
0x10e3   :  { %v3274_v31 = vunpack.c.l.b16 %v3258_v18  ;;  %v3280_v40 = vunpack.c.l.b16 %v3264_v55 }
0x10e4   :  { %v3260_v20 = vpack.c.bf16 %v3252_v45, %v3252_v45 }
0x10e5   :  { %v3283_v58 = vsel %vm523_vm4, %v3282_v35, %v3274_v31  ;;  %v3292_v28 = vrot.slane %v3280_v40, 2 }
0x10e6   :  { %v3276_v2 = vunpack.c.l.b16 %v3260_v20  ;;  %v3237_v5 = vpop.permute.xlu1 %3236 }
0x10e7   :  { %v3255_v6 = vmul.f32 %v3237_v5, %v6643_v39 }
0x10e8   :  { %v3284_v54 = vrot.slane %v3276_v2, 6 }
0x10e9   :  { %v3235_v29 = vpop.permute.xlu0 %3234  ;;  %v3263_v44 = vpack.c.bf16 %v3255_v6, %v3255_v6 }
0x10ea   :  { %v3254_v33 = vmul.f32 %v3235_v29, %v6646_v38  ;;  %v3285_v59 = vsel %vm526_vm5, %v3284_v54, %v3283_v58  ;;  %v3374_v58 = vld [vmem:[#allocation2 + $0xf] sm:$0x1] }
0x10eb   :  { %v3279_v49 = vunpack.c.l.b16 %v3263_v44  ;;  %v3287_v61 = vsel %vm529_vm6, %v3286_v56, %v3285_v59 }
0x10ec   :  { %v3262_v16 = vpack.c.bf16 %v3254_v33, %v3254_v33 }
0x10ed   :  { %v3290_v12 = vrot.slane %v3279_v49, 3 }
0x10ee   :  { %v3278_v8 = vunpack.c.l.b16 %v3262_v16 }
0x10f0   :  { %v3288_v39 = vrot.slane %v3278_v8, 4  ;;  %v3375_v8 = vld [vmem:[#allocation2 + $0x17] sm:$0x1] }
0x10f1   :  { %v3241_v37 = vpop.permute.xlu0 %3240 }
0x10f2   :  { %v3257_v38 = vmul.f32 %v3241_v37, %v6657_v48  ;;  %v3289_v3 = vsel %vm532_vm7, %v3288_v39, %v3287_v61  ;;  %v3378_v37 = vld [vmem:[#allocation2 + $0x2f] sm:$0x1]  ;;  %v3376_v61 = vld [vmem:[#allocation2 + $0x1f] sm:$0x1] }
0x10f3   :  { %v3291_v43 = vsel %vm535_vm8, %v3290_v12, %v3289_v3  ;;  %v3377_v3 = vld [vmem:[#allocation2 + $0x27] sm:$0x1] }
0x10f4   :  { %v3265_v47 = vpack.c.bf16 %v3257_v38, %v3257_v38  ;;  %v3293_v21 = vsel %vm538_vm9, %v3292_v28, %v3291_v43 }
0x10f6   :  { %v3281_v52 = vunpack.c.l.b16 %v3265_v47 }
0x10f8   :  { %v3294_v24 = vrot.slane %v3281_v52, 1 }
0x10fa   :  { %v3295_v46 = vsel %vm541_vm10, %v3294_v24, %v3293_v21 }
0x10fb   :  { %v3296_v9 = vpack.c.b16 %v3295_v46, %v3295_v46 }
0x10fd   :  { %3297 = vrot.lane.b32.xlu2 %v3296_v9, %s4954_s17  ;;  %v3379_v9 = vld [vmem:[#allocation2 + $0x37] sm:$0x1] }
0x1113   :  { %v2914_v15 = vpop.permute.xlu1 %2913 }
0x1114   :  { %v2916_v48 = vmul.f32 %v2914_v15, %v6661_v7  ;;  %v3380_v15 = vld [vmem:[#allocation2 + $0x3f] sm:$0x1] }
0x1116   :  { %v3315_v63 = vpack.c.bf16 %v2916_v48, %v2916_v48  ;;  %v3964_v51 = vperm.slane %v2916_v48, 0  ;;  %v3878_v22 = vrot.slane %v2916_v48, 2  ;;  %v3877_v45 = vrot.slane %v2916_v48, 1 }
0x1117   :  { %v3879_v50 = vrot.slane %v2916_v48, 3  ;;  %v3881_v27 = vrot.slane %v2916_v48, 5  ;;  %v3880_v20 = vrot.slane %v2916_v48, 4  ;;  %v3882_v23 = vrot.slane %v2916_v48, 6 }
0x1118   :  { %3317 = vrot.lane.b32.xlu0 %v3315_v63, %s4954_s17  ;;  %v6739_v18 = vsel %vm4047_vm14, %v6491_v17, %v3964_v51  ;;  %v3966_v2 = vperm.slane %v3878_v22, 0  ;;  %v3965_v5 = vperm.slane %v3877_v45, 0  ;;  %v3883_v6 = vrot.slane %v2916_v48, 7 }
0x1119   :  { %v3967_v14 = vperm.slane %v3879_v50, 0  ;;  %v3969_v25 = vperm.slane %v3881_v27, 0  ;;  %v3968_v7 = vperm.slane %v3880_v20, 0  ;;  %v3970_v33 = vperm.slane %v3882_v23, 0  ;;  %v6789_v20 = vld [vmem:[%s7120_s6] ss:$0 sm:$0xff] }
0x111a   :  { %v6743_v29 = vsel %vm4047_vm14, %v6495_v42, %v3966_v2  ;;  %v6747_v31 = vsel %vm4047_vm14, %v6499_v36, %v3965_v5  ;;  %v3971_v35 = vperm.slane %v3883_v6, 0 }
0x111b   :  { %v6751_v17 = vsel %vm4047_vm14, %v6503_v30, %v3967_v14  ;;  %v6755_v1 = vsel %vm4047_vm14, %v6507_v11, %v3969_v25  ;;  %v6759_v54 = vsel %vm4047_vm14, %v6511_v34, %v3968_v7  ;;  %v6763_v42 = vsel %vm4047_vm14, %v6515_v62, %v3970_v33  ;;  %v3373_v34 = vld [vmem:[#allocation2 + $0x7] sm:$0x1] }
0x111c   :  { %v6767_v36 = vsel %vm4047_vm14, %v6519_v26, %v3971_v35 }
0x1157   :  { %v3298_v0 = vpop.permute.xlu2 %3297 }
0x1158   :  { %4329 = vmatmul.msk.bf16.vlgmr.msrb.gmra.mxu3 %vm158_vm11, %v3298_v0  ;;  %4332 = vmatmul.msk.bf16.vlgmr.msra.gmra.mxu1 %vm158_vm11, %v3298_v0 }
0x118a   :  { %v3318_v30 = vpop.permute.xlu0 %3317 }
0x118b   :  { %4330 = vmatmul.msk.bf16.vlgmr.msrb.gmra.mxu0 %vm158_vm11, %v3318_v30 }
0x11d5   :  { %v3390_v11 = vpop.f32.mrf.mxu1 }
0x11d6   :  { %v3395_v44 = vrot.slane %v3390_v11, 1  ;;  %v3396_v16 = vrot.slane %v3390_v11, 2  ;;  %v6772_v62 = vadd.f32 %v3390_v11, %v3373_v34  ;;  %v3399_v59 = vrot.slane %v3390_v11, 5 }
0x11d7   :  { %v3397_v56 = vrot.slane %v3390_v11, 3  ;;  %v3398_v49 = vrot.slane %v3390_v11, 4  ;;  %v3400_v24 = vrot.slane %v3390_v11, 6  ;;  %v3401_v21 = vrot.slane %v3390_v11, 7 }
0x11d8   :  { %v6774_v55 = vadd.f32 %v3395_v44, %v3374_v58  ;;  %v3412_v26 = vadd.f32 %v3396_v16, %v3375_v8  ;;  %4859 = vtanh.f32 %v6772_v62  ;;  %v3415_v38 = vadd.f32 %v3399_v59, %v3378_v37 }
0x11d9   :  { %v3413_v12 = vadd.f32 %v3397_v56, %v3376_v61  ;;  %v3414_v43 = vadd.f32 %v3398_v49, %v3377_v3  ;;  %v3416_v48 = vadd.f32 %v3400_v24, %v3379_v9  ;;  %v3417_v51 = vadd.f32 %v3401_v21, %v3380_v15 }
0x11da   :  { %4861 = vtanh.f32 %v6774_v55  ;;  %v4335_v7 = vmul.f32 -1.442695, %v3412_v26  ;;  %v4333_v34 = vmul.f32 -1.442695, %v6772_v62  ;;  %v4334_v16 = vmul.f32 -1.442695, %v6774_v55 }
0x11db   :  { %4863 = vtanh.f32 %v3412_v26  ;;  %v3311_v39 = vpop.f32.mrf.mxu3  ;;  %v4337_v6 = vmul.f32 -1.442695, %v3414_v43  ;;  %v4340_v0 = vmul.f32 -1.442695, %v3417_v51  ;;  %v4338_v56 = vmul.f32 -1.442695, %v3415_v38 }
0x11dc   :  { %4865 = vtanh.f32 %v3415_v38  ;;  %v3312_v2 = vadd.f32 %v6789_v20, %v3311_v39  ;;  %v4336_v39 = vmul.f32 -1.442695, %v3413_v12 }
0x11dd   :  { %v3392_v40 = vpop.f32.mrf.mxu1  ;;  %4867 = vtanh.f32 %v3413_v12  ;;  %v4339_v12 = vmul.f32 -1.442695, %v3416_v48 }
0x11de   :  { %v4860_v47 = vpop.eup %4859  ;;  %4869 = vtanh.f32 %v3414_v43 }
0x11df   :  { %3594 = vrot.lane.b32.xlu0 %v4860_v47, %s4953_s0  ;;  %4871 = vtanh.f32 %v3416_v48 }
0x11e0   :  { %v4862_v52 = vpop.eup %4861  ;;  %4873 = vtanh.f32 %v3417_v51 }
0x11e1   :  { %v4864_v28 = vpop.eup %4863  ;;  %3596 = vrot.lane.b32.xlu1 %v4862_v52, %s4953_s0 }
0x11e2   :  { %3598 = vrot.lane.b32.xlu2 %v4864_v28, %s4953_s0  ;;  %v4866_v63 = vpop.eup %4865 }
0x11e3   :  { %v3313_v46 = vpop.f32.mrf.mxu3  ;;  %v4868_v22 = vpop.eup %4867 }
0x11e4   :  { %v4870_v45 = vpop.eup %4869 }
0x11e5   :  { %v4872_v50 = vpop.eup %4871 }
0x11e6   :  { %v4874_v27 = vpop.eup %4873 }
0x11e7   :  { %3604 = vrot.lane.b32.xlu0 %v4866_v63, %s4953_s0 }
0x11e9   :  { %3600 = vrot.lane.b32.xlu1 %v4868_v22, %s4953_s0 }
0x11ea   :  { %3602 = vrot.lane.b32.xlu2 %v4870_v45, %s4953_s0 }
0x11f1   :  { %3606 = vrot.lane.b32.xlu1 %v4872_v50, %s4953_s0 }
0x11f2   :  { %3608 = vrot.lane.b32.xlu2 %v4874_v27, %s4953_s0 }
0x1208   :  { %v3331_v5 = vpop.f32.mrf.mxu0 }
0x1209   :  { %v6792_v23 = vadd.f32 %v3331_v5, %v3312_v2 }
0x120b   :  { %4875 = vtanh.f32 %v6792_v23 }
0x120c   :  { %4877 = vpow2.f32 %v4335_v7 }
0x120d   :  { %4879 = vpow2.f32 %v4337_v6 }
0x1210   :  { %v3333_v14 = vpop.f32.mrf.mxu0 }
0x1211   :  { %v4876_v25 = vpop.eup %4875 }
0x1212   :  { %3358 = vrot.lane.b32.xlu0 %v4876_v25, %s4953_s0  ;;  %v4878_v33 = vpop.eup %4877 }
0x1213   :  { %v3444_v35 = vadd.f32 1.0, %v4878_v33  ;;  %v4880_v30 = vpop.eup %4879 }
0x1214   :  { %v6796_v11 = vadd.f32 1.0, %v4880_v30 }
0x1215   :  { %4881 = vrcp.f32 %v3444_v35  ;;  %v3491_v38 = vand.u32 2147483648, %v3444_v35  ;;  %vm3485_vm0 = vweird.f32 %v3444_v35  ;;  %v3489_v24 = vand.u32 2147483647, %v3444_v35 }
0x1216   :  { %4883 = vpow2.f32 %v4340_v0  ;;  %v3521_v25 = vand.u32 2147483648, %v6796_v11  ;;  %vm3515_vm12 = vweird.f32 %v6796_v11  ;;  %v3519_v7 = vand.u32 2147483647, %v6796_v11 }
0x1217   :  { %4885 = vrcp.f32 %v6796_v11  ;;  %v3492_v63 = vor.u32 1.1754944e-38, %v3491_v38  ;;  %vm3490_vm2 = vcmp.eq.f32.partialorder %v3489_v24, 8.507059e+37 }
0x1218   :  { %4887 = vpow2.f32 %v4333_v34  ;;  %v3522_v34 = vor.u32 1.1754944e-38, %v3521_v25  ;;  %vm3520_vm14 = vcmp.eq.f32.partialorder %v3519_v7, 8.507059e+37 }
0x1219   :  { %4889 = vpow2.f32 %v4334_v16 }
0x121b   :  { %v4882_v44 = vpop.eup %4881 }
0x121c   :  { %v4884_v58 = vpop.eup %4883  ;;  %v3481_v8 = vmul.f32 %v4882_v44, %v3444_v35  ;;  %vm3486_vm1 = vweird.f32 %v4882_v44 }
0x121d   :  { %v6801_v26 = vadd.f32 1.0, %v4884_v58  ;;  %v4886_v49 = vpop.eup %4885  ;;  %vm3487_vm15 = vmor %vm3485_vm0, %vm3486_vm1 }
0x121e   :  { %v3482_v59 = vsub.f32 1.0, %v3481_v8  ;;  %v4888_v37 = vpop.eup %4887  ;;  %v3511_v40 = vmul.f32 %v4886_v49, %v6796_v11  ;;  %vm3516_vm3 = vweird.f32 %v4886_v49 }
0x121f   :  { %v4890_v61 = vpop.eup %4889  ;;  %4891 = vrcp.f32 %v6801_v26  ;;  %v6805_v55 = vadd.f32 1.0, %v4888_v37  ;;  %vm3517_vm13 = vmor %vm3515_vm12, %vm3516_vm3  ;;  %vm3560_vm0 = vweird.f32 %v6801_v26 }
0x1220   :  { %v3483_v62 = vmul.f32 %v4882_v44, %v3482_v59  ;;  %4893 = vpow2.f32 %v4338_v56  ;;  %v6807_v3 = vadd.f32 1.0, %v4890_v61  ;;  %v3512_v43 = vsub.f32 1.0, %v3511_v40 }
0x1221   :  { %4895 = vpow2.f32 %v4336_v39  ;;  %v3564_v61 = vand.u32 2147483647, %v6801_v26 }
0x1222   :  { %v3484_v47 = vadd.f32 %v4882_v44, %v3483_v62  ;;  %4897 = vrcp.f32 %v6805_v55  ;;  %v3513_v9 = vmul.f32 %v4886_v49, %v3512_v43 }
0x1223   :  { %4899 = vrcp.f32 %v6807_v3 }
0x1224   :  { %v3488_v46 = vsel %vm3487_vm15, %v4882_v44, %v3484_v47  ;;  %4901 = vpow2.f32 %v4339_v12  ;;  %v3514_v5 = vadd.f32 %v4886_v49, %v3513_v9 }
0x1225   :  { %v6809_v52 = vpop.eup %4891  ;;  %v6821_v50 = vsel %vm3490_vm2, %v3492_v63, %v3488_v46  ;;  %vm3565_vm2 = vcmp.eq.f32.partialorder %v3564_v61, 8.507059e+37 }
0x1226   :  { %v4894_v28 = vpop.eup %4893  ;;  %v3556_v15 = vmul.f32 %v6809_v52, %v6801_v26  ;;  %v3518_v0 = vsel %vm3517_vm13, %v4886_v49, %v3514_v5  ;;  %vm3561_vm1 = vweird.f32 %v6809_v52  ;;  %v3566_v49 = vand.u32 2147483648, %v6801_v26 }
0x1227   :  { %v4896_v21 = vpop.eup %4895  ;;  %v6815_v51 = vadd.f32 1.0, %v4894_v28  ;;  %v6841_v11 = vsel %vm3520_vm14, %v3522_v34, %v3518_v0  ;;  %vm3562_vm15 = vmor %vm3560_vm0, %vm3561_vm1  ;;  %v3461_v28 = vand.u32 2147483648, %v6805_v55  ;;  %vm3455_vm13 = vweird.f32 %v6805_v55 }
0x1228   :  { %v6817_v22 = vadd.f32 1.0, %v4896_v21  ;;  %v6819_v48 = vpop.eup %4897  ;;  %v3557_v14 = vsub.f32 1.0, %v3556_v15  ;;  %v3567_v12 = vor.u32 1.1754944e-38, %v3566_v49  ;;  %vm3470_vm1 = vweird.f32 %v6807_v3 }
0x1229   :  { %v6823_v27 = vpop.eup %4899  ;;  %4903 = vrcp.f32 %v6815_v51  ;;  %v3451_v6 = vmul.f32 %v6819_v48, %v6805_v55  ;;  %vm3456_vm3 = vweird.f32 %v6819_v48  ;;  %v3474_v5 = vand.u32 2147483647, %v6807_v3 }
0x122a   :  { %4905 = vrcp.f32 %v6817_v22  ;;  %v4902_v33 = vpop.eup %4901  ;;  %v3466_v35 = vmul.f32 %v6823_v27, %v6807_v3  ;;  %v3558_v30 = vmul.f32 %v6809_v52, %v3557_v14  ;;  %vm3471_vm12 = vweird.f32 %v6823_v27  ;;  %vm3457_vm14 = vmor %vm3455_vm13, %vm3456_vm3 }
0x122b   :  { %v3452_v44 = vsub.f32 1.0, %v3451_v6  ;;  %v6837_v16 = vadd.f32 1.0, %v4902_v33  ;;  %vm3472_vm0 = vmor %vm3470_vm1, %vm3471_vm12  ;;  %v3462_v7 = vor.u32 1.1754944e-38, %v3461_v28  ;;  %vm3530_vm13 = vweird.f32 %v6815_v51 }
0x122c   :  { %v3467_v59 = vsub.f32 1.0, %v3466_v35  ;;  %v3559_v37 = vadd.f32 %v6809_v52, %v3558_v30  ;;  %v3536_v30 = vand.u32 2147483648, %v6815_v51  ;;  %v3534_v49 = vand.u32 2147483647, %v6815_v51 }
0x122d   :  { %v3453_v62 = vmul.f32 %v6819_v48, %v3452_v44  ;;  %4907 = vrcp.f32 %v6837_v16  ;;  %v3506_v61 = vand.u32 2147483648, %v6817_v22  ;;  %vm3500_vm1 = vweird.f32 %v6817_v22 }
0x122e   :  { %v3468_v47 = vmul.f32 %v6823_v27, %v3467_v59  ;;  %v3563_v38 = vsel %vm3562_vm15, %v6809_v52, %v3559_v37  ;;  %v4331_v37 = vmul.f32 -1.442695, %v6792_v23 }
0x122f   :  { %v6839_v58 = vpop.eup %4903  ;;  %v3454_v26 = vadd.f32 %v6819_v48, %v3453_v62  ;;  %v6863_v21 = vsel %vm3565_vm2, %v3567_v12, %v3563_v38  ;;  %vm3475_vm2 = vcmp.eq.f32.partialorder %v3474_v5, 8.507059e+37  ;;  %v3504_v62 = vand.u32 2147483647, %v6817_v22 }
0x1230   :  { %v6843_v56 = vpop.eup %4905  ;;  %v3526_v40 = vmul.f32 %v6839_v58, %v6815_v51  ;;  %v3469_v9 = vadd.f32 %v6823_v27, %v3468_v47  ;;  %vm3531_vm3 = vweird.f32 %v6839_v58  ;;  %v3537_v47 = vor.u32 1.1754944e-38, %v3536_v30 }
0x1231   :  { %v3496_v43 = vmul.f32 %v6843_v56, %v6817_v22  ;;  %v3458_v14 = vsel %vm3457_vm14, %v6819_v48, %v3454_v26  ;;  %vm3501_vm12 = vweird.f32 %v6843_v56  ;;  %vm3532_vm14 = vmor %vm3530_vm13, %vm3531_vm3  ;;  %4909 = vpow2.f32 %v4331_v37 }
0x1232   :  { %v3527_v24 = vsub.f32 1.0, %v3526_v40  ;;  %v3473_v6 = vsel %vm3472_vm0, %v6823_v27, %v3469_v9  ;;  %vm3502_vm0 = vmor %vm3500_vm1, %vm3501_vm12  ;;  %v3507_v51 = vor.u32 1.1754944e-38, %v3506_v61  ;;  %vm3545_vm12 = vweird.f32 %v6837_v16 }
0x1233   :  { %v3497_v15 = vsub.f32 1.0, %v3496_v43  ;;  %v6867_v63 = vpop.eup %4907 }
0x1234   :  { %v3528_v25 = vmul.f32 %v6839_v58, %v3527_v24  ;;  %vm3546_vm3 = vweird.f32 %v6867_v63 }
0x1235   :  { %v3498_v33 = vmul.f32 %v6843_v56, %v3497_v15  ;;  %vm3547_vm13 = vmor %vm3545_vm12, %vm3546_vm3  ;;  %vm4056_vm3 = vcmask 1045504  }
0x1236   :  { %v3529_v27 = vadd.f32 %v6839_v58, %v3528_v25 }
0x1237   :  { %v3499_v59 = vadd.f32 %v6843_v56, %v3498_v33  ;;  %v4910_v9 = vpop.eup %4909 }
0x1238   :  { %v3533_v40 = vsel %vm3532_vm14, %v6839_v58, %v3529_v27  ;;  %v3580_v27 = vmul.f32 %v6821_v50, %v6690_v60 }
0x1239   :  { %v3503_v23 = vsel %vm3502_vm0, %v6843_v56, %v3499_v59  ;;  %v3551_v56 = vand.u32 2147483648, %v6837_v16 }
0x123c   :  { %v3599_v45 = vpop.permute.xlu2 %3598 }
0x123d   :  { %v3620_v2 = vmul.f32 %v3599_v45, %v6821_v50  ;;  %v3459_v45 = vand.u32 2147483647, %v6805_v55  ;;  %v3541_v55 = vmul.f32 %v6867_v63, %v6837_v16 }
0x123f   :  { %3638 = vrot.lane.b32.xlu2 %v3620_v2, %s4953_s0  ;;  %v3476_v2 = vand.u32 2147483648, %v6807_v3  ;;  %vm3460_vm15 = vcmp.eq.f32.partialorder %v3459_v45, 8.507059e+37  ;;  %v3339_v45 = vadd.f32 1.0, %v4910_v9 }
0x1240   :  { %v6882_v0 = vsel %vm3460_vm15, %v3462_v7, %v3458_v14  ;;  %vm3535_vm15 = vcmp.eq.f32.partialorder %v3534_v49, 8.507059e+37 }
0x1241   :  { %v3477_v35 = vor.u32 1.1754944e-38, %v3476_v2  ;;  %v6904_v38 = vsel %vm3535_vm15, %v3537_v47, %v3533_v40  ;;  %4911 = vrcp.f32 %v3339_v45  ;;  %vm3345_vm0 = vweird.f32 %v3339_v45 }
0x1243   :  { %v6886_v34 = vsel %vm3475_vm2, %v3477_v35, %v3473_v6  ;;  %vm3505_vm2 = vcmp.eq.f32.partialorder %v3504_v62, 8.507059e+37  ;;  %v3585_v62 = vmul.f32 %v6863_v21, %v6708_v19 }
0x1244   :  { %v3603_v8 = vpop.permute.xlu2 %3602  ;;  %v6907_v26 = vsel %vm3505_vm2, %v3507_v51, %v3503_v23  ;;  %v3579_v51 = vmul.f32 %v6886_v34, %v6667_v4 }
0x1245   :  { %v3622_v39 = vmul.f32 %v3603_v8, %v6841_v11 }
0x1247   :  { %3642 = vrot.lane.b32.xlu2 %v3622_v39, %s4953_s0  ;;  %v3542_v39 = vsub.f32 1.0, %v3541_v55  ;;  %v4912_v25 = vpop.eup %4911  ;;  %v3351_v55 = vand.u32 2147483648, %v3339_v45 }
0x1248   :  { %v3341_v7 = vmul.f32 %v4912_v25, %v3339_v45  ;;  %vm3346_vm1 = vweird.f32 %v4912_v25 }
0x1249   :  { %v3543_v43 = vmul.f32 %v6867_v63, %v3542_v39  ;;  %vm3347_vm15 = vmor %vm3345_vm0, %vm3346_vm1  ;;  %v3582_v39 = vmul.f32 %v6841_v11, %v6701_v57  ;;  %v3578_v57 = vmul.f32 %v6882_v0, %v6685_v41  ;;  %v3581_v41 = vmul.f32 %v6907_v26, %v6672_v32 }
0x124a   :  { %v3342_v6 = vsub.f32 1.0, %v3341_v7  ;;  %vm4065_vm0 = vcmask 1046528  }
0x124b   :  { %v3544_v24 = vadd.f32 %v6867_v63, %v3543_v43 }
0x124c   :  { %v3609_v46 = vpop.permute.xlu2 %3608  ;;  %v3343_v33 = vmul.f32 %v4912_v25, %v3342_v6 }
0x124d   :  { %v3625_v52 = vmul.f32 %v3609_v46, %v6863_v21  ;;  %v3549_v46 = vand.u32 2147483647, %v6837_v16  ;;  %v3548_v15 = vsel %vm3547_vm13, %v6867_v63, %v3544_v24  ;;  %v3349_v63 = vand.u32 2147483647, %v3339_v45 }
0x124e   :  { %v3344_v16 = vadd.f32 %v4912_v25, %v3343_v33 }
0x124f   :  { %3648 = vrot.lane.b32.xlu2 %v3625_v52, %s4953_s0  ;;  %v3552_v52 = vor.u32 1.1754944e-38, %v3551_v56  ;;  %vm3550_vm14 = vcmp.eq.f32.partialorder %v3549_v46, 8.507059e+37  ;;  %vm3350_vm2 = vcmp.eq.f32.partialorder %v3349_v63, 8.507059e+37  ;;  %v3583_v56 = vmul.f32 %v6904_v38, %v6695_v13 }
0x1250   :  { %v3348_v35 = vsel %vm3347_vm15, %v4912_v25, %v3344_v16 }
0x1251   :  { %v3595_v3 = vpop.permute.xlu0 %3594  ;;  %v6918_v2 = vsel %vm3550_vm14, %v3552_v52, %v3548_v15 }
0x1252   :  { %v3618_v48 = vmul.f32 %v3595_v3, %v6882_v0  ;;  %v3352_v3 = vor.u32 1.1754944e-38, %v3351_v55  ;;  %v3584_v32 = vmul.f32 %v6918_v2, %v6678_v53 }
0x1253   :  { %v3597_v44 = vpop.permute.xlu1 %3596 }
0x1254   :  { %v3619_v8 = vmul.f32 %v3597_v44, %v6886_v34  ;;  %3634 = vrot.lane.b32.xlu0 %v3618_v48, %s4953_s0  ;;  %v6922_v30 = vsel %vm3350_vm2, %v3352_v3, %v3348_v35 }
0x1255   :  { %v3356_v53 = vmul.f32 %v6922_v30, %v6715_v10 }
0x1256   :  { %3636 = vrot.lane.b32.xlu1 %v3619_v8, %s4953_s0 }
0x1259   :  { %v3605_v12 = vpop.permute.xlu0 %3604 }
0x125a   :  { %v3623_v28 = vmul.f32 %v3605_v12, %v6904_v38 }
0x125b   :  { %v3601_v22 = vpop.permute.xlu1 %3600 }
0x125c   :  { %v3621_v58 = vmul.f32 %v3601_v22, %v6907_v26  ;;  %3644 = vrot.lane.b32.xlu0 %v3623_v28, %s4953_s0 }
0x125e   :  { %3640 = vrot.lane.b32.xlu1 %v3621_v58, %s4953_s0 }
0x1263   :  { %v3607_v5 = vpop.permute.xlu1 %3606 }
0x1264   :  { %v3624_v14 = vmul.f32 %v3607_v5, %v6918_v2 }
0x1266   :  { %3646 = vrot.lane.b32.xlu1 %v3624_v14, %s4953_s0 }
0x1284   :  { %v3359_v48 = vpop.permute.xlu0 %3358 }
0x1285   :  { %v3361_v44 = vmul.f32 %v3359_v48, %v6922_v30 }
0x1287   :  { %3363 = vrot.lane.b32.xlu0 %v3361_v44, %s4953_s0 }
0x1299   :  { %v3639_v8 = vpop.permute.xlu2 %3638 }
0x129a   :  { %v3660_v59 = vadd.f32 %v3639_v8, %v3580_v27 }
0x129c   :  { %4913 = vtanh.f32 %v3660_v59  ;;  %v4176_v58 = vrot.slane %v3660_v59, 6 }
0x12a1   :  { %v3643_v37 = vpop.permute.xlu2 %3642 }
0x12a2   :  { %v4914_v49 = vpop.eup %4913  ;;  %v3662_v61 = vadd.f32 %v3643_v37, %v3582_v39 }
0x12a3   :  { %3686 = vrot.lane.b32.xlu2 %v4914_v49, %s4953_s0 }
0x12a4   :  { %4915 = vtanh.f32 %v3662_v61  ;;  %v4180_v25 = vrot.slane %v3662_v61, 4 }
0x12a9   :  { %v3649_v40 = vpop.permute.xlu2 %3648 }
0x12aa   :  { %v4916_v47 = vpop.eup %4915  ;;  %v3665_v23 = vadd.f32 %v3649_v40, %v3585_v62 }
0x12ab   :  { %3690 = vrot.lane.b32.xlu2 %v4916_v47, %s4953_s0 }
0x12ac   :  { %4917 = vtanh.f32 %v3665_v23  ;;  %v4186_v48 = vrot.slane %v3665_v23, 1 }
0x12b2   :  { %v4918_v60 = vpop.eup %4917 }
0x12b3   :  { %3696 = vrot.lane.b32.xlu2 %v4918_v60, %s4953_s0 }
0x12c6   :  { %v3635_v43 = vpop.permute.xlu0 %3634 }
0x12c7   :  { %v3658_v12 = vadd.f32 %v3635_v43, %v3578_v57 }
0x12c8   :  { %v3637_v28 = vpop.permute.xlu1 %3636 }
0x12c9   :  { %v3659_v22 = vadd.f32 %v3637_v28, %v3579_v51  ;;  %4919 = vtanh.f32 %v3658_v12 }
0x12cb   :  { %4921 = vtanh.f32 %v3659_v22  ;;  %v4174_v19 = vrot.slane %v3659_v22, 7 }
0x12cd   :  { %v4175_v24 = vsel %vm523_vm4, %v4174_v19, %v3658_v12 }
0x12ce   :  { %v4177_v46 = vsel %vm526_vm5, %v4176_v58, %v4175_v24  ;;  %v3645_v9 = vpop.permute.xlu0 %3644 }
0x12cf   :  { %v4920_v15 = vpop.eup %4919  ;;  %v3663_v4 = vadd.f32 %v3645_v9, %v3583_v56 }
0x12d0   :  { %v3641_v52 = vpop.permute.xlu1 %3640  ;;  %3682 = vrot.lane.b32.xlu0 %v4920_v15, %s4953_s0 }
0x12d1   :  { %v4922_v45 = vpop.eup %4921  ;;  %v3661_v5 = vadd.f32 %v3641_v52, %v3581_v41  ;;  %4923 = vtanh.f32 %v3663_v4  ;;  %v4182_v13 = vrot.slane %v3663_v4, 3 }
0x12d2   :  { %3684 = vrot.lane.b32.xlu1 %v4922_v45, %s4953_s0 }
0x12d3   :  { %4925 = vtanh.f32 %v3661_v5  ;;  %v4178_v14 = vrot.slane %v3661_v5, 5 }
0x12d5   :  { %v4179_v7 = vsel %vm529_vm6, %v4178_v14, %v4177_v46 }
0x12d6   :  { %v4181_v6 = vsel %vm532_vm7, %v4180_v25, %v4179_v7 }
0x12d7   :  { %v4183_v33 = vsel %vm535_vm8, %v4182_v13, %v4181_v6  ;;  %v4924_v16 = vpop.eup %4923 }
0x12d8   :  { %v3647_v55 = vpop.permute.xlu1 %3646  ;;  %3692 = vrot.lane.b32.xlu0 %v4924_v16, %s4953_s0 }
0x12d9   :  { %v4926_v63 = vpop.eup %4925  ;;  %v3664_v35 = vadd.f32 %v3647_v55, %v3584_v32 }
0x12da   :  { %3688 = vrot.lane.b32.xlu1 %v4926_v63, %s4953_s0 }
0x12db   :  { %4927 = vtanh.f32 %v3664_v35  ;;  %v4184_v3 = vrot.slane %v3664_v35, 2 }
0x12dd   :  { %v4185_v44 = vsel %vm538_vm9, %v4184_v3, %v4183_v33 }
0x12de   :  { %v6956_v27 = vsel %vm541_vm10, %v4186_v48, %v4185_v44 }
0x12e1   :  { %v4928_v8 = vpop.eup %4927 }
0x12e2   :  { %3694 = vrot.lane.b32.xlu1 %v4928_v8, %s4953_s0 }
0x12f9   :  { %v3364_v59 = vpop.permute.xlu0 %3363 }
0x12fa   :  { %v6961_v39 = vadd.f32 %v3364_v59, %v3356_v53 }
0x12fc   :  { %4929 = vtanh.f32 %v6961_v39 }
0x12fd   :  { %v3687_v49 = vpop.permute.xlu2 %3686 }
0x12fe   :  { %v3708_v40 = vmul.f32 %v3687_v49, %v6821_v50 }
0x1300   :  { %v4124_v43 = vrot.slane %v3708_v40, 6  ;;  %v3716_v22 = vpack.c.bf16 %v3708_v40, %v3708_v40 }
0x1302   :  { %v4930_v37 = vpop.eup %4929  ;;  %v3732_v9 = vunpack.c.l.b16 %v3716_v22 }
0x1303   :  { %3369 = vrot.lane.b32.xlu0 %v4930_v37, %s4953_s0 }
0x1304   :  { %v3740_v6 = vrot.slane %v3732_v9, 6 }
0x1305   :  { %v3691_v61 = vpop.permute.xlu2 %3690 }
0x1306   :  { %v3710_v19 = vmul.f32 %v3691_v61, %v6841_v11 }
0x1308   :  { %v3718_v41 = vpack.c.bf16 %v3710_v19, %v3710_v19  ;;  %v4128_v52 = vrot.slane %v3710_v19, 4 }
0x130d   :  { %v3697_v50 = vpop.permute.xlu2 %3696 }
0x130e   :  { %v3713_v45 = vmul.f32 %v3697_v50, %v6863_v21 }
0x1310   :  { %v3721_v16 = vpack.c.bf16 %v3713_v45, %v3713_v45  ;;  %v4134_v59 = vrot.slane %v3713_v45, 1 }
0x1312   :  { %v3737_v53 = vunpack.c.l.b16 %v3721_v16 }
0x1342   :  { %v3683_v62 = vpop.permute.xlu0 %3682 }
0x1343   :  { %v3706_v60 = vmul.f32 %v3683_v62, %v6882_v0 }
0x1344   :  { %v3685_v47 = vpop.permute.xlu1 %3684 }
0x1345   :  { %v3707_v23 = vmul.f32 %v3685_v47, %v6886_v34  ;;  %v3714_v24 = vpack.c.bf16 %v3706_v60, %v3706_v60 }
0x1347   :  { %v3715_v57 = vpack.c.bf16 %v3707_v23, %v3707_v23  ;;  %v4122_v10 = vrot.slane %v3707_v23, 7  ;;  %v3730_v5 = vunpack.c.l.b16 %v3714_v24  ;;  %v3750_v23 = vrot.slane %v3737_v53, 1 }
0x1349   :  { %v4123_v51 = vsel %vm523_vm4, %v4122_v10, %v3706_v60  ;;  %v3731_v12 = vunpack.c.l.b16 %v3715_v57 }
0x134a   :  { %v4125_v28 = vsel %vm526_vm5, %v4124_v43, %v4123_v51  ;;  %v3693_v58 = vpop.permute.xlu0 %3692 }
0x134b   :  { %v3711_v46 = vmul.f32 %v3693_v58, %v6904_v38  ;;  %v3738_v0 = vrot.slane %v3731_v12, 7 }
0x134c   :  { %v3689_v56 = vpop.permute.xlu1 %3688 }
0x134d   :  { %v3709_v34 = vmul.f32 %v3689_v56, %v6907_v26  ;;  %v4130_v14 = vrot.slane %v3711_v46, 3  ;;  %v3739_v13 = vsel %vm523_vm4, %v3738_v0, %v3730_v5  ;;  %v3719_v7 = vpack.c.bf16 %v3711_v46, %v3711_v46 }
0x134e   :  { %v3734_v26 = vunpack.c.l.b16 %v3718_v41  ;;  %v3741_v63 = vsel %vm526_vm5, %v3740_v6, %v3739_v13 }
0x134f   :  { %v3717_v15 = vpack.c.bf16 %v3709_v34, %v3709_v34  ;;  %v4126_v4 = vrot.slane %v3709_v34, 5  ;;  %v3735_v35 = vunpack.c.l.b16 %v3719_v7 }
0x1350   :  { %v3744_v48 = vrot.slane %v3734_v26, 4 }
0x1351   :  { %v3733_v25 = vunpack.c.l.b16 %v3717_v15  ;;  %v4127_v11 = vsel %vm529_vm6, %v4126_v4, %v4125_v28  ;;  %v3746_v62 = vrot.slane %v3735_v35, 3 }
0x1352   :  { %v4129_v38 = vsel %vm532_vm7, %v4128_v52, %v4127_v11 }
0x1353   :  { %v3742_v32 = vrot.slane %v3733_v25, 5  ;;  %v4131_v33 = vsel %vm535_vm8, %v4130_v14, %v4129_v38 }
0x1354   :  { %v3695_v55 = vpop.permute.xlu1 %3694 }
0x1355   :  { %v3712_v21 = vmul.f32 %v3695_v55, %v6918_v2  ;;  %v3743_v3 = vsel %vm529_vm6, %v3742_v32, %v3741_v63 }
0x1356   :  { %v3745_v37 = vsel %vm532_vm7, %v3744_v48, %v3743_v3 }
0x1357   :  { %v3720_v44 = vpack.c.bf16 %v3712_v21, %v3712_v21  ;;  %v4132_v8 = vrot.slane %v3712_v21, 2  ;;  %v3747_v2 = vsel %vm535_vm8, %v3746_v62, %v3745_v37 }
0x1359   :  { %v3736_v49 = vunpack.c.l.b16 %v3720_v44  ;;  %v4133_v61 = vsel %vm538_vm9, %v4132_v8, %v4131_v33 }
0x135a   :  { %v6984_v40 = vsel %vm541_vm10, %v4134_v59, %v4133_v61 }
0x135b   :  { %v3748_v47 = vrot.slane %v3736_v49, 2 }
0x135d   :  { %v3749_v60 = vsel %vm538_vm9, %v3748_v47, %v3747_v2 }
0x135e   :  { %v3751_v57 = vsel %vm541_vm10, %v3750_v23, %v3749_v60 }
0x135f   :  { %v3752_v10 = vpack.c.b16 %v3751_v57, %v3751_v57 }
0x1361   :  { %3753 = vrot.lane.b32.xlu1 %v3752_v10, %s4954_s17 }
0x1375   :  { %v3370_v43 = vpop.permute.xlu0 %3369 }
0x1376   :  { %v3372_v51 = vmul.f32 %v3370_v43, %v6922_v30 }
0x1378   :  { %v3771_v12 = vpack.c.bf16 %v3372_v51, %v3372_v51  ;;  %v3980_v28 = vperm.slane %v3372_v51, 0  ;;  %v3886_v22 = vrot.slane %v3372_v51, 2  ;;  %v3885_v19 = vrot.slane %v3372_v51, 1 }
0x1379   :  { %v3887_v58 = vrot.slane %v3372_v51, 3  ;;  %v3889_v24 = vrot.slane %v3372_v51, 5  ;;  %v3888_v56 = vrot.slane %v3372_v51, 4  ;;  %v3890_v0 = vrot.slane %v3372_v51, 6 }
0x137a   :  { %3773 = vrot.lane.b32.xlu2 %v3771_v12, %s4954_s17  ;;  %v6994_v50 = vsel %vm4056_vm3, %v6739_v18, %v3980_v28  ;;  %v3982_v46 = vperm.slane %v3886_v22, 0  ;;  %v3981_v34 = vperm.slane %v3885_v19, 0  ;;  %v3891_v15 = vrot.slane %v3372_v51, 7 }
0x137b   :  { %v3983_v9 = vperm.slane %v3887_v58, 0  ;;  %v3985_v41 = vperm.slane %v3889_v24, 0  ;;  %v3984_v30 = vperm.slane %v3888_v56, 0  ;;  %v3986_v45 = vperm.slane %v3890_v0, 0 }
0x137c   :  { %v6998_v4 = vsel %vm4056_vm3, %v6743_v29, %v3982_v46  ;;  %v7002_v52 = vsel %vm4056_vm3, %v6747_v31, %v3981_v34  ;;  %v3987_v25 = vperm.slane %v3891_v15, 0 }
0x137d   :  { %v7006_v18 = vsel %vm4056_vm3, %v6751_v17, %v3983_v9  ;;  %v7010_v5 = vsel %vm4056_vm3, %v6755_v1, %v3985_v41  ;;  %v7014_v14 = vsel %vm4056_vm3, %v6759_v54, %v3984_v30  ;;  %v7018_v29 = vsel %vm4056_vm3, %v6763_v42, %v3986_v45 }
0x137e   :  { %v7022_v31 = vsel %vm4056_vm3, %v6767_v36, %v3987_v25 }
0x13d3   :  { %v3754_v17 = vpop.permute.xlu1 %3753 }
0x13d4   :  { %v3774_v11 = vpop.permute.xlu2 %3773  ;;  %4341 = vmatmul.msk.bf16.vlgmr.msra.gmra.mxu2 %vm158_vm11, %v3754_v17 }
0x13d5   :  { %4342 = vmatmul.msk.bf16.vlgmr.msra.gmra.mxu3 %vm158_vm11, %v3774_v11 }
0x1457   :  { %v3767_v13 = vpop.f32.mrf.mxu2 }
0x1458   :  { %v3787_v1 = vpop.f32.mrf.mxu3  ;;  %v3768_v54 = vadd.f32 %v6789_v20, %v3767_v13 }
0x145a   :  { %v3791_v7 = vadd.f32 %v3787_v1, %v3768_v54 }
0x145c   :  { %4931 = vtanh.f32 %v3791_v7  ;;  %v4343_v26 = vmul.f32 -1.442695, %v3791_v7 }
0x145e   :  { %4933 = vpow2.f32 %v4343_v26 }
0x145f   :  { %v3769_v6 = vpop.f32.mrf.mxu2 }
0x1460   :  { %v3789_v38 = vpop.f32.mrf.mxu3 }
0x1462   :  { %v4932_v42 = vpop.eup %4931 }
0x1463   :  { %3814 = vrot.lane.b32.xlu0 %v4932_v42, %s4953_s0 }
0x1464   :  { %v4934_v36 = vpop.eup %4933 }
0x1465   :  { %v3795_v32 = vadd.f32 1.0, %v4934_v36 }
0x1467   :  { %4935 = vrcp.f32 %v3795_v32  ;;  %v3807_v35 = vand.u32 2147483648, %v3795_v32  ;;  %vm3801_vm13 = vweird.f32 %v3795_v32  ;;  %v3805_v20 = vand.u32 2147483647, %v3795_v32 }
0x1469   :  { %v3808_v48 = vor.u32 1.1754944e-38, %v3807_v35  ;;  %vm3806_vm1 = vcmp.eq.f32.partialorder %v3805_v20, 8.507059e+37 }
0x146d   :  { %v4936_v33 = vpop.eup %4935 }
0x146e   :  { %v3797_v16 = vmul.f32 %v4936_v33, %v3795_v32  ;;  %vm3802_vm12 = vweird.f32 %v4936_v33 }
0x146f   :  { %vm3803_vm14 = vmor %vm3801_vm13, %vm3802_vm12 }
0x1470   :  { %v3798_v55 = vsub.f32 1.0, %v3797_v16 }
0x1472   :  { %v3799_v63 = vmul.f32 %v4936_v33, %v3798_v55 }
0x1474   :  { %v3800_v21 = vadd.f32 %v4936_v33, %v3799_v63 }
0x1476   :  { %v3804_v3 = vsel %vm3803_vm14, %v4936_v33, %v3800_v21 }
0x1477   :  { %v3809_v8 = vsel %vm3806_vm1, %v3808_v48, %v3804_v3 }
0x1478   :  { %v3812_v59 = vmul.f32 %v3809_v8, %v6961_v39 }
0x14d5   :  { %v3815_v44 = vpop.permute.xlu0 %3814 }
0x14d6   :  { %v3817_v53 = vmul.f32 %v3815_v44, %v3809_v8 }
0x14d8   :  { %3819 = vrot.lane.b32.xlu1 %v3817_v53, %s4953_s0 }
0x154a   :  { %v3820_v37 = vpop.permute.xlu1 %3819 }
0x154b   :  { %v3822_v49 = vadd.f32 %v3820_v37, %v3812_v59 }
0x154d   :  { %4937 = vtanh.f32 %v3822_v49 }
0x1553   :  { %v4938_v61 = vpop.eup %4937 }
0x1554   :  { %3825 = vrot.lane.b32.xlu2 %v4938_v61, %s4953_s0 }
0x155c   :  { %4150 = vrot.lane.b32.xlu2 %v6984_v40, %s4954_s17 }
0x15ae   :  { %v3826_v62 = vpop.permute.xlu2 %3825 }
0x15af   :  { %v3828_v47 = vmul.f32 %v3826_v62, %v3809_v8 }
0x15b1   :  { %v3996_v23 = vperm.slane %v3828_v47, 0  ;;  %v3894_v2 = vrot.slane %v3828_v47, 2  ;;  %v3893_v60 = vrot.slane %v3828_v47, 1  ;;  %v3895_v43 = vrot.slane %v3828_v47, 3 }
0x15b2   :  { %v3897_v51 = vrot.slane %v3828_v47, 5  ;;  %v3896_v22 = vrot.slane %v3828_v47, 4  ;;  %v3898_v0 = vrot.slane %v3828_v47, 6 }
0x15b3   :  { %v4066_v57 = vsel %vm4065_vm0, %v6994_v50, %v3996_v23  ;;  %v3998_v10 = vperm.slane %v3894_v2, 0  ;;  %v3997_v39 = vperm.slane %v3893_v60, 0  ;;  %v4136_v28 = vrot.slane %v3893_v60, 7 }
0x15b4   :  { %4082 = vrot.lane.b32.xlu0 %v4066_v57, %s4954_s17  ;;  %v3999_v58 = vperm.slane %v3895_v43, 0  ;;  %v4138_v24 = vrot.slane %v3894_v2, 6  ;;  %v4001_v50 = vperm.slane %v3897_v51, 0  ;;  %v4000_v46 = vperm.slane %v3896_v22, 0 }
0x15b5   :  { %v4068_v12 = vsel %vm4065_vm0, %v6998_v4, %v3998_v10  ;;  %v4067_v40 = vsel %vm4065_vm0, %v7002_v52, %v3997_v39  ;;  %v4137_v56 = vsel %vm523_vm4, %v4136_v28, %v3828_v47  ;;  %v4140_v41 = vrot.slane %v3895_v43, 5 }
0x15b6   :  { %4086 = vrot.lane.b32.xlu2 %v4068_v12, %s4954_s17  ;;  %4084 = vrot.lane.b32.xlu1 %v4067_v40, %s4954_s17  ;;  %v4151_v19 = vpop.permute.xlu2 %4150  ;;  %v4069_v34 = vsel %vm4065_vm0, %v7006_v18, %v3999_v58  ;;  %v4139_v9 = vsel %vm526_vm5, %v4138_v24, %v4137_v56  ;;  %v4071_v30 = vsel %vm4065_vm0, %v7010_v5, %v4001_v50  ;;  %v3899_v4 = vrot.slane %v3828_v47, 7 }
0x15b7   :  { %4156 = vst.msk [vmem:[%s7121_s8] sm:$0xff] %vm158_vm11, %v4151_v19  ;;  %v4070_v15 = vsel %vm4065_vm0, %v7014_v14, %v4000_v46  ;;  %v4002_v52 = vperm.slane %v3898_v0, 0  ;;  %v4141_v45 = vsel %vm529_vm6, %v4140_v41, %v4139_v9  ;;  %v4142_v18 = vrot.slane %v3896_v22, 4 }
0x15b8   :  { %v4003_v25 = vperm.slane %v3899_v4, 0  ;;  %v4144_v17 = vrot.slane %v3897_v51, 3  ;;  %v4146_v13 = vrot.slane %v3898_v0, 2  ;;  %v4148_v7 = vrot.slane %v3899_v4, 1 }
0x15b9   :  { %v4143_v11 = vsel %vm532_vm7, %v4142_v18, %v4141_v45  ;;  %v4072_v1 = vsel %vm4065_vm0, %v7018_v29, %v4002_v52 }
0x15ba   :  { %v4073_v5 = vsel %vm4065_vm0, %v7022_v31, %v4003_v25  ;;  %v4145_v14 = vsel %vm535_vm8, %v4144_v17, %v4143_v11 }
0x15bb   :  { %v4147_v54 = vsel %vm538_vm9, %v4146_v13, %v4145_v14 }
0x15bc   :  { %4088 = vrot.lane.b32.xlu0 %v4069_v34, %s4954_s17  ;;  %v4149_v38 = vsel %vm541_vm10, %v4148_v7, %v4147_v54 }
0x15be   :  { %4092 = vrot.lane.b32.xlu2 %v4071_v30, %s4954_s17  ;;  %4090 = vrot.lane.b32.xlu1 %v4070_v15, %s4954_s17 }
0x15c4   :  { %4094 = vrot.lane.b32.xlu0 %v4072_v1, %s4954_s17 }
0x15c6   :  { %4204 = vrot.lane.b32.xlu2 %v3822_v49, %s4955_s21  ;;  %4096 = vrot.lane.b32.xlu1 %v4073_v5, %s4954_s17 }
0x15cc   :  { %4152 = vrot.lane.b32.xlu0 %v4149_v38, %s4954_s17 }
0x15ce   :  { %4202 = vrot.lane.b32.xlu1 %v6956_v27, %s4955_s21 }
0x1610   :  { %v4087_v29 = vpop.permute.xlu2 %4086 }
0x1611   :  { %4108 = vst.msk [vmem:[%s7122_s7 + $0x10] sm:$0xff] %vm158_vm11, %v4087_v29 }
0x1618   :  { %v4093_v31 = vpop.permute.xlu2 %4092 }
0x1619   :  { %4111 = vst.msk [vmem:[%s7122_s7 + $0x28] sm:$0xff] %vm158_vm11, %v4093_v31 }
0x1620   :  { %v4205_v6 = vpop.permute.xlu2 %4204 }
0x1621   :  { %4209 = vst.msk [vmem:[%s7123_s9 + $0x8] sm:$0xff] %vm158_vm11, %v4205_v6 }
0x1626   :  { %v4083_v42 = vpop.permute.xlu0 %4082 }
0x1627   :  { %4106 = vst.msk [vmem:[%s7122_s7] sm:$0xff] %vm158_vm11, %v4083_v42 }
0x1628   :  { %v4085_v27 = vpop.permute.xlu1 %4084 }
0x1629   :  { %4107 = vst.msk [vmem:[%s7122_s7 + $0x8] sm:$0xff] %vm158_vm11, %v4085_v27 }
0x162e   :  { %v4089_v26 = vpop.permute.xlu0 %4088 }
0x162f   :  { %4109 = vst.msk [vmem:[%s7122_s7 + $0x18] sm:$0xff] %vm158_vm11, %v4089_v26 }
0x1630   :  { %v4091_v36 = vpop.permute.xlu1 %4090 }
0x1631   :  { %4110 = vst.msk [vmem:[%s7122_s7 + $0x20] sm:$0xff] %vm158_vm11, %v4091_v36 }
0x1636   :  { %v4095_v32 = vpop.permute.xlu0 %4094 }
0x1637   :  { %4112 = vst.msk [vmem:[%s7122_s7 + $0x30] sm:$0xff] %vm158_vm11, %v4095_v32 }
0x1638   :  { %v4097_v33 = vpop.permute.xlu1 %4096 }
0x1639   :  { %4113 = vst.msk [vmem:[%s7122_s7 + $0x38] sm:$0xff] %vm158_vm11, %v4097_v33 }
0x163e   :  { %v4153_v16 = vpop.permute.xlu0 %4152 }
0x163f   :  { %4157 = vst.msk [vmem:[%s7121_s8 + $0x8] sm:$0xff] %vm158_vm11, %v4153_v16 }
0x1640   :  { %v4203_v55 = vpop.permute.xlu1 %4202 }
0x1641   :  { %4208 = vst.msk [vmem:[%s7123_s9] sm:$0xff] %vm158_vm11, %v4203_v55 }

</bundles_post_ra>
